<compile_context>
chip_gen: v6e
topology: v6e:2x2x1
jax: 0.10.0
libtpu: 0.0.40
codegen_flags: <defaults>
</compile_context>

<pallas_src>
import functools
import math

import numpy as np
import jax
import jax.numpy as jnp
from jax.experimental import pallas as pl
from jax.experimental.pallas import tpu as pltpu


# ----------------------------------------------------------------------------
# in-kernel math helpers
# ----------------------------------------------------------------------------
def _erf(z):
    # Abramowitz & Stegun 7.1.26 rational approximation (|err| ~ 1e-4 here,
    # dominated by the approx reciprocal); built only from ops that lower in
    # Mosaic.  The divide goes to the EUP via pl.reciprocal(approx=True).
    a1, a2, a3, a4, a5 = 0.254829592, -0.284496736, 1.421413741, -1.453152027, 1.061405429
    p = 0.3275911
    sign = jnp.where(z >= 0.0, 1.0, -1.0)
    za = jnp.abs(z)
    t = pl.reciprocal(1.0 + p * za, approx=True)
    poly = ((((a5 * t + a4) * t + a3) * t + a2) * t + a1) * t
    return sign * (1.0 - poly * jnp.exp(-za * za))


def _gelu(x):
    # erf-based GELU (torch.nn.GELU() default, up to the erf approximation)
    return 0.5 * x * (1.0 + _erf(x * (1.0 / math.sqrt(2.0))))


def _maxpool2d_cl(x, kp, stride):
    # valid max-pool (padding=0) on a channels-last (H, W, C) tile:
    # stride-1 sliding max via kp shifted jnp.maximum per axis, then a cheap
    # stride subsample (one concat per axis).
    H, W, C = x.shape
    Ho = (H - kp) // stride + 1
    Wo = (W - kp) // stride + 1

    Lw = W - kp + 1
    m = x[:, 0:Lw, :]
    for v in range(1, kp):
        m = jnp.maximum(m, x[:, v:v + Lw, :])
    if stride > 1:
        m = jnp.concatenate(
            [m[:, j * stride:j * stride + 1, :] for j in range(Wo)], axis=1)
    else:
        m = m[:, :Wo, :]

    Lh = H - kp + 1
    r = m[0:Lh, :, :]
    for u in range(1, kp):
        r = jnp.maximum(r, m[u:u + Lh, :, :])
    if stride > 1:
        r = jnp.concatenate(
            [r[i * stride:i * stride + 1, :, :] for i in range(Ho)], axis=0)
    else:
        r = r[:Ho, :, :]
    return r


def _zero_pad_hw(x, pad):
    # zero-pad the two spatial dims of a channels-last (H, W, C) tile in VMEM
    H, W, C = x.shape
    zc = jnp.zeros((H, pad, C), x.dtype)
    x = jnp.concatenate([zc, x, zc], axis=1)
    zr = jnp.zeros((pad, W + 2 * pad, C), x.dtype)
    return jnp.concatenate([zr, x, zr], axis=0)


def _dwconv_cl(x, w, b, K, dil):
    # depthwise conv, channels-last (H, W, C); w: (K*K, C) tap-major, b: (1, C)
    H, W, C = x.shape
    pad = (K - 1) // 2 * dil
    xp = _zero_pad_hw(x, pad)
    acc = None
    for u in range(K):
        for v in range(K):
            tap = xp[u * dil:u * dil + H, v * dil:v * dil + W, :] * w[u * K + v, :]
            acc = tap if acc is None else acc + tap
    return acc + b


# ----------------------------------------------------------------------------
# fused kernel: one batch element per grid step
# ----------------------------------------------------------------------------
def _vision_attention_kernel(x_ref, wh_ref, bh_ref, wd1_ref, bd1_ref,
                             wd2_ref, bd2_ref, wpw_ref, bpw_ref,
                             wt_ref, bt_ref, mt_ref, o_ref,
                             *, H, W, scale, k1, d, k2):
    f = wh_ref.shape[0]
    x = x_ref[0]                                             # (Cn, H*W) f32

    # head 1x1 conv (channels-first matmul): bf16 MXU operands, f32 accumulate
    c1 = jnp.dot(wh_ref[...].astype(jnp.bfloat16),
                 x.astype(jnp.bfloat16),
                 preferred_element_type=jnp.float32) + bh_ref[...]    # (f, H*W)

    # max_pool2d(kernel=2*scale+1, stride=scale) + GELU on a channels-last tile
    c1_cl = c1.T.reshape(H, W, f)
    p = _gelu(_maxpool2d_cl(c1_cl, 2 * scale + 1, scale))             # (Ho, Wo, f)

    # LKA: dilated depthwise k1 -> depthwise k2 -> pointwise 1x1
    p = _dwconv_cl(p, wd1_ref[...], bd1_ref[...], k1, d)
    p = _dwconv_cl(p, wd2_ref[...], bd2_ref[...], k2, 1)
    Ho, Wo = p.shape[0], p.shape[1]
    c2 = jnp.dot(wpw_ref[...], p.reshape(Ho * Wo, f).T,
                 preferred_element_type=jnp.float32) + bpw_ref[...]   # (f, Ho*Wo)

    # bilinear upsample (align_corners=False) as ONE matmul against the
    # precomputed Kronecker interpolation matrix (Ho*Wo, H*W)
    c3 = jnp.dot(c2, mt_ref[...], preferred_element_type=jnp.float32)  # (f, H*W)

    # tail 1x1 conv on (c3 + c1), sigmoid gate, multiply into x
    s = (c3 + c1).astype(jnp.bfloat16)
    a = jnp.dot(wt_ref[...].astype(jnp.bfloat16), s,
                preferred_element_type=jnp.float32) + bt_ref[...]      # (Cn, H*W)
    o_ref[0] = x * jax.nn.sigmoid(a)


# ----------------------------------------------------------------------------
# host-side glue
# ----------------------------------------------------------------------------
def _interp_matrix(out_size, in_size):
    # PyTorch bilinear interpolation row weights, align_corners=False
    A = np.zeros((out_size, in_size), np.float32)
    scale = in_size / out_size
    for i in range(out_size):
        src = (i + 0.5) * scale - 0.5
        src = max(src, 0.0)
        i0 = min(int(np.floor(src)), in_size - 1)
        i1 = min(i0 + 1, in_size - 1)
        frac = src - i0
        A[i, i0] += 1.0 - frac
        A[i, i1] += frac
    return A


def vision_attention_forward(x_nchw, params, *, scale=2):
    N, Cn, H, W = x_nchw.shape
    k1, k2, d = params["_k1"], params["_k2"], params["_d"]
    kp = 2 * scale + 1
    Ho = (H - kp) // scale + 1
    Wo = (W - kp) // scale + 1

    # Kronecker bilinear-interpolation matrix (exact f32, built once on host).
    # TODO(synk): for very large H*W switch to the separable two-matmul form;
    # the Kronecker matrix grows as (H*W) x (Ho*Wo).
    mt = jnp.asarray(
        np.kron(_interp_matrix(H, Ho), _interp_matrix(W, Wo)).T)  # (Ho*Wo, H*W)

    # NCHW -> (N, Cn, H*W): a free reshape, lane-dense (H*W on lanes)
    x_flat = x_nchw.reshape(N, Cn, H * W).astype(jnp.float32)

    kern = functools.partial(_vision_attention_kernel,
                             H=H, W=W, scale=scale, k1=k1, d=d, k2=k2)

    weights = (params["w_head"], params["b_head"],
               params["w_dw1"], params["b_dw1"],
               params["w_dw2"], params["b_dw2"],
               params["w_pw"], params["b_pw"],
               params["w_tail"], params["b_tail"], mt)

    def _wspec(a):  # whole (small) weight resident per grid step
        return pl.BlockSpec(a.shape, lambda n: (0, 0))

    out_flat = pl.pallas_call(
        kern,
        out_shape=jax.ShapeDtypeStruct((N, Cn, H * W), jnp.float32),
        grid=(N,),
        in_specs=[pl.BlockSpec((1, Cn, H * W), lambda n: (n, 0, 0))]
                 + [_wspec(a) for a in weights],
        out_specs=pl.BlockSpec((1, Cn, H * W), lambda n: (n, 0, 0)),
        compiler_params=pltpu.CompilerParams(dimension_semantics=("parallel",)),
    )(x_flat, *weights)

    return out_flat.reshape(N, Cn, H, W)


# ----------------------------------------------------------------------------
# parameters (deterministic synthetic init; layouts chosen for the kernel)
# ----------------------------------------------------------------------------
def init_params(key, n_feats, *, k=21, d=3, shrink=0.25):
    f = int(n_feats * shrink)
    k1 = k // d          # dilated depthwise kernel size (7)
    k2 = 2 * d - 1       # depthwise kernel size (5)
    ks = jax.random.split(key, 10)
    s = 0.1
    params = {
        "w_head": jax.random.normal(ks[0], (f, n_feats), jnp.float32) * s,   # (c_out, c_in)
        "b_head": jax.random.normal(ks[1], (f, 1), jnp.float32) * s,
        "w_dw1":  jax.random.normal(ks[2], (k1 * k1, f), jnp.float32) * s,   # (tap, channel)
        "b_dw1":  jax.random.normal(ks[3], (1, f), jnp.float32) * s,
        "w_dw2":  jax.random.normal(ks[4], (k2 * k2, f), jnp.float32) * s,
        "b_dw2":  jax.random.normal(ks[5], (1, f), jnp.float32) * s,
        "w_pw":   jax.random.normal(ks[6], (f, f), jnp.float32) * s,         # (c_out, c_in)
        "b_pw":   jax.random.normal(ks[7], (f, 1), jnp.float32) * s,
        "w_tail": jax.random.normal(ks[8], (n_feats, f), jnp.float32) * s,   # (c_out, c_in)
        "b_tail": jax.random.normal(ks[9], (n_feats, 1), jnp.float32) * s,
        "_k1": k1, "_k2": k2, "_d": d,
    }
    return params


# ----------------------------------------------------------------------------
if __name__ == "__main__":
    n_feats, N, H, W = 32, 2, 16, 16
    key = jax.random.PRNGKey(0)
    kx, kparam = jax.random.split(key)
    x = jax.random.normal(kx, (N, n_feats, H, W), jnp.float32)
    params = init_params(kparam, n_feats, k=21, d=3, shrink=0.25)

    out = vision_attention_forward(x, params, scale=2)
    out = jax.block_until_ready(out)

    assert out.shape == (N, n_feats, H, W)
    assert bool(jnp.all(jnp.isfinite(out)))
    print("KERNEL_OK")
</pallas_src>

<mosaic_0001>
module attributes {stable_mosaic.version = 11 : i64} {
  func.func @_vision_attention_kernel(%arg0: i32, %arg1: memref<1x32x256xf32, #tpu.memory_space<vmem>>, %arg2: memref<8x32xf32, #tpu.memory_space<vmem>>, %arg3: memref<8x1xf32, #tpu.memory_space<vmem>>, %arg4: memref<49x8xf32, #tpu.memory_space<vmem>>, %arg5: memref<1x8xf32, #tpu.memory_space<vmem>>, %arg6: memref<25x8xf32, #tpu.memory_space<vmem>>, %arg7: memref<1x8xf32, #tpu.memory_space<vmem>>, %arg8: memref<8x8xf32, #tpu.memory_space<vmem>>, %arg9: memref<8x1xf32, #tpu.memory_space<vmem>>, %arg10: memref<32x8xf32, #tpu.memory_space<vmem>>, %arg11: memref<32x1xf32, #tpu.memory_space<vmem>>, %arg12: memref<36x256xf32, #tpu.memory_space<vmem>>, %arg13: memref<1x32x256xf32, #tpu.memory_space<vmem>>) attributes {dimension_semantics = [#tpu.dimension_semantics<parallel>], iteration_bounds = array<i64: 2>, scalar_prefetch = 0 : i64, scratch_operands = 0 : i64, tpu.core_type = #tpu.core_type<tc>, window_params = [{transform_indices = @transform_0, window_bounds = array<i64: 1, 32, 256>}, {pipeline_mode = #tpu.pipeline_mode<synchronous>, transform_indices = @transform_1, window_bounds = array<i64: 8, 32>}, {pipeline_mode = #tpu.pipeline_mode<synchronous>, transform_indices = @transform_2, window_bounds = array<i64: 8, 1>}, {pipeline_mode = #tpu.pipeline_mode<synchronous>, transform_indices = @transform_3, window_bounds = array<i64: 49, 8>}, {pipeline_mode = #tpu.pipeline_mode<synchronous>, transform_indices = @transform_4, window_bounds = array<i64: 1, 8>}, {pipeline_mode = #tpu.pipeline_mode<synchronous>, transform_indices = @transform_5, window_bounds = array<i64: 25, 8>}, {pipeline_mode = #tpu.pipeline_mode<synchronous>, transform_indices = @transform_6, window_bounds = array<i64: 1, 8>}, {pipeline_mode = #tpu.pipeline_mode<synchronous>, transform_indices = @transform_7, window_bounds = array<i64: 8, 8>}, {pipeline_mode = #tpu.pipeline_mode<synchronous>, transform_indices = @transform_8, window_bounds = array<i64: 8, 1>}, {pipeline_mode = #tpu.pipeline_mode<synchronous>, transform_indices = @transform_9, window_bounds = array<i64: 32, 8>}, {pipeline_mode = #tpu.pipeline_mode<synchronous>, transform_indices = @transform_10, window_bounds = array<i64: 32, 1>}, {pipeline_mode = #tpu.pipeline_mode<synchronous>, transform_indices = @transform_11, window_bounds = array<i64: 36, 256>}, {transform_indices = @transform_12, window_bounds = array<i64: 1, 32, 256>}]} {
    %c0 = arith.constant 0 : index
    %c0_0 = arith.constant 0 : index
    %c0_1 = arith.constant 0 : index
    %0 = vector.load %arg1[%c0, %c0_0, %c0_1] : memref<1x32x256xf32, #tpu.memory_space<vmem>>, vector<1x32x256xf32>
    %1 = vector.shape_cast %0 : vector<1x32x256xf32> to vector<32x256xf32>
    %c0_2 = arith.constant 0 : index
    %c0_3 = arith.constant 0 : index
    %2 = vector.load %arg2[%c0_2, %c0_3] : memref<8x32xf32, #tpu.memory_space<vmem>>, vector<8x32xf32>
    %3 = arith.truncf %2 : vector<8x32xf32> to vector<8x32xbf16>
    %4 = arith.truncf %1 : vector<32x256xf32> to vector<32x256xbf16>
    %cst = arith.constant dense<0.000000e+00> : vector<8x256xf32>
    %5 = tpu.matmul %3, %4, %cst {dimension_numbers = #tpu.dot_dimension_numbers<[1], [0], [0], [1], [0, 0, 1, 1], [], []>} : vector<8x32xbf16>, vector<32x256xbf16>, vector<8x256xf32> -> vector<8x256xf32>
    %c0_4 = arith.constant 0 : index
    %c0_5 = arith.constant 0 : index
    %6 = vector.load %arg3[%c0_4, %c0_5] : memref<8x1xf32, #tpu.memory_space<vmem>>, vector<8x1xf32>
    %7 = vector.broadcast %6 : vector<8x1xf32> to vector<8x256xf32>
    %8 = arith.addf %5, %7 : vector<8x256xf32>
    %9 = tpu.transpose %8, [1, 0] : vector<8x256xf32> -> vector<256x8xf32>
    %10 = vector.shape_cast %9 : vector<256x8xf32> to vector<16x16x8xf32>
    %11 = vector.extract_strided_slice %10 {offsets = [0, 0, 0], sizes = [16, 12, 8], strides = [1, 1, 1]} : vector<16x16x8xf32> to vector<16x12x8xf32>
    %12 = vector.extract_strided_slice %10 {offsets = [0, 1, 0], sizes = [16, 12, 8], strides = [1, 1, 1]} : vector<16x16x8xf32> to vector<16x12x8xf32>
    %13 = arith.maximumf %11, %12 : vector<16x12x8xf32>
    %14 = vector.extract_strided_slice %10 {offsets = [0, 2, 0], sizes = [16, 12, 8], strides = [1, 1, 1]} : vector<16x16x8xf32> to vector<16x12x8xf32>
    %15 = arith.maximumf %13, %14 : vector<16x12x8xf32>
    %16 = vector.extract_strided_slice %10 {offsets = [0, 3, 0], sizes = [16, 12, 8], strides = [1, 1, 1]} : vector<16x16x8xf32> to vector<16x12x8xf32>
    %17 = arith.maximumf %15, %16 : vector<16x12x8xf32>
    %18 = vector.extract_strided_slice %10 {offsets = [0, 4, 0], sizes = [16, 12, 8], strides = [1, 1, 1]} : vector<16x16x8xf32> to vector<16x12x8xf32>
    %19 = arith.maximumf %17, %18 : vector<16x12x8xf32>
    %20 = vector.extract_strided_slice %19 {offsets = [0, 0, 0], sizes = [16, 1, 8], strides = [1, 1, 1]} : vector<16x12x8xf32> to vector<16x1x8xf32>
    %21 = vector.extract_strided_slice %19 {offsets = [0, 2, 0], sizes = [16, 1, 8], strides = [1, 1, 1]} : vector<16x12x8xf32> to vector<16x1x8xf32>
    %22 = vector.extract_strided_slice %19 {offsets = [0, 4, 0], sizes = [16, 1, 8], strides = [1, 1, 1]} : vector<16x12x8xf32> to vector<16x1x8xf32>
    %23 = vector.extract_strided_slice %19 {offsets = [0, 6, 0], sizes = [16, 1, 8], strides = [1, 1, 1]} : vector<16x12x8xf32> to vector<16x1x8xf32>
    %24 = vector.extract_strided_slice %19 {offsets = [0, 8, 0], sizes = [16, 1, 8], strides = [1, 1, 1]} : vector<16x12x8xf32> to vector<16x1x8xf32>
    %25 = vector.extract_strided_slice %19 {offsets = [0, 10, 0], sizes = [16, 1, 8], strides = [1, 1, 1]} : vector<16x12x8xf32> to vector<16x1x8xf32>
    %26 = tpu.concatenate %20, %21, %22, %23, %24, %25 in 1 : vector<16x1x8xf32>, vector<16x1x8xf32>, vector<16x1x8xf32>, vector<16x1x8xf32>, vector<16x1x8xf32>, vector<16x1x8xf32> -> vector<16x6x8xf32>
    %27 = vector.extract_strided_slice %26 {offsets = [0, 0, 0], sizes = [12, 6, 8], strides = [1, 1, 1]} : vector<16x6x8xf32> to vector<12x6x8xf32>
    %28 = vector.extract_strided_slice %26 {offsets = [1, 0, 0], sizes = [12, 6, 8], strides = [1, 1, 1]} : vector<16x6x8xf32> to vector<12x6x8xf32>
    %29 = arith.maximumf %27, %28 : vector<12x6x8xf32>
    %30 = vector.extract_strided_slice %26 {offsets = [2, 0, 0], sizes = [12, 6, 8], strides = [1, 1, 1]} : vector<16x6x8xf32> to vector<12x6x8xf32>
    %31 = arith.maximumf %29, %30 : vector<12x6x8xf32>
    %32 = vector.extract_strided_slice %26 {offsets = [3, 0, 0], sizes = [12, 6, 8], strides = [1, 1, 1]} : vector<16x6x8xf32> to vector<12x6x8xf32>
    %33 = arith.maximumf %31, %32 : vector<12x6x8xf32>
    %34 = vector.extract_strided_slice %26 {offsets = [4, 0, 0], sizes = [12, 6, 8], strides = [1, 1, 1]} : vector<16x6x8xf32> to vector<12x6x8xf32>
    %35 = arith.maximumf %33, %34 : vector<12x6x8xf32>
    %36 = vector.extract_strided_slice %35 {offsets = [0, 0, 0], sizes = [1, 6, 8], strides = [1, 1, 1]} : vector<12x6x8xf32> to vector<1x6x8xf32>
    %37 = vector.extract_strided_slice %35 {offsets = [2, 0, 0], sizes = [1, 6, 8], strides = [1, 1, 1]} : vector<12x6x8xf32> to vector<1x6x8xf32>
    %38 = vector.extract_strided_slice %35 {offsets = [4, 0, 0], sizes = [1, 6, 8], strides = [1, 1, 1]} : vector<12x6x8xf32> to vector<1x6x8xf32>
    %39 = vector.extract_strided_slice %35 {offsets = [6, 0, 0], sizes = [1, 6, 8], strides = [1, 1, 1]} : vector<12x6x8xf32> to vector<1x6x8xf32>
    %40 = vector.extract_strided_slice %35 {offsets = [8, 0, 0], sizes = [1, 6, 8], strides = [1, 1, 1]} : vector<12x6x8xf32> to vector<1x6x8xf32>
    %41 = vector.extract_strided_slice %35 {offsets = [10, 0, 0], sizes = [1, 6, 8], strides = [1, 1, 1]} : vector<12x6x8xf32> to vector<1x6x8xf32>
    %42 = tpu.concatenate %36, %37, %38, %39, %40, %41 in 0 : vector<1x6x8xf32>, vector<1x6x8xf32>, vector<1x6x8xf32>, vector<1x6x8xf32>, vector<1x6x8xf32>, vector<1x6x8xf32> -> vector<6x6x8xf32>
    %cst_6 = arith.constant 5.000000e-01 : f32
    %43 = vector.broadcast %cst_6 : f32 to vector<6x6x8xf32>
    %44 = arith.mulf %43, %42 : vector<6x6x8xf32>
    %cst_7 = arith.constant 0.707106769 : f32
    %45 = vector.broadcast %cst_7 : f32 to vector<6x6x8xf32>
    %46 = arith.mulf %42, %45 : vector<6x6x8xf32>
    %cst_8 = arith.constant 0.000000e+00 : f32
    %47 = vector.broadcast %cst_8 : f32 to vector<6x6x8xf32>
    %48 = arith.cmpf oge, %46, %47 : vector<6x6x8xf32>
    %cst_9 = arith.constant 1.000000e+00 : f32
    %cst_10 = arith.constant -1.000000e+00 : f32
    %49 = vector.broadcast %cst_9 : f32 to vector<6x6x8xf32>
    %50 = vector.broadcast %cst_10 : f32 to vector<6x6x8xf32>
    %51 = arith.select %48, %49, %50 : vector<6x6x8xi1>, vector<6x6x8xf32>
    %52 = math.absf %46 : vector<6x6x8xf32>
    %cst_11 = arith.constant 0.327591091 : f32
    %53 = vector.broadcast %cst_11 : f32 to vector<6x6x8xf32>
    %54 = arith.mulf %53, %52 : vector<6x6x8xf32>
    %cst_12 = arith.constant 1.000000e+00 : f32
    %55 = vector.broadcast %cst_12 : f32 to vector<6x6x8xf32>
    %56 = arith.addf %55, %54 : vector<6x6x8xf32>
    %57 = tpu.reciprocal %56 {approx = true} : vector<6x6x8xf32> -> vector<6x6x8xf32>
    %cst_13 = arith.constant 1.06140542 : f32
    %58 = vector.broadcast %cst_13 : f32 to vector<6x6x8xf32>
    %59 = arith.mulf %58, %57 : vector<6x6x8xf32>
    %cst_14 = arith.constant -1.45315206 : f32
    %60 = vector.broadcast %cst_14 : f32 to vector<6x6x8xf32>
    %61 = arith.addf %59, %60 : vector<6x6x8xf32>
    %62 = arith.mulf %61, %57 : vector<6x6x8xf32>
    %cst_15 = arith.constant 1.42141378 : f32
    %63 = vector.broadcast %cst_15 : f32 to vector<6x6x8xf32>
    %64 = arith.addf %62, %63 : vector<6x6x8xf32>
    %65 = arith.mulf %64, %57 : vector<6x6x8xf32>
    %cst_16 = arith.constant -0.284496725 : f32
    %66 = vector.broadcast %cst_16 : f32 to vector<6x6x8xf32>
    %67 = arith.addf %65, %66 : vector<6x6x8xf32>
    %68 = arith.mulf %67, %57 : vector<6x6x8xf32>
    %cst_17 = arith.constant 0.254829586 : f32
    %69 = vector.broadcast %cst_17 : f32 to vector<6x6x8xf32>
    %70 = arith.addf %68, %69 : vector<6x6x8xf32>
    %71 = arith.mulf %70, %57 : vector<6x6x8xf32>
    %cst_18 = arith.constant 0.000000e+00 : f32
    %72 = vector.broadcast %cst_18 : f32 to vector<6x6x8xf32>
    %73 = arith.subf %72, %52 : vector<6x6x8xf32>
    %74 = arith.mulf %73, %52 : vector<6x6x8xf32>
    %75 = math.exp %74 : vector<6x6x8xf32>
    %76 = arith.mulf %71, %75 : vector<6x6x8xf32>
    %cst_19 = arith.constant 1.000000e+00 : f32
    %77 = vector.broadcast %cst_19 : f32 to vector<6x6x8xf32>
    %78 = arith.subf %77, %76 : vector<6x6x8xf32>
    %79 = arith.mulf %51, %78 : vector<6x6x8xf32>
    %cst_20 = arith.constant 1.000000e+00 : f32
    %80 = vector.broadcast %cst_20 : f32 to vector<6x6x8xf32>
    %81 = arith.addf %80, %79 : vector<6x6x8xf32>
    %82 = arith.mulf %44, %81 : vector<6x6x8xf32>
    %c0_21 = arith.constant 0 : index
    %c0_22 = arith.constant 0 : index
    %83 = vector.load %arg4[%c0_21, %c0_22] : memref<49x8xf32, #tpu.memory_space<vmem>>, vector<49x8xf32>
    %c0_23 = arith.constant 0 : index
    %c0_24 = arith.constant 0 : index
    %84 = vector.load %arg5[%c0_23, %c0_24] : memref<1x8xf32, #tpu.memory_space<vmem>>, vector<1x8xf32>
    %cst_25 = arith.constant 0.000000e+00 : f32
    %85 = vector.broadcast %cst_25 : f32 to vector<6x9x8xf32>
    %86 = tpu.concatenate %85, %82, %85 in 1 : vector<6x9x8xf32>, vector<6x6x8xf32>, vector<6x9x8xf32> -> vector<6x24x8xf32>
    %cst_26 = arith.constant 0.000000e+00 : f32
    %87 = vector.broadcast %cst_26 : f32 to vector<9x24x8xf32>
    %88 = tpu.concatenate %87, %86, %87 in 0 : vector<9x24x8xf32>, vector<6x24x8xf32>, vector<9x24x8xf32> -> vector<24x24x8xf32>
    %89 = vector.extract_strided_slice %88 {offsets = [0, 0, 0], sizes = [6, 6, 8], strides = [1, 1, 1]} : vector<24x24x8xf32> to vector<6x6x8xf32>
    %90 = vector.extract_strided_slice %83 {offsets = [0, 0], sizes = [1, 8], strides = [1, 1]} : vector<49x8xf32> to vector<1x8xf32>
    %91 = vector.shape_cast %90 : vector<1x8xf32> to vector<8xf32>
    %92 = vector.shape_cast %91 : vector<8xf32> to vector<1x1x8xf32>
    %93 = vector.broadcast %92 : vector<1x1x8xf32> to vector<6x6x8xf32>
    %94 = arith.mulf %89, %93 : vector<6x6x8xf32>
    %95 = vector.extract_strided_slice %88 {offsets = [0, 3, 0], sizes = [6, 6, 8], strides = [1, 1, 1]} : vector<24x24x8xf32> to vector<6x6x8xf32>
    %96 = vector.extract_strided_slice %83 {offsets = [1, 0], sizes = [1, 8], strides = [1, 1]} : vector<49x8xf32> to vector<1x8xf32>
    %97 = vector.shape_cast %96 : vector<1x8xf32> to vector<8xf32>
    %98 = vector.shape_cast %97 : vector<8xf32> to vector<1x1x8xf32>
    %99 = vector.broadcast %98 : vector<1x1x8xf32> to vector<6x6x8xf32>
    %100 = arith.mulf %95, %99 : vector<6x6x8xf32>
    %101 = arith.addf %94, %100 : vector<6x6x8xf32>
    %102 = vector.extract_strided_slice %88 {offsets = [0, 6, 0], sizes = [6, 6, 8], strides = [1, 1, 1]} : vector<24x24x8xf32> to vector<6x6x8xf32>
    %103 = vector.extract_strided_slice %83 {offsets = [2, 0], sizes = [1, 8], strides = [1, 1]} : vector<49x8xf32> to vector<1x8xf32>
    %104 = vector.shape_cast %103 : vector<1x8xf32> to vector<8xf32>
    %105 = vector.shape_cast %104 : vector<8xf32> to vector<1x1x8xf32>
    %106 = vector.broadcast %105 : vector<1x1x8xf32> to vector<6x6x8xf32>
    %107 = arith.mulf %102, %106 : vector<6x6x8xf32>
    %108 = arith.addf %101, %107 : vector<6x6x8xf32>
    %109 = vector.extract_strided_slice %88 {offsets = [0, 9, 0], sizes = [6, 6, 8], strides = [1, 1, 1]} : vector<24x24x8xf32> to vector<6x6x8xf32>
    %110 = vector.extract_strided_slice %83 {offsets = [3, 0], sizes = [1, 8], strides = [1, 1]} : vector<49x8xf32> to vector<1x8xf32>
    %111 = vector.shape_cast %110 : vector<1x8xf32> to vector<8xf32>
    %112 = vector.shape_cast %111 : vector<8xf32> to vector<1x1x8xf32>
    %113 = vector.broadcast %112 : vector<1x1x8xf32> to vector<6x6x8xf32>
    %114 = arith.mulf %109, %113 : vector<6x6x8xf32>
    %115 = arith.addf %108, %114 : vector<6x6x8xf32>
    %116 = vector.extract_strided_slice %88 {offsets = [0, 12, 0], sizes = [6, 6, 8], strides = [1, 1, 1]} : vector<24x24x8xf32> to vector<6x6x8xf32>
    %117 = vector.extract_strided_slice %83 {offsets = [4, 0], sizes = [1, 8], strides = [1, 1]} : vector<49x8xf32> to vector<1x8xf32>
    %118 = vector.shape_cast %117 : vector<1x8xf32> to vector<8xf32>
    %119 = vector.shape_cast %118 : vector<8xf32> to vector<1x1x8xf32>
    %120 = vector.broadcast %119 : vector<1x1x8xf32> to vector<6x6x8xf32>
    %121 = arith.mulf %116, %120 : vector<6x6x8xf32>
    %122 = arith.addf %115, %121 : vector<6x6x8xf32>
    %123 = vector.extract_strided_slice %88 {offsets = [0, 15, 0], sizes = [6, 6, 8], strides = [1, 1, 1]} : vector<24x24x8xf32> to vector<6x6x8xf32>
    %124 = vector.extract_strided_slice %83 {offsets = [5, 0], sizes = [1, 8], strides = [1, 1]} : vector<49x8xf32> to vector<1x8xf32>
    %125 = vector.shape_cast %124 : vector<1x8xf32> to vector<8xf32>
    %126 = vector.shape_cast %125 : vector<8xf32> to vector<1x1x8xf32>
    %127 = vector.broadcast %126 : vector<1x1x8xf32> to vector<6x6x8xf32>
    %128 = arith.mulf %123, %127 : vector<6x6x8xf32>
    %129 = arith.addf %122, %128 : vector<6x6x8xf32>
    %130 = vector.extract_strided_slice %88 {offsets = [0, 18, 0], sizes = [6, 6, 8], strides = [1, 1, 1]} : vector<24x24x8xf32> to vector<6x6x8xf32>
    %131 = vector.extract_strided_slice %83 {offsets = [6, 0], sizes = [1, 8], strides = [1, 1]} : vector<49x8xf32> to vector<1x8xf32>
    %132 = vector.shape_cast %131 : vector<1x8xf32> to vector<8xf32>
    %133 = vector.shape_cast %132 : vector<8xf32> to vector<1x1x8xf32>
    %134 = vector.broadcast %133 : vector<1x1x8xf32> to vector<6x6x8xf32>
    %135 = arith.mulf %130, %134 : vector<6x6x8xf32>
    %136 = arith.addf %129, %135 : vector<6x6x8xf32>
    %137 = vector.extract_strided_slice %88 {offsets = [3, 0, 0], sizes = [6, 6, 8], strides = [1, 1, 1]} : vector<24x24x8xf32> to vector<6x6x8xf32>
    %138 = vector.extract_strided_slice %83 {offsets = [7, 0], sizes = [1, 8], strides = [1, 1]} : vector<49x8xf32> to vector<1x8xf32>
    %139 = vector.shape_cast %138 : vector<1x8xf32> to vector<8xf32>
    %140 = vector.shape_cast %139 : vector<8xf32> to vector<1x1x8xf32>
    %141 = vector.broadcast %140 : vector<1x1x8xf32> to vector<6x6x8xf32>
    %142 = arith.mulf %137, %141 : vector<6x6x8xf32>
    %143 = arith.addf %136, %142 : vector<6x6x8xf32>
    %144 = vector.extract_strided_slice %88 {offsets = [3, 3, 0], sizes = [6, 6, 8], strides = [1, 1, 1]} : vector<24x24x8xf32> to vector<6x6x8xf32>
    %145 = vector.extract_strided_slice %83 {offsets = [8, 0], sizes = [1, 8], strides = [1, 1]} : vector<49x8xf32> to vector<1x8xf32>
    %146 = vector.shape_cast %145 : vector<1x8xf32> to vector<8xf32>
    %147 = vector.shape_cast %146 : vector<8xf32> to vector<1x1x8xf32>
    %148 = vector.broadcast %147 : vector<1x1x8xf32> to vector<6x6x8xf32>
    %149 = arith.mulf %144, %148 : vector<6x6x8xf32>
    %150 = arith.addf %143, %149 : vector<6x6x8xf32>
    %151 = vector.extract_strided_slice %88 {offsets = [3, 6, 0], sizes = [6, 6, 8], strides = [1, 1, 1]} : vector<24x24x8xf32> to vector<6x6x8xf32>
    %152 = vector.extract_strided_slice %83 {offsets = [9, 0], sizes = [1, 8], strides = [1, 1]} : vector<49x8xf32> to vector<1x8xf32>
    %153 = vector.shape_cast %152 : vector<1x8xf32> to vector<8xf32>
    %154 = vector.shape_cast %153 : vector<8xf32> to vector<1x1x8xf32>
    %155 = vector.broadcast %154 : vector<1x1x8xf32> to vector<6x6x8xf32>
    %156 = arith.mulf %151, %155 : vector<6x6x8xf32>
    %157 = arith.addf %150, %156 : vector<6x6x8xf32>
    %158 = vector.extract_strided_slice %88 {offsets = [3, 9, 0], sizes = [6, 6, 8], strides = [1, 1, 1]} : vector<24x24x8xf32> to vector<6x6x8xf32>
    %159 = vector.extract_strided_slice %83 {offsets = [10, 0], sizes = [1, 8], strides = [1, 1]} : vector<49x8xf32> to vector<1x8xf32>
    %160 = vector.shape_cast %159 : vector<1x8xf32> to vector<8xf32>
    %161 = vector.shape_cast %160 : vector<8xf32> to vector<1x1x8xf32>
    %162 = vector.broadcast %161 : vector<1x1x8xf32> to vector<6x6x8xf32>
    %163 = arith.mulf %158, %162 : vector<6x6x8xf32>
    %164 = arith.addf %157, %163 : vector<6x6x8xf32>
    %165 = vector.extract_strided_slice %88 {offsets = [3, 12, 0], sizes = [6, 6, 8], strides = [1, 1, 1]} : vector<24x24x8xf32> to vector<6x6x8xf32>
    %166 = vector.extract_strided_slice %83 {offsets = [11, 0], sizes = [1, 8], strides = [1, 1]} : vector<49x8xf32> to vector<1x8xf32>
    %167 = vector.shape_cast %166 : vector<1x8xf32> to vector<8xf32>
    %168 = vector.shape_cast %167 : vector<8xf32> to vector<1x1x8xf32>
    %169 = vector.broadcast %168 : vector<1x1x8xf32> to vector<6x6x8xf32>
    %170 = arith.mulf %165, %169 : vector<6x6x8xf32>
    %171 = arith.addf %164, %170 : vector<6x6x8xf32>
    %172 = vector.extract_strided_slice %88 {offsets = [3, 15, 0], sizes = [6, 6, 8], strides = [1, 1, 1]} : vector<24x24x8xf32> to vector<6x6x8xf32>
    %173 = vector.extract_strided_slice %83 {offsets = [12, 0], sizes = [1, 8], strides = [1, 1]} : vector<49x8xf32> to vector<1x8xf32>
    %174 = vector.shape_cast %173 : vector<1x8xf32> to vector<8xf32>
    %175 = vector.shape_cast %174 : vector<8xf32> to vector<1x1x8xf32>
    %176 = vector.broadcast %175 : vector<1x1x8xf32> to vector<6x6x8xf32>
    %177 = arith.mulf %172, %176 : vector<6x6x8xf32>
    %178 = arith.addf %171, %177 : vector<6x6x8xf32>
    %179 = vector.extract_strided_slice %88 {offsets = [3, 18, 0], sizes = [6, 6, 8], strides = [1, 1, 1]} : vector<24x24x8xf32> to vector<6x6x8xf32>
    %180 = vector.extract_strided_slice %83 {offsets = [13, 0], sizes = [1, 8], strides = [1, 1]} : vector<49x8xf32> to vector<1x8xf32>
    %181 = vector.shape_cast %180 : vector<1x8xf32> to vector<8xf32>
    %182 = vector.shape_cast %181 : vector<8xf32> to vector<1x1x8xf32>
    %183 = vector.broadcast %182 : vector<1x1x8xf32> to vector<6x6x8xf32>
    %184 = arith.mulf %179, %183 : vector<6x6x8xf32>
    %185 = arith.addf %178, %184 : vector<6x6x8xf32>
    %186 = vector.extract_strided_slice %88 {offsets = [6, 0, 0], sizes = [6, 6, 8], strides = [1, 1, 1]} : vector<24x24x8xf32> to vector<6x6x8xf32>
    %187 = vector.extract_strided_slice %83 {offsets = [14, 0], sizes = [1, 8], strides = [1, 1]} : vector<49x8xf32> to vector<1x8xf32>
    %188 = vector.shape_cast %187 : vector<1x8xf32> to vector<8xf32>
    %189 = vector.shape_cast %188 : vector<8xf32> to vector<1x1x8xf32>
    %190 = vector.broadcast %189 : vector<1x1x8xf32> to vector<6x6x8xf32>
    %191 = arith.mulf %186, %190 : vector<6x6x8xf32>
    %192 = arith.addf %185, %191 : vector<6x6x8xf32>
    %193 = vector.extract_strided_slice %88 {offsets = [6, 3, 0], sizes = [6, 6, 8], strides = [1, 1, 1]} : vector<24x24x8xf32> to vector<6x6x8xf32>
    %194 = vector.extract_strided_slice %83 {offsets = [15, 0], sizes = [1, 8], strides = [1, 1]} : vector<49x8xf32> to vector<1x8xf32>
    %195 = vector.shape_cast %194 : vector<1x8xf32> to vector<8xf32>
    %196 = vector.shape_cast %195 : vector<8xf32> to vector<1x1x8xf32>
    %197 = vector.broadcast %196 : vector<1x1x8xf32> to vector<6x6x8xf32>
    %198 = arith.mulf %193, %197 : vector<6x6x8xf32>
    %199 = arith.addf %192, %198 : vector<6x6x8xf32>
    %200 = vector.extract_strided_slice %88 {offsets = [6, 6, 0], sizes = [6, 6, 8], strides = [1, 1, 1]} : vector<24x24x8xf32> to vector<6x6x8xf32>
    %201 = vector.extract_strided_slice %83 {offsets = [16, 0], sizes = [1, 8], strides = [1, 1]} : vector<49x8xf32> to vector<1x8xf32>
    %202 = vector.shape_cast %201 : vector<1x8xf32> to vector<8xf32>
    %203 = vector.shape_cast %202 : vector<8xf32> to vector<1x1x8xf32>
    %204 = vector.broadcast %203 : vector<1x1x8xf32> to vector<6x6x8xf32>
    %205 = arith.mulf %200, %204 : vector<6x6x8xf32>
    %206 = arith.addf %199, %205 : vector<6x6x8xf32>
    %207 = vector.extract_strided_slice %88 {offsets = [6, 9, 0], sizes = [6, 6, 8], strides = [1, 1, 1]} : vector<24x24x8xf32> to vector<6x6x8xf32>
    %208 = vector.extract_strided_slice %83 {offsets = [17, 0], sizes = [1, 8], strides = [1, 1]} : vector<49x8xf32> to vector<1x8xf32>
    %209 = vector.shape_cast %208 : vector<1x8xf32> to vector<8xf32>
    %210 = vector.shape_cast %209 : vector<8xf32> to vector<1x1x8xf32>
    %211 = vector.broadcast %210 : vector<1x1x8xf32> to vector<6x6x8xf32>
    %212 = arith.mulf %207, %211 : vector<6x6x8xf32>
    %213 = arith.addf %206, %212 : vector<6x6x8xf32>
    %214 = vector.extract_strided_slice %88 {offsets = [6, 12, 0], sizes = [6, 6, 8], strides = [1, 1, 1]} : vector<24x24x8xf32> to vector<6x6x8xf32>
    %215 = vector.extract_strided_slice %83 {offsets = [18, 0], sizes = [1, 8], strides = [1, 1]} : vector<49x8xf32> to vector<1x8xf32>
    %216 = vector.shape_cast %215 : vector<1x8xf32> to vector<8xf32>
    %217 = vector.shape_cast %216 : vector<8xf32> to vector<1x1x8xf32>
    %218 = vector.broadcast %217 : vector<1x1x8xf32> to vector<6x6x8xf32>
    %219 = arith.mulf %214, %218 : vector<6x6x8xf32>
    %220 = arith.addf %213, %219 : vector<6x6x8xf32>
    %221 = vector.extract_strided_slice %88 {offsets = [6, 15, 0], sizes = [6, 6, 8], strides = [1, 1, 1]} : vector<24x24x8xf32> to vector<6x6x8xf32>
    %222 = vector.extract_strided_slice %83 {offsets = [19, 0], sizes = [1, 8], strides = [1, 1]} : vector<49x8xf32> to vector<1x8xf32>
    %223 = vector.shape_cast %222 : vector<1x8xf32> to vector<8xf32>
    %224 = vector.shape_cast %223 : vector<8xf32> to vector<1x1x8xf32>
    %225 = vector.broadcast %224 : vector<1x1x8xf32> to vector<6x6x8xf32>
    %226 = arith.mulf %221, %225 : vector<6x6x8xf32>
    %227 = arith.addf %220, %226 : vector<6x6x8xf32>
    %228 = vector.extract_strided_slice %88 {offsets = [6, 18, 0], sizes = [6, 6, 8], strides = [1, 1, 1]} : vector<24x24x8xf32> to vector<6x6x8xf32>
    %229 = vector.extract_strided_slice %83 {offsets = [20, 0], sizes = [1, 8], strides = [1, 1]} : vector<49x8xf32> to vector<1x8xf32>
    %230 = vector.shape_cast %229 : vector<1x8xf32> to vector<8xf32>
    %231 = vector.shape_cast %230 : vector<8xf32> to vector<1x1x8xf32>
    %232 = vector.broadcast %231 : vector<1x1x8xf32> to vector<6x6x8xf32>
    %233 = arith.mulf %228, %232 : vector<6x6x8xf32>
    %234 = arith.addf %227, %233 : vector<6x6x8xf32>
    %235 = vector.extract_strided_slice %88 {offsets = [9, 0, 0], sizes = [6, 6, 8], strides = [1, 1, 1]} : vector<24x24x8xf32> to vector<6x6x8xf32>
    %236 = vector.extract_strided_slice %83 {offsets = [21, 0], sizes = [1, 8], strides = [1, 1]} : vector<49x8xf32> to vector<1x8xf32>
    %237 = vector.shape_cast %236 : vector<1x8xf32> to vector<8xf32>
    %238 = vector.shape_cast %237 : vector<8xf32> to vector<1x1x8xf32>
    %239 = vector.broadcast %238 : vector<1x1x8xf32> to vector<6x6x8xf32>
    %240 = arith.mulf %235, %239 : vector<6x6x8xf32>
    %241 = arith.addf %234, %240 : vector<6x6x8xf32>
    %242 = vector.extract_strided_slice %88 {offsets = [9, 3, 0], sizes = [6, 6, 8], strides = [1, 1, 1]} : vector<24x24x8xf32> to vector<6x6x8xf32>
    %243 = vector.extract_strided_slice %83 {offsets = [22, 0], sizes = [1, 8], strides = [1, 1]} : vector<49x8xf32> to vector<1x8xf32>
    %244 = vector.shape_cast %243 : vector<1x8xf32> to vector<8xf32>
    %245 = vector.shape_cast %244 : vector<8xf32> to vector<1x1x8xf32>
    %246 = vector.broadcast %245 : vector<1x1x8xf32> to vector<6x6x8xf32>
    %247 = arith.mulf %242, %246 : vector<6x6x8xf32>
    %248 = arith.addf %241, %247 : vector<6x6x8xf32>
    %249 = vector.extract_strided_slice %88 {offsets = [9, 6, 0], sizes = [6, 6, 8], strides = [1, 1, 1]} : vector<24x24x8xf32> to vector<6x6x8xf32>
    %250 = vector.extract_strided_slice %83 {offsets = [23, 0], sizes = [1, 8], strides = [1, 1]} : vector<49x8xf32> to vector<1x8xf32>
    %251 = vector.shape_cast %250 : vector<1x8xf32> to vector<8xf32>
    %252 = vector.shape_cast %251 : vector<8xf32> to vector<1x1x8xf32>
    %253 = vector.broadcast %252 : vector<1x1x8xf32> to vector<6x6x8xf32>
    %254 = arith.mulf %249, %253 : vector<6x6x8xf32>
    %255 = arith.addf %248, %254 : vector<6x6x8xf32>
    %256 = vector.extract_strided_slice %88 {offsets = [9, 9, 0], sizes = [6, 6, 8], strides = [1, 1, 1]} : vector<24x24x8xf32> to vector<6x6x8xf32>
    %257 = vector.extract_strided_slice %83 {offsets = [24, 0], sizes = [1, 8], strides = [1, 1]} : vector<49x8xf32> to vector<1x8xf32>
    %258 = vector.shape_cast %257 : vector<1x8xf32> to vector<8xf32>
    %259 = vector.shape_cast %258 : vector<8xf32> to vector<1x1x8xf32>
    %260 = vector.broadcast %259 : vector<1x1x8xf32> to vector<6x6x8xf32>
    %261 = arith.mulf %256, %260 : vector<6x6x8xf32>
    %262 = arith.addf %255, %261 : vector<6x6x8xf32>
    %263 = vector.extract_strided_slice %88 {offsets = [9, 12, 0], sizes = [6, 6, 8], strides = [1, 1, 1]} : vector<24x24x8xf32> to vector<6x6x8xf32>
    %264 = vector.extract_strided_slice %83 {offsets = [25, 0], sizes = [1, 8], strides = [1, 1]} : vector<49x8xf32> to vector<1x8xf32>
    %265 = vector.shape_cast %264 : vector<1x8xf32> to vector<8xf32>
    %266 = vector.shape_cast %265 : vector<8xf32> to vector<1x1x8xf32>
    %267 = vector.broadcast %266 : vector<1x1x8xf32> to vector<6x6x8xf32>
    %268 = arith.mulf %263, %267 : vector<6x6x8xf32>
    %269 = arith.addf %262, %268 : vector<6x6x8xf32>
    %270 = vector.extract_strided_slice %88 {offsets = [9, 15, 0], sizes = [6, 6, 8], strides = [1, 1, 1]} : vector<24x24x8xf32> to vector<6x6x8xf32>
    %271 = vector.extract_strided_slice %83 {offsets = [26, 0], sizes = [1, 8], strides = [1, 1]} : vector<49x8xf32> to vector<1x8xf32>
    %272 = vector.shape_cast %271 : vector<1x8xf32> to vector<8xf32>
    %273 = vector.shape_cast %272 : vector<8xf32> to vector<1x1x8xf32>
    %274 = vector.broadcast %273 : vector<1x1x8xf32> to vector<6x6x8xf32>
    %275 = arith.mulf %270, %274 : vector<6x6x8xf32>
    %276 = arith.addf %269, %275 : vector<6x6x8xf32>
    %277 = vector.extract_strided_slice %88 {offsets = [9, 18, 0], sizes = [6, 6, 8], strides = [1, 1, 1]} : vector<24x24x8xf32> to vector<6x6x8xf32>
    %278 = vector.extract_strided_slice %83 {offsets = [27, 0], sizes = [1, 8], strides = [1, 1]} : vector<49x8xf32> to vector<1x8xf32>
    %279 = vector.shape_cast %278 : vector<1x8xf32> to vector<8xf32>
    %280 = vector.shape_cast %279 : vector<8xf32> to vector<1x1x8xf32>
    %281 = vector.broadcast %280 : vector<1x1x8xf32> to vector<6x6x8xf32>
    %282 = arith.mulf %277, %281 : vector<6x6x8xf32>
    %283 = arith.addf %276, %282 : vector<6x6x8xf32>
    %284 = vector.extract_strided_slice %88 {offsets = [12, 0, 0], sizes = [6, 6, 8], strides = [1, 1, 1]} : vector<24x24x8xf32> to vector<6x6x8xf32>
    %285 = vector.extract_strided_slice %83 {offsets = [28, 0], sizes = [1, 8], strides = [1, 1]} : vector<49x8xf32> to vector<1x8xf32>
    %286 = vector.shape_cast %285 : vector<1x8xf32> to vector<8xf32>
    %287 = vector.shape_cast %286 : vector<8xf32> to vector<1x1x8xf32>
    %288 = vector.broadcast %287 : vector<1x1x8xf32> to vector<6x6x8xf32>
    %289 = arith.mulf %284, %288 : vector<6x6x8xf32>
    %290 = arith.addf %283, %289 : vector<6x6x8xf32>
    %291 = vector.extract_strided_slice %88 {offsets = [12, 3, 0], sizes = [6, 6, 8], strides = [1, 1, 1]} : vector<24x24x8xf32> to vector<6x6x8xf32>
    %292 = vector.extract_strided_slice %83 {offsets = [29, 0], sizes = [1, 8], strides = [1, 1]} : vector<49x8xf32> to vector<1x8xf32>
    %293 = vector.shape_cast %292 : vector<1x8xf32> to vector<8xf32>
    %294 = vector.shape_cast %293 : vector<8xf32> to vector<1x1x8xf32>
    %295 = vector.broadcast %294 : vector<1x1x8xf32> to vector<6x6x8xf32>
    %296 = arith.mulf %291, %295 : vector<6x6x8xf32>
    %297 = arith.addf %290, %296 : vector<6x6x8xf32>
    %298 = vector.extract_strided_slice %88 {offsets = [12, 6, 0], sizes = [6, 6, 8], strides = [1, 1, 1]} : vector<24x24x8xf32> to vector<6x6x8xf32>
    %299 = vector.extract_strided_slice %83 {offsets = [30, 0], sizes = [1, 8], strides = [1, 1]} : vector<49x8xf32> to vector<1x8xf32>
    %300 = vector.shape_cast %299 : vector<1x8xf32> to vector<8xf32>
    %301 = vector.shape_cast %300 : vector<8xf32> to vector<1x1x8xf32>
    %302 = vector.broadcast %301 : vector<1x1x8xf32> to vector<6x6x8xf32>
    %303 = arith.mulf %298, %302 : vector<6x6x8xf32>
    %304 = arith.addf %297, %303 : vector<6x6x8xf32>
    %305 = vector.extract_strided_slice %88 {offsets = [12, 9, 0], sizes = [6, 6, 8], strides = [1, 1, 1]} : vector<24x24x8xf32> to vector<6x6x8xf32>
    %306 = vector.extract_strided_slice %83 {offsets = [31, 0], sizes = [1, 8], strides = [1, 1]} : vector<49x8xf32> to vector<1x8xf32>
    %307 = vector.shape_cast %306 : vector<1x8xf32> to vector<8xf32>
    %308 = vector.shape_cast %307 : vector<8xf32> to vector<1x1x8xf32>
    %309 = vector.broadcast %308 : vector<1x1x8xf32> to vector<6x6x8xf32>
    %310 = arith.mulf %305, %309 : vector<6x6x8xf32>
    %311 = arith.addf %304, %310 : vector<6x6x8xf32>
    %312 = vector.extract_strided_slice %88 {offsets = [12, 12, 0], sizes = [6, 6, 8], strides = [1, 1, 1]} : vector<24x24x8xf32> to vector<6x6x8xf32>
    %313 = vector.extract_strided_slice %83 {offsets = [32, 0], sizes = [1, 8], strides = [1, 1]} : vector<49x8xf32> to vector<1x8xf32>
    %314 = vector.shape_cast %313 : vector<1x8xf32> to vector<8xf32>
    %315 = vector.shape_cast %314 : vector<8xf32> to vector<1x1x8xf32>
    %316 = vector.broadcast %315 : vector<1x1x8xf32> to vector<6x6x8xf32>
    %317 = arith.mulf %312, %316 : vector<6x6x8xf32>
    %318 = arith.addf %311, %317 : vector<6x6x8xf32>
    %319 = vector.extract_strided_slice %88 {offsets = [12, 15, 0], sizes = [6, 6, 8], strides = [1, 1, 1]} : vector<24x24x8xf32> to vector<6x6x8xf32>
    %320 = vector.extract_strided_slice %83 {offsets = [33, 0], sizes = [1, 8], strides = [1, 1]} : vector<49x8xf32> to vector<1x8xf32>
    %321 = vector.shape_cast %320 : vector<1x8xf32> to vector<8xf32>
    %322 = vector.shape_cast %321 : vector<8xf32> to vector<1x1x8xf32>
    %323 = vector.broadcast %322 : vector<1x1x8xf32> to vector<6x6x8xf32>
    %324 = arith.mulf %319, %323 : vector<6x6x8xf32>
    %325 = arith.addf %318, %324 : vector<6x6x8xf32>
    %326 = vector.extract_strided_slice %88 {offsets = [12, 18, 0], sizes = [6, 6, 8], strides = [1, 1, 1]} : vector<24x24x8xf32> to vector<6x6x8xf32>
    %327 = vector.extract_strided_slice %83 {offsets = [34, 0], sizes = [1, 8], strides = [1, 1]} : vector<49x8xf32> to vector<1x8xf32>
    %328 = vector.shape_cast %327 : vector<1x8xf32> to vector<8xf32>
    %329 = vector.shape_cast %328 : vector<8xf32> to vector<1x1x8xf32>
    %330 = vector.broadcast %329 : vector<1x1x8xf32> to vector<6x6x8xf32>
    %331 = arith.mulf %326, %330 : vector<6x6x8xf32>
    %332 = arith.addf %325, %331 : vector<6x6x8xf32>
    %333 = vector.extract_strided_slice %88 {offsets = [15, 0, 0], sizes = [6, 6, 8], strides = [1, 1, 1]} : vector<24x24x8xf32> to vector<6x6x8xf32>
    %334 = vector.extract_strided_slice %83 {offsets = [35, 0], sizes = [1, 8], strides = [1, 1]} : vector<49x8xf32> to vector<1x8xf32>
    %335 = vector.shape_cast %334 : vector<1x8xf32> to vector<8xf32>
    %336 = vector.shape_cast %335 : vector<8xf32> to vector<1x1x8xf32>
    %337 = vector.broadcast %336 : vector<1x1x8xf32> to vector<6x6x8xf32>
    %338 = arith.mulf %333, %337 : vector<6x6x8xf32>
    %339 = arith.addf %332, %338 : vector<6x6x8xf32>
    %340 = vector.extract_strided_slice %88 {offsets = [15, 3, 0], sizes = [6, 6, 8], strides = [1, 1, 1]} : vector<24x24x8xf32> to vector<6x6x8xf32>
    %341 = vector.extract_strided_slice %83 {offsets = [36, 0], sizes = [1, 8], strides = [1, 1]} : vector<49x8xf32> to vector<1x8xf32>
    %342 = vector.shape_cast %341 : vector<1x8xf32> to vector<8xf32>
    %343 = vector.shape_cast %342 : vector<8xf32> to vector<1x1x8xf32>
    %344 = vector.broadcast %343 : vector<1x1x8xf32> to vector<6x6x8xf32>
    %345 = arith.mulf %340, %344 : vector<6x6x8xf32>
    %346 = arith.addf %339, %345 : vector<6x6x8xf32>
    %347 = vector.extract_strided_slice %88 {offsets = [15, 6, 0], sizes = [6, 6, 8], strides = [1, 1, 1]} : vector<24x24x8xf32> to vector<6x6x8xf32>
    %348 = vector.extract_strided_slice %83 {offsets = [37, 0], sizes = [1, 8], strides = [1, 1]} : vector<49x8xf32> to vector<1x8xf32>
    %349 = vector.shape_cast %348 : vector<1x8xf32> to vector<8xf32>
    %350 = vector.shape_cast %349 : vector<8xf32> to vector<1x1x8xf32>
    %351 = vector.broadcast %350 : vector<1x1x8xf32> to vector<6x6x8xf32>
    %352 = arith.mulf %347, %351 : vector<6x6x8xf32>
    %353 = arith.addf %346, %352 : vector<6x6x8xf32>
    %354 = vector.extract_strided_slice %88 {offsets = [15, 9, 0], sizes = [6, 6, 8], strides = [1, 1, 1]} : vector<24x24x8xf32> to vector<6x6x8xf32>
    %355 = vector.extract_strided_slice %83 {offsets = [38, 0], sizes = [1, 8], strides = [1, 1]} : vector<49x8xf32> to vector<1x8xf32>
    %356 = vector.shape_cast %355 : vector<1x8xf32> to vector<8xf32>
    %357 = vector.shape_cast %356 : vector<8xf32> to vector<1x1x8xf32>
    %358 = vector.broadcast %357 : vector<1x1x8xf32> to vector<6x6x8xf32>
    %359 = arith.mulf %354, %358 : vector<6x6x8xf32>
    %360 = arith.addf %353, %359 : vector<6x6x8xf32>
    %361 = vector.extract_strided_slice %88 {offsets = [15, 12, 0], sizes = [6, 6, 8], strides = [1, 1, 1]} : vector<24x24x8xf32> to vector<6x6x8xf32>
    %362 = vector.extract_strided_slice %83 {offsets = [39, 0], sizes = [1, 8], strides = [1, 1]} : vector<49x8xf32> to vector<1x8xf32>
    %363 = vector.shape_cast %362 : vector<1x8xf32> to vector<8xf32>
    %364 = vector.shape_cast %363 : vector<8xf32> to vector<1x1x8xf32>
    %365 = vector.broadcast %364 : vector<1x1x8xf32> to vector<6x6x8xf32>
    %366 = arith.mulf %361, %365 : vector<6x6x8xf32>
    %367 = arith.addf %360, %366 : vector<6x6x8xf32>
    %368 = vector.extract_strided_slice %88 {offsets = [15, 15, 0], sizes = [6, 6, 8], strides = [1, 1, 1]} : vector<24x24x8xf32> to vector<6x6x8xf32>
    %369 = vector.extract_strided_slice %83 {offsets = [40, 0], sizes = [1, 8], strides = [1, 1]} : vector<49x8xf32> to vector<1x8xf32>
    %370 = vector.shape_cast %369 : vector<1x8xf32> to vector<8xf32>
    %371 = vector.shape_cast %370 : vector<8xf32> to vector<1x1x8xf32>
    %372 = vector.broadcast %371 : vector<1x1x8xf32> to vector<6x6x8xf32>
    %373 = arith.mulf %368, %372 : vector<6x6x8xf32>
    %374 = arith.addf %367, %373 : vector<6x6x8xf32>
    %375 = vector.extract_strided_slice %88 {offsets = [15, 18, 0], sizes = [6, 6, 8], strides = [1, 1, 1]} : vector<24x24x8xf32> to vector<6x6x8xf32>
    %376 = vector.extract_strided_slice %83 {offsets = [41, 0], sizes = [1, 8], strides = [1, 1]} : vector<49x8xf32> to vector<1x8xf32>
    %377 = vector.shape_cast %376 : vector<1x8xf32> to vector<8xf32>
    %378 = vector.shape_cast %377 : vector<8xf32> to vector<1x1x8xf32>
    %379 = vector.broadcast %378 : vector<1x1x8xf32> to vector<6x6x8xf32>
    %380 = arith.mulf %375, %379 : vector<6x6x8xf32>
    %381 = arith.addf %374, %380 : vector<6x6x8xf32>
    %382 = vector.extract_strided_slice %88 {offsets = [18, 0, 0], sizes = [6, 6, 8], strides = [1, 1, 1]} : vector<24x24x8xf32> to vector<6x6x8xf32>
    %383 = vector.extract_strided_slice %83 {offsets = [42, 0], sizes = [1, 8], strides = [1, 1]} : vector<49x8xf32> to vector<1x8xf32>
    %384 = vector.shape_cast %383 : vector<1x8xf32> to vector<8xf32>
    %385 = vector.shape_cast %384 : vector<8xf32> to vector<1x1x8xf32>
    %386 = vector.broadcast %385 : vector<1x1x8xf32> to vector<6x6x8xf32>
    %387 = arith.mulf %382, %386 : vector<6x6x8xf32>
    %388 = arith.addf %381, %387 : vector<6x6x8xf32>
    %389 = vector.extract_strided_slice %88 {offsets = [18, 3, 0], sizes = [6, 6, 8], strides = [1, 1, 1]} : vector<24x24x8xf32> to vector<6x6x8xf32>
    %390 = vector.extract_strided_slice %83 {offsets = [43, 0], sizes = [1, 8], strides = [1, 1]} : vector<49x8xf32> to vector<1x8xf32>
    %391 = vector.shape_cast %390 : vector<1x8xf32> to vector<8xf32>
    %392 = vector.shape_cast %391 : vector<8xf32> to vector<1x1x8xf32>
    %393 = vector.broadcast %392 : vector<1x1x8xf32> to vector<6x6x8xf32>
    %394 = arith.mulf %389, %393 : vector<6x6x8xf32>
    %395 = arith.addf %388, %394 : vector<6x6x8xf32>
    %396 = vector.extract_strided_slice %88 {offsets = [18, 6, 0], sizes = [6, 6, 8], strides = [1, 1, 1]} : vector<24x24x8xf32> to vector<6x6x8xf32>
    %397 = vector.extract_strided_slice %83 {offsets = [44, 0], sizes = [1, 8], strides = [1, 1]} : vector<49x8xf32> to vector<1x8xf32>
    %398 = vector.shape_cast %397 : vector<1x8xf32> to vector<8xf32>
    %399 = vector.shape_cast %398 : vector<8xf32> to vector<1x1x8xf32>
    %400 = vector.broadcast %399 : vector<1x1x8xf32> to vector<6x6x8xf32>
    %401 = arith.mulf %396, %400 : vector<6x6x8xf32>
    %402 = arith.addf %395, %401 : vector<6x6x8xf32>
    %403 = vector.extract_strided_slice %88 {offsets = [18, 9, 0], sizes = [6, 6, 8], strides = [1, 1, 1]} : vector<24x24x8xf32> to vector<6x6x8xf32>
    %404 = vector.extract_strided_slice %83 {offsets = [45, 0], sizes = [1, 8], strides = [1, 1]} : vector<49x8xf32> to vector<1x8xf32>
    %405 = vector.shape_cast %404 : vector<1x8xf32> to vector<8xf32>
    %406 = vector.shape_cast %405 : vector<8xf32> to vector<1x1x8xf32>
    %407 = vector.broadcast %406 : vector<1x1x8xf32> to vector<6x6x8xf32>
    %408 = arith.mulf %403, %407 : vector<6x6x8xf32>
    %409 = arith.addf %402, %408 : vector<6x6x8xf32>
    %410 = vector.extract_strided_slice %88 {offsets = [18, 12, 0], sizes = [6, 6, 8], strides = [1, 1, 1]} : vector<24x24x8xf32> to vector<6x6x8xf32>
    %411 = vector.extract_strided_slice %83 {offsets = [46, 0], sizes = [1, 8], strides = [1, 1]} : vector<49x8xf32> to vector<1x8xf32>
    %412 = vector.shape_cast %411 : vector<1x8xf32> to vector<8xf32>
    %413 = vector.shape_cast %412 : vector<8xf32> to vector<1x1x8xf32>
    %414 = vector.broadcast %413 : vector<1x1x8xf32> to vector<6x6x8xf32>
    %415 = arith.mulf %410, %414 : vector<6x6x8xf32>
    %416 = arith.addf %409, %415 : vector<6x6x8xf32>
    %417 = vector.extract_strided_slice %88 {offsets = [18, 15, 0], sizes = [6, 6, 8], strides = [1, 1, 1]} : vector<24x24x8xf32> to vector<6x6x8xf32>
    %418 = vector.extract_strided_slice %83 {offsets = [47, 0], sizes = [1, 8], strides = [1, 1]} : vector<49x8xf32> to vector<1x8xf32>
    %419 = vector.shape_cast %418 : vector<1x8xf32> to vector<8xf32>
    %420 = vector.shape_cast %419 : vector<8xf32> to vector<1x1x8xf32>
    %421 = vector.broadcast %420 : vector<1x1x8xf32> to vector<6x6x8xf32>
    %422 = arith.mulf %417, %421 : vector<6x6x8xf32>
    %423 = arith.addf %416, %422 : vector<6x6x8xf32>
    %424 = vector.extract_strided_slice %88 {offsets = [18, 18, 0], sizes = [6, 6, 8], strides = [1, 1, 1]} : vector<24x24x8xf32> to vector<6x6x8xf32>
    %425 = vector.extract_strided_slice %83 {offsets = [48, 0], sizes = [1, 8], strides = [1, 1]} : vector<49x8xf32> to vector<1x8xf32>
    %426 = vector.shape_cast %425 : vector<1x8xf32> to vector<8xf32>
    %427 = vector.shape_cast %426 : vector<8xf32> to vector<1x1x8xf32>
    %428 = vector.broadcast %427 : vector<1x1x8xf32> to vector<6x6x8xf32>
    %429 = arith.mulf %424, %428 : vector<6x6x8xf32>
    %430 = arith.addf %423, %429 : vector<6x6x8xf32>
    %431 = vector.shape_cast %84 : vector<1x8xf32> to vector<1x1x8xf32>
    %432 = vector.broadcast %431 : vector<1x1x8xf32> to vector<6x6x8xf32>
    %433 = arith.addf %430, %432 : vector<6x6x8xf32>
    %c0_27 = arith.constant 0 : index
    %c0_28 = arith.constant 0 : index
    %434 = vector.load %arg6[%c0_27, %c0_28] : memref<25x8xf32, #tpu.memory_space<vmem>>, vector<25x8xf32>
    %c0_29 = arith.constant 0 : index
    %c0_30 = arith.constant 0 : index
    %435 = vector.load %arg7[%c0_29, %c0_30] : memref<1x8xf32, #tpu.memory_space<vmem>>, vector<1x8xf32>
    %cst_31 = arith.constant 0.000000e+00 : f32
    %436 = vector.broadcast %cst_31 : f32 to vector<6x2x8xf32>
    %437 = tpu.concatenate %436, %433, %436 in 1 : vector<6x2x8xf32>, vector<6x6x8xf32>, vector<6x2x8xf32> -> vector<6x10x8xf32>
    %cst_32 = arith.constant 0.000000e+00 : f32
    %438 = vector.broadcast %cst_32 : f32 to vector<2x10x8xf32>
    %439 = tpu.concatenate %438, %437, %438 in 0 : vector<2x10x8xf32>, vector<6x10x8xf32>, vector<2x10x8xf32> -> vector<10x10x8xf32>
    %440 = vector.extract_strided_slice %439 {offsets = [0, 0, 0], sizes = [6, 6, 8], strides = [1, 1, 1]} : vector<10x10x8xf32> to vector<6x6x8xf32>
    %441 = vector.extract_strided_slice %434 {offsets = [0, 0], sizes = [1, 8], strides = [1, 1]} : vector<25x8xf32> to vector<1x8xf32>
    %442 = vector.shape_cast %441 : vector<1x8xf32> to vector<8xf32>
    %443 = vector.shape_cast %442 : vector<8xf32> to vector<1x1x8xf32>
    %444 = vector.broadcast %443 : vector<1x1x8xf32> to vector<6x6x8xf32>
    %445 = arith.mulf %440, %444 : vector<6x6x8xf32>
    %446 = vector.extract_strided_slice %439 {offsets = [0, 1, 0], sizes = [6, 6, 8], strides = [1, 1, 1]} : vector<10x10x8xf32> to vector<6x6x8xf32>
    %447 = vector.extract_strided_slice %434 {offsets = [1, 0], sizes = [1, 8], strides = [1, 1]} : vector<25x8xf32> to vector<1x8xf32>
    %448 = vector.shape_cast %447 : vector<1x8xf32> to vector<8xf32>
    %449 = vector.shape_cast %448 : vector<8xf32> to vector<1x1x8xf32>
    %450 = vector.broadcast %449 : vector<1x1x8xf32> to vector<6x6x8xf32>
    %451 = arith.mulf %446, %450 : vector<6x6x8xf32>
    %452 = arith.addf %445, %451 : vector<6x6x8xf32>
    %453 = vector.extract_strided_slice %439 {offsets = [0, 2, 0], sizes = [6, 6, 8], strides = [1, 1, 1]} : vector<10x10x8xf32> to vector<6x6x8xf32>
    %454 = vector.extract_strided_slice %434 {offsets = [2, 0], sizes = [1, 8], strides = [1, 1]} : vector<25x8xf32> to vector<1x8xf32>
    %455 = vector.shape_cast %454 : vector<1x8xf32> to vector<8xf32>
    %456 = vector.shape_cast %455 : vector<8xf32> to vector<1x1x8xf32>
    %457 = vector.broadcast %456 : vector<1x1x8xf32> to vector<6x6x8xf32>
    %458 = arith.mulf %453, %457 : vector<6x6x8xf32>
    %459 = arith.addf %452, %458 : vector<6x6x8xf32>
    %460 = vector.extract_strided_slice %439 {offsets = [0, 3, 0], sizes = [6, 6, 8], strides = [1, 1, 1]} : vector<10x10x8xf32> to vector<6x6x8xf32>
    %461 = vector.extract_strided_slice %434 {offsets = [3, 0], sizes = [1, 8], strides = [1, 1]} : vector<25x8xf32> to vector<1x8xf32>
    %462 = vector.shape_cast %461 : vector<1x8xf32> to vector<8xf32>
    %463 = vector.shape_cast %462 : vector<8xf32> to vector<1x1x8xf32>
    %464 = vector.broadcast %463 : vector<1x1x8xf32> to vector<6x6x8xf32>
    %465 = arith.mulf %460, %464 : vector<6x6x8xf32>
    %466 = arith.addf %459, %465 : vector<6x6x8xf32>
    %467 = vector.extract_strided_slice %439 {offsets = [0, 4, 0], sizes = [6, 6, 8], strides = [1, 1, 1]} : vector<10x10x8xf32> to vector<6x6x8xf32>
    %468 = vector.extract_strided_slice %434 {offsets = [4, 0], sizes = [1, 8], strides = [1, 1]} : vector<25x8xf32> to vector<1x8xf32>
    %469 = vector.shape_cast %468 : vector<1x8xf32> to vector<8xf32>
    %470 = vector.shape_cast %469 : vector<8xf32> to vector<1x1x8xf32>
    %471 = vector.broadcast %470 : vector<1x1x8xf32> to vector<6x6x8xf32>
    %472 = arith.mulf %467, %471 : vector<6x6x8xf32>
    %473 = arith.addf %466, %472 : vector<6x6x8xf32>
    %474 = vector.extract_strided_slice %439 {offsets = [1, 0, 0], sizes = [6, 6, 8], strides = [1, 1, 1]} : vector<10x10x8xf32> to vector<6x6x8xf32>
    %475 = vector.extract_strided_slice %434 {offsets = [5, 0], sizes = [1, 8], strides = [1, 1]} : vector<25x8xf32> to vector<1x8xf32>
    %476 = vector.shape_cast %475 : vector<1x8xf32> to vector<8xf32>
    %477 = vector.shape_cast %476 : vector<8xf32> to vector<1x1x8xf32>
    %478 = vector.broadcast %477 : vector<1x1x8xf32> to vector<6x6x8xf32>
    %479 = arith.mulf %474, %478 : vector<6x6x8xf32>
    %480 = arith.addf %473, %479 : vector<6x6x8xf32>
    %481 = vector.extract_strided_slice %439 {offsets = [1, 1, 0], sizes = [6, 6, 8], strides = [1, 1, 1]} : vector<10x10x8xf32> to vector<6x6x8xf32>
    %482 = vector.extract_strided_slice %434 {offsets = [6, 0], sizes = [1, 8], strides = [1, 1]} : vector<25x8xf32> to vector<1x8xf32>
    %483 = vector.shape_cast %482 : vector<1x8xf32> to vector<8xf32>
    %484 = vector.shape_cast %483 : vector<8xf32> to vector<1x1x8xf32>
    %485 = vector.broadcast %484 : vector<1x1x8xf32> to vector<6x6x8xf32>
    %486 = arith.mulf %481, %485 : vector<6x6x8xf32>
    %487 = arith.addf %480, %486 : vector<6x6x8xf32>
    %488 = vector.extract_strided_slice %439 {offsets = [1, 2, 0], sizes = [6, 6, 8], strides = [1, 1, 1]} : vector<10x10x8xf32> to vector<6x6x8xf32>
    %489 = vector.extract_strided_slice %434 {offsets = [7, 0], sizes = [1, 8], strides = [1, 1]} : vector<25x8xf32> to vector<1x8xf32>
    %490 = vector.shape_cast %489 : vector<1x8xf32> to vector<8xf32>
    %491 = vector.shape_cast %490 : vector<8xf32> to vector<1x1x8xf32>
    %492 = vector.broadcast %491 : vector<1x1x8xf32> to vector<6x6x8xf32>
    %493 = arith.mulf %488, %492 : vector<6x6x8xf32>
    %494 = arith.addf %487, %493 : vector<6x6x8xf32>
    %495 = vector.extract_strided_slice %439 {offsets = [1, 3, 0], sizes = [6, 6, 8], strides = [1, 1, 1]} : vector<10x10x8xf32> to vector<6x6x8xf32>
    %496 = vector.extract_strided_slice %434 {offsets = [8, 0], sizes = [1, 8], strides = [1, 1]} : vector<25x8xf32> to vector<1x8xf32>
    %497 = vector.shape_cast %496 : vector<1x8xf32> to vector<8xf32>
    %498 = vector.shape_cast %497 : vector<8xf32> to vector<1x1x8xf32>
    %499 = vector.broadcast %498 : vector<1x1x8xf32> to vector<6x6x8xf32>
    %500 = arith.mulf %495, %499 : vector<6x6x8xf32>
    %501 = arith.addf %494, %500 : vector<6x6x8xf32>
    %502 = vector.extract_strided_slice %439 {offsets = [1, 4, 0], sizes = [6, 6, 8], strides = [1, 1, 1]} : vector<10x10x8xf32> to vector<6x6x8xf32>
    %503 = vector.extract_strided_slice %434 {offsets = [9, 0], sizes = [1, 8], strides = [1, 1]} : vector<25x8xf32> to vector<1x8xf32>
    %504 = vector.shape_cast %503 : vector<1x8xf32> to vector<8xf32>
    %505 = vector.shape_cast %504 : vector<8xf32> to vector<1x1x8xf32>
    %506 = vector.broadcast %505 : vector<1x1x8xf32> to vector<6x6x8xf32>
    %507 = arith.mulf %502, %506 : vector<6x6x8xf32>
    %508 = arith.addf %501, %507 : vector<6x6x8xf32>
    %509 = vector.extract_strided_slice %439 {offsets = [2, 0, 0], sizes = [6, 6, 8], strides = [1, 1, 1]} : vector<10x10x8xf32> to vector<6x6x8xf32>
    %510 = vector.extract_strided_slice %434 {offsets = [10, 0], sizes = [1, 8], strides = [1, 1]} : vector<25x8xf32> to vector<1x8xf32>
    %511 = vector.shape_cast %510 : vector<1x8xf32> to vector<8xf32>
    %512 = vector.shape_cast %511 : vector<8xf32> to vector<1x1x8xf32>
    %513 = vector.broadcast %512 : vector<1x1x8xf32> to vector<6x6x8xf32>
    %514 = arith.mulf %509, %513 : vector<6x6x8xf32>
    %515 = arith.addf %508, %514 : vector<6x6x8xf32>
    %516 = vector.extract_strided_slice %439 {offsets = [2, 1, 0], sizes = [6, 6, 8], strides = [1, 1, 1]} : vector<10x10x8xf32> to vector<6x6x8xf32>
    %517 = vector.extract_strided_slice %434 {offsets = [11, 0], sizes = [1, 8], strides = [1, 1]} : vector<25x8xf32> to vector<1x8xf32>
    %518 = vector.shape_cast %517 : vector<1x8xf32> to vector<8xf32>
    %519 = vector.shape_cast %518 : vector<8xf32> to vector<1x1x8xf32>
    %520 = vector.broadcast %519 : vector<1x1x8xf32> to vector<6x6x8xf32>
    %521 = arith.mulf %516, %520 : vector<6x6x8xf32>
    %522 = arith.addf %515, %521 : vector<6x6x8xf32>
    %523 = vector.extract_strided_slice %439 {offsets = [2, 2, 0], sizes = [6, 6, 8], strides = [1, 1, 1]} : vector<10x10x8xf32> to vector<6x6x8xf32>
    %524 = vector.extract_strided_slice %434 {offsets = [12, 0], sizes = [1, 8], strides = [1, 1]} : vector<25x8xf32> to vector<1x8xf32>
    %525 = vector.shape_cast %524 : vector<1x8xf32> to vector<8xf32>
    %526 = vector.shape_cast %525 : vector<8xf32> to vector<1x1x8xf32>
    %527 = vector.broadcast %526 : vector<1x1x8xf32> to vector<6x6x8xf32>
    %528 = arith.mulf %523, %527 : vector<6x6x8xf32>
    %529 = arith.addf %522, %528 : vector<6x6x8xf32>
    %530 = vector.extract_strided_slice %439 {offsets = [2, 3, 0], sizes = [6, 6, 8], strides = [1, 1, 1]} : vector<10x10x8xf32> to vector<6x6x8xf32>
    %531 = vector.extract_strided_slice %434 {offsets = [13, 0], sizes = [1, 8], strides = [1, 1]} : vector<25x8xf32> to vector<1x8xf32>
    %532 = vector.shape_cast %531 : vector<1x8xf32> to vector<8xf32>
    %533 = vector.shape_cast %532 : vector<8xf32> to vector<1x1x8xf32>
    %534 = vector.broadcast %533 : vector<1x1x8xf32> to vector<6x6x8xf32>
    %535 = arith.mulf %530, %534 : vector<6x6x8xf32>
    %536 = arith.addf %529, %535 : vector<6x6x8xf32>
    %537 = vector.extract_strided_slice %439 {offsets = [2, 4, 0], sizes = [6, 6, 8], strides = [1, 1, 1]} : vector<10x10x8xf32> to vector<6x6x8xf32>
    %538 = vector.extract_strided_slice %434 {offsets = [14, 0], sizes = [1, 8], strides = [1, 1]} : vector<25x8xf32> to vector<1x8xf32>
    %539 = vector.shape_cast %538 : vector<1x8xf32> to vector<8xf32>
    %540 = vector.shape_cast %539 : vector<8xf32> to vector<1x1x8xf32>
    %541 = vector.broadcast %540 : vector<1x1x8xf32> to vector<6x6x8xf32>
    %542 = arith.mulf %537, %541 : vector<6x6x8xf32>
    %543 = arith.addf %536, %542 : vector<6x6x8xf32>
    %544 = vector.extract_strided_slice %439 {offsets = [3, 0, 0], sizes = [6, 6, 8], strides = [1, 1, 1]} : vector<10x10x8xf32> to vector<6x6x8xf32>
    %545 = vector.extract_strided_slice %434 {offsets = [15, 0], sizes = [1, 8], strides = [1, 1]} : vector<25x8xf32> to vector<1x8xf32>
    %546 = vector.shape_cast %545 : vector<1x8xf32> to vector<8xf32>
    %547 = vector.shape_cast %546 : vector<8xf32> to vector<1x1x8xf32>
    %548 = vector.broadcast %547 : vector<1x1x8xf32> to vector<6x6x8xf32>
    %549 = arith.mulf %544, %548 : vector<6x6x8xf32>
    %550 = arith.addf %543, %549 : vector<6x6x8xf32>
    %551 = vector.extract_strided_slice %439 {offsets = [3, 1, 0], sizes = [6, 6, 8], strides = [1, 1, 1]} : vector<10x10x8xf32> to vector<6x6x8xf32>
    %552 = vector.extract_strided_slice %434 {offsets = [16, 0], sizes = [1, 8], strides = [1, 1]} : vector<25x8xf32> to vector<1x8xf32>
    %553 = vector.shape_cast %552 : vector<1x8xf32> to vector<8xf32>
    %554 = vector.shape_cast %553 : vector<8xf32> to vector<1x1x8xf32>
    %555 = vector.broadcast %554 : vector<1x1x8xf32> to vector<6x6x8xf32>
    %556 = arith.mulf %551, %555 : vector<6x6x8xf32>
    %557 = arith.addf %550, %556 : vector<6x6x8xf32>
    %558 = vector.extract_strided_slice %439 {offsets = [3, 2, 0], sizes = [6, 6, 8], strides = [1, 1, 1]} : vector<10x10x8xf32> to vector<6x6x8xf32>
    %559 = vector.extract_strided_slice %434 {offsets = [17, 0], sizes = [1, 8], strides = [1, 1]} : vector<25x8xf32> to vector<1x8xf32>
    %560 = vector.shape_cast %559 : vector<1x8xf32> to vector<8xf32>
    %561 = vector.shape_cast %560 : vector<8xf32> to vector<1x1x8xf32>
    %562 = vector.broadcast %561 : vector<1x1x8xf32> to vector<6x6x8xf32>
    %563 = arith.mulf %558, %562 : vector<6x6x8xf32>
    %564 = arith.addf %557, %563 : vector<6x6x8xf32>
    %565 = vector.extract_strided_slice %439 {offsets = [3, 3, 0], sizes = [6, 6, 8], strides = [1, 1, 1]} : vector<10x10x8xf32> to vector<6x6x8xf32>
    %566 = vector.extract_strided_slice %434 {offsets = [18, 0], sizes = [1, 8], strides = [1, 1]} : vector<25x8xf32> to vector<1x8xf32>
    %567 = vector.shape_cast %566 : vector<1x8xf32> to vector<8xf32>
    %568 = vector.shape_cast %567 : vector<8xf32> to vector<1x1x8xf32>
    %569 = vector.broadcast %568 : vector<1x1x8xf32> to vector<6x6x8xf32>
    %570 = arith.mulf %565, %569 : vector<6x6x8xf32>
    %571 = arith.addf %564, %570 : vector<6x6x8xf32>
    %572 = vector.extract_strided_slice %439 {offsets = [3, 4, 0], sizes = [6, 6, 8], strides = [1, 1, 1]} : vector<10x10x8xf32> to vector<6x6x8xf32>
    %573 = vector.extract_strided_slice %434 {offsets = [19, 0], sizes = [1, 8], strides = [1, 1]} : vector<25x8xf32> to vector<1x8xf32>
    %574 = vector.shape_cast %573 : vector<1x8xf32> to vector<8xf32>
    %575 = vector.shape_cast %574 : vector<8xf32> to vector<1x1x8xf32>
    %576 = vector.broadcast %575 : vector<1x1x8xf32> to vector<6x6x8xf32>
    %577 = arith.mulf %572, %576 : vector<6x6x8xf32>
    %578 = arith.addf %571, %577 : vector<6x6x8xf32>
    %579 = vector.extract_strided_slice %439 {offsets = [4, 0, 0], sizes = [6, 6, 8], strides = [1, 1, 1]} : vector<10x10x8xf32> to vector<6x6x8xf32>
    %580 = vector.extract_strided_slice %434 {offsets = [20, 0], sizes = [1, 8], strides = [1, 1]} : vector<25x8xf32> to vector<1x8xf32>
    %581 = vector.shape_cast %580 : vector<1x8xf32> to vector<8xf32>
    %582 = vector.shape_cast %581 : vector<8xf32> to vector<1x1x8xf32>
    %583 = vector.broadcast %582 : vector<1x1x8xf32> to vector<6x6x8xf32>
    %584 = arith.mulf %579, %583 : vector<6x6x8xf32>
    %585 = arith.addf %578, %584 : vector<6x6x8xf32>
    %586 = vector.extract_strided_slice %439 {offsets = [4, 1, 0], sizes = [6, 6, 8], strides = [1, 1, 1]} : vector<10x10x8xf32> to vector<6x6x8xf32>
    %587 = vector.extract_strided_slice %434 {offsets = [21, 0], sizes = [1, 8], strides = [1, 1]} : vector<25x8xf32> to vector<1x8xf32>
    %588 = vector.shape_cast %587 : vector<1x8xf32> to vector<8xf32>
    %589 = vector.shape_cast %588 : vector<8xf32> to vector<1x1x8xf32>
    %590 = vector.broadcast %589 : vector<1x1x8xf32> to vector<6x6x8xf32>
    %591 = arith.mulf %586, %590 : vector<6x6x8xf32>
    %592 = arith.addf %585, %591 : vector<6x6x8xf32>
    %593 = vector.extract_strided_slice %439 {offsets = [4, 2, 0], sizes = [6, 6, 8], strides = [1, 1, 1]} : vector<10x10x8xf32> to vector<6x6x8xf32>
    %594 = vector.extract_strided_slice %434 {offsets = [22, 0], sizes = [1, 8], strides = [1, 1]} : vector<25x8xf32> to vector<1x8xf32>
    %595 = vector.shape_cast %594 : vector<1x8xf32> to vector<8xf32>
    %596 = vector.shape_cast %595 : vector<8xf32> to vector<1x1x8xf32>
    %597 = vector.broadcast %596 : vector<1x1x8xf32> to vector<6x6x8xf32>
    %598 = arith.mulf %593, %597 : vector<6x6x8xf32>
    %599 = arith.addf %592, %598 : vector<6x6x8xf32>
    %600 = vector.extract_strided_slice %439 {offsets = [4, 3, 0], sizes = [6, 6, 8], strides = [1, 1, 1]} : vector<10x10x8xf32> to vector<6x6x8xf32>
    %601 = vector.extract_strided_slice %434 {offsets = [23, 0], sizes = [1, 8], strides = [1, 1]} : vector<25x8xf32> to vector<1x8xf32>
    %602 = vector.shape_cast %601 : vector<1x8xf32> to vector<8xf32>
    %603 = vector.shape_cast %602 : vector<8xf32> to vector<1x1x8xf32>
    %604 = vector.broadcast %603 : vector<1x1x8xf32> to vector<6x6x8xf32>
    %605 = arith.mulf %600, %604 : vector<6x6x8xf32>
    %606 = arith.addf %599, %605 : vector<6x6x8xf32>
    %607 = vector.extract_strided_slice %439 {offsets = [4, 4, 0], sizes = [6, 6, 8], strides = [1, 1, 1]} : vector<10x10x8xf32> to vector<6x6x8xf32>
    %608 = vector.extract_strided_slice %434 {offsets = [24, 0], sizes = [1, 8], strides = [1, 1]} : vector<25x8xf32> to vector<1x8xf32>
    %609 = vector.shape_cast %608 : vector<1x8xf32> to vector<8xf32>
    %610 = vector.shape_cast %609 : vector<8xf32> to vector<1x1x8xf32>
    %611 = vector.broadcast %610 : vector<1x1x8xf32> to vector<6x6x8xf32>
    %612 = arith.mulf %607, %611 : vector<6x6x8xf32>
    %613 = arith.addf %606, %612 : vector<6x6x8xf32>
    %614 = vector.shape_cast %435 : vector<1x8xf32> to vector<1x1x8xf32>
    %615 = vector.broadcast %614 : vector<1x1x8xf32> to vector<6x6x8xf32>
    %616 = arith.addf %613, %615 : vector<6x6x8xf32>
    %c0_33 = arith.constant 0 : index
    %c0_34 = arith.constant 0 : index
    %617 = vector.load %arg8[%c0_33, %c0_34] : memref<8x8xf32, #tpu.memory_space<vmem>>, vector<8x8xf32>
    %618 = vector.shape_cast %616 : vector<6x6x8xf32> to vector<36x8xf32>
    %619 = tpu.transpose %618, [1, 0] : vector<36x8xf32> -> vector<8x36xf32>
    %cst_35 = arith.constant dense<0.000000e+00> : vector<8x36xf32>
    %620 = tpu.matmul %617, %619, %cst_35 {dimension_numbers = #tpu.dot_dimension_numbers<[1], [0], [0], [1], [0, 0, 1, 1], [], []>} : vector<8x8xf32>, vector<8x36xf32>, vector<8x36xf32> -> vector<8x36xf32>
    %c0_36 = arith.constant 0 : index
    %c0_37 = arith.constant 0 : index
    %621 = vector.load %arg9[%c0_36, %c0_37] : memref<8x1xf32, #tpu.memory_space<vmem>>, vector<8x1xf32>
    %622 = vector.broadcast %621 : vector<8x1xf32> to vector<8x36xf32>
    %623 = arith.addf %620, %622 : vector<8x36xf32>
    %c0_38 = arith.constant 0 : index
    %c0_39 = arith.constant 0 : index
    %624 = vector.load %arg12[%c0_38, %c0_39] : memref<36x256xf32, #tpu.memory_space<vmem>>, vector<36x256xf32>
    %cst_40 = arith.constant dense<0.000000e+00> : vector<8x256xf32>
    %625 = tpu.matmul %623, %624, %cst_40 {dimension_numbers = #tpu.dot_dimension_numbers<[1], [0], [0], [1], [0, 0, 1, 1], [], []>} : vector<8x36xf32>, vector<36x256xf32>, vector<8x256xf32> -> vector<8x256xf32>
    %626 = arith.addf %625, %8 : vector<8x256xf32>
    %627 = arith.truncf %626 : vector<8x256xf32> to vector<8x256xbf16>
    %c0_41 = arith.constant 0 : index
    %c0_42 = arith.constant 0 : index
    %628 = vector.load %arg10[%c0_41, %c0_42] : memref<32x8xf32, #tpu.memory_space<vmem>>, vector<32x8xf32>
    %629 = arith.truncf %628 : vector<32x8xf32> to vector<32x8xbf16>
    %cst_43 = arith.constant dense<0.000000e+00> : vector<32x256xf32>
    %630 = tpu.matmul %629, %627, %cst_43 {dimension_numbers = #tpu.dot_dimension_numbers<[1], [0], [0], [1], [0, 0, 1, 1], [], []>} : vector<32x8xbf16>, vector<8x256xbf16>, vector<32x256xf32> -> vector<32x256xf32>
    %c0_44 = arith.constant 0 : index
    %c0_45 = arith.constant 0 : index
    %631 = vector.load %arg11[%c0_44, %c0_45] : memref<32x1xf32, #tpu.memory_space<vmem>>, vector<32x1xf32>
    %632 = vector.broadcast %631 : vector<32x1xf32> to vector<32x256xf32>
    %633 = arith.addf %630, %632 : vector<32x256xf32>
    %634 = arith.negf %633 : vector<32x256xf32>
    %635 = math.exp %634 : vector<32x256xf32>
    %cst_46 = arith.constant 1.000000e+00 : f32
    %636 = vector.broadcast %cst_46 : f32 to vector<32x256xf32>
    %637 = arith.addf %636, %635 : vector<32x256xf32>
    %638 = arith.divf %636, %637 : vector<32x256xf32>
    %639 = arith.mulf %1, %638 : vector<32x256xf32>
    %c0_47 = arith.constant 0 : index
    %c0_48 = arith.constant 0 : index
    %c0_49 = arith.constant 0 : index
    %640 = vector.load %arg13[%c0_47, %c0_48, %c0_49] : memref<1x32x256xf32, #tpu.memory_space<vmem>>, vector<1x32x256xf32>
    %641 = vector.shape_cast %640 : vector<1x32x256xf32> to vector<32x256xf32>
    %642 = vector.shape_cast %639 : vector<32x256xf32> to vector<1x32x256xf32>
    tpu.vector_store %arg13[%c0_47, %c0_48, %c0_49], %642 {strides = array<i32>} : memref<1x32x256xf32, #tpu.memory_space<vmem>>, vector<1x32x256xf32>,
    return
  }
  func.func @transform_0(%arg0: i32) -> (i32, i32, i32) {
    %c0_i32 = arith.constant 0 : i32
    %c0_i32_0 = arith.constant 0 : i32
    %c0_i32_1 = arith.constant 0 : i32
    return %arg0, %c0_i32, %c0_i32_0 : i32, i32, i32
  }
  func.func @transform_1(%arg0: i32) -> (i32, i32) {
    %c0_i32 = arith.constant 0 : i32
    %c0_i32_0 = arith.constant 0 : i32
    %c0_i32_1 = arith.constant 0 : i32
    return %c0_i32, %c0_i32_0 : i32, i32
  }
  func.func @transform_2(%arg0: i32) -> (i32, i32) {
    %c0_i32 = arith.constant 0 : i32
    %c0_i32_0 = arith.constant 0 : i32
    %c0_i32_1 = arith.constant 0 : i32
    return %c0_i32, %c0_i32_0 : i32, i32
  }
  func.func @transform_3(%arg0: i32) -> (i32, i32) {
    %c0_i32 = arith.constant 0 : i32
    %c0_i32_0 = arith.constant 0 : i32
    %c0_i32_1 = arith.constant 0 : i32
    return %c0_i32, %c0_i32_0 : i32, i32
  }
  func.func @transform_4(%arg0: i32) -> (i32, i32) {
    %c0_i32 = arith.constant 0 : i32
    %c0_i32_0 = arith.constant 0 : i32
    %c0_i32_1 = arith.constant 0 : i32
    return %c0_i32, %c0_i32_0 : i32, i32
  }
  func.func @transform_5(%arg0: i32) -> (i32, i32) {
    %c0_i32 = arith.constant 0 : i32
    %c0_i32_0 = arith.constant 0 : i32
    %c0_i32_1 = arith.constant 0 : i32
    return %c0_i32, %c0_i32_0 : i32, i32
  }
  func.func @transform_6(%arg0: i32) -> (i32, i32) {
    %c0_i32 = arith.constant 0 : i32
    %c0_i32_0 = arith.constant 0 : i32
    %c0_i32_1 = arith.constant 0 : i32
    return %c0_i32, %c0_i32_0 : i32, i32
  }
  func.func @transform_7(%arg0: i32) -> (i32, i32) {
    %c0_i32 = arith.constant 0 : i32
    %c0_i32_0 = arith.constant 0 : i32
    %c0_i32_1 = arith.constant 0 : i32
    return %c0_i32, %c0_i32_0 : i32, i32
  }
  func.func @transform_8(%arg0: i32) -> (i32, i32) {
    %c0_i32 = arith.constant 0 : i32
    %c0_i32_0 = arith.constant 0 : i32
    %c0_i32_1 = arith.constant 0 : i32
    return %c0_i32, %c0_i32_0 : i32, i32
  }
  func.func @transform_9(%arg0: i32) -> (i32, i32) {
    %c0_i32 = arith.constant 0 : i32
    %c0_i32_0 = arith.constant 0 : i32
    %c0_i32_1 = arith.constant 0 : i32
    return %c0_i32, %c0_i32_0 : i32, i32
  }
  func.func @transform_10(%arg0: i32) -> (i32, i32) {
    %c0_i32 = arith.constant 0 : i32
    %c0_i32_0 = arith.constant 0 : i32
    %c0_i32_1 = arith.constant 0 : i32
    return %c0_i32, %c0_i32_0 : i32, i32
  }
  func.func @transform_11(%arg0: i32) -> (i32, i32) {
    %c0_i32 = arith.constant 0 : i32
    %c0_i32_0 = arith.constant 0 : i32
    %c0_i32_1 = arith.constant 0 : i32
    return %c0_i32, %c0_i32_0 : i32, i32
  }
  func.func @transform_12(%arg0: i32) -> (i32, i32, i32) {
    %c0_i32 = arith.constant 0 : i32
    %c0_i32_0 = arith.constant 0 : i32
    %c0_i32_1 = arith.constant 0 : i32
    return %arg0, %c0_i32, %c0_i32_0 : i32, i32, i32
  }
}

</mosaic_0001>

<bundles_post_ra>
// kernel: tpu_custom_call.1
= control target key start
LH: loop header
LB: loop body
LE: loop exit
PB: predicated region body
PF: predicated region fallthrough
CT: control target
= control target key end

     0   :  { %s6524_s0 = inlined_call_operand.vmem [shape: f32[2,32,256], index: 0, kind: input, shape index: {}]   ;;  %s6525_s1 = inlined_call_operand.hbm [shape: f32[8,32], index: 1, kind: input, shape index: {}]   ;;  %s6526_s2 = inlined_call_operand.vmem [shape: f32[8,1], index: 2, kind: input, shape index: {}]   ;;  %s6527_s3 = inlined_call_operand.vmem [shape: f32[49,8], index: 3, kind: input, shape index: {}]   ;;  %s6528_s4 = inlined_call_operand.vmem [shape: f32[1,8], index: 4, kind: input, shape index: {}]   ;;  %s6529_s5 = inlined_call_operand.vmem [shape: f32[25,8], index: 5, kind: input, shape index: {}]   ;;  %s6530_s6 = inlined_call_operand.vmem [shape: f32[1,8], index: 6, kind: input, shape index: {}]   ;;  %s6531_s7 = inlined_call_operand.hbm [shape: f32[8,8], index: 7, kind: input, shape index: {}]   ;;  %s6532_s8 = inlined_call_operand.vmem [shape: f32[8,1], index: 8, kind: input, shape index: {}]   ;;  %s6533_s9 = inlined_call_operand.vmem [shape: f32[32,8], index: 9, kind: input, shape index: {}]   ;;  %s6534_s10 = inlined_call_operand.vmem [shape: f32[32,1], index: 10, kind: input, shape index: {}]   ;;  %s6535_s11 = inlined_call_operand.vmem [shape: f32[36,256], index: 11, kind: input, shape index: {}]   ;;  %s6536_s12 = inlined_call_operand.hbm [shape: f32[2,32,256], index: 12, kind: output, shape index: {}]  }
   0x1   :  { %6703 = sst [smem:[#allocation88_spill]] %s6524_s0 }
   0x2   :  { %6704 = sst [smem:[#allocation89_spill]] %s6525_s1 }
   0x3   :  { %17 = vsyncpa [#allocation3], 0 }
   0x4   :  { %18 = vsyncpa [#allocation6], 0 }
   0x5   :  { %19 = vsyncpa [#allocation4], 0 }
   0x6   :  { %21 = vsyncpa [#allocation4 + $0x1], 0  ;;  %s4220_s21 = smov 0   ;;  %s4222_s22 = smov 0  }
   0x7   :  { %s4224_s23 = smov 0   ;;  %s4226_s24 = smov 0  }
   0x8 LB: > { %s4241_s25 = sadd.s32 4294967295, %s4143_s24   ;;  %s3827_s26 = sadd.s32 4294967294, %s4143_s24   ;;  %s4143_s24 = sphi %s4226_s24, %s7050_s24   ;;  %s4139_s23 = sphi %s4224_s23, %s7049_s23   ;;  %s4135_s22 = sphi %s4222_s22, %s7048_s22   ;;  %s4131_s21 = sphi %s4220_s21, %s7047_s21  }
   0x9   : > { %s4245_s27 = sadd.s32 1, %s4143_s24   ;;  %s291_s28 = sadd.s32 1, %s4139_s23 }
   0xa   : > { %s288_s29 = ssub.s32 %s4143_s24, %s4245_s27  ;;  %p301_p0 = scmp.ne.s32.totalorder %s4139_s23, %s4135_s22 }
   0xb   : > { %p289_p1 = scmp.eq.s32.totalorder %s288_s29, 0  ;;  %p302_p2 = scmp.eq.s32.totalorder %s4241_s25, 1 }
   0xc   : > { %p307_p3 = scmp.ne.s32.totalorder %s4135_s22, %s4131_s21  ;;  %p308_p4 = scmp.eq.s32.totalorder %s3827_s26, 1 }
   0xd   : > { %s4256_s30 = scalar_select %p289_p1, %s4139_s23, %s291_s28  }
   0xe   : > { %p4258_p5 = por %p302_p2, %p301_p0  ;;  %p4262_p6 = por %p308_p4, %p307_p3 }
   0xf   : > { %p3828_p7 = scmp.ge.s32.totalorder %s4143_s24, 1  ;;  %p315_p8 = scmp.lt.s32.totalorder %s4143_s24, 3 }
  0x10   : > { %s6705_s13 = scalar_select %p4258_p5, 1, 0 }
  0x11   : > { %s6706_s14 = scalar_select %p4262_p6, 1, 0 }
  0x12   : > { %p6537_p9 = scmp.eq.s32.totalorder %s4241_s25, 0  ;;  %p4269_p10 = pnand %p3828_p7, %p315_p8 }
  0x13   : > { %s4145_s16 = smov [#allocation2]   ;;  %s4146_s18 = smov [#allocation5]  }
  0x14   : > { %s6707_s15 = scalar_select %p4269_p10, 1, 0 }
  0x15   : > { %s328_s17 = sshll.u32 %s4145_s16, 4  ;;  %p3899_p11 = pneg %p4269_p10  ;;  %s329_s17 = int_to_ptr.vmem [resolvable:$true] %s328_s17 }
  0x16   : > { %s354_s19 = sshll.u32 %s4146_s18, 4  ;;  %s4034_s26 = scalar_lea.vmem %s329_s17, 128  ;;  %s355_s19 = int_to_ptr.vmem [resolvable:$true] %s354_s19 }
  0x17   : > { %p4277_p12 = pnand %p6537_p9, %p3899_p11  ;;  %p4035_p0 = scmp.ne.s32.totalorder %s329_s17, %s4034_s26 }
  0x18   : > { %p4042_p3 = scmp.lt.s32.totalorder %s329_s17, %s329_s17  ;;  %p4043_p4 = scmp.lt.s32.totalorder %s4034_s26, %s4034_s26 }
  0x19   : > { %p4025_p13 = pneg %p4277_p12 }
  0x1a   : > { %p4044_p7 = por %p4043_p4, %p4042_p3 }
  0x1b   : > { %p4037_p1 = pnand %p4035_p0, %p4025_p13 }
  0x1d   : > { %p4038_p2 = pneg %p4037_p1 }
  0x1f   : > { %p4045_p8 = pnand %p4044_p7, %p4038_p2 }
  0x21   : > { %4048 = shalt.err (!%p4045_p8)
}
  0x22   : > { %s6709_s1 = sld [smem:[#allocation89_spill]]  ;;  %s4060_s16 = scalar_lea.vmem %s355_s19, 128 }
  0x23   : > { %p4061_p11 = scmp.ne.s32.totalorder %s355_s19, %s4060_s16  ;;  %p4068_p0 = scmp.lt.s32.totalorder %s355_s19, %s355_s19 }
  0x24   : > { %p4069_p1 = scmp.lt.s32.totalorder %s4060_s16, %s4060_s16 }
  0x25   : > { %p4063_p9 = pnand %p4061_p11, %p4025_p13 }
  0x26   : > { %p4070_p5 = por %p4069_p1, %p4068_p0 }
  0x27   : > { %p4064_p6 = pneg %p4063_p9 }
  0x28   : > { %3902 = dma.hbm_to_vmem [thread:$0]  (!%p4277_p12), %s6709_s1, 128, %s329_s17, [#allocation3]  }
  0x29   : > { %p4071_p10 = pnand %p4070_p5, %p4064_p6 }
  0x2b   : > { %4074 = shalt.err (!%p4071_p10)
}
  0x2c   : > { %3905 = dma.hbm_to_vmem [thread:$0]  (!%p4277_p12), %s6531_s7, 128, %s355_s19, [#allocation6]  }
  0x2d   : > { %p6710_p2 = scmp.ne.s32.totalorder %s6707_s15, 0 }
  0x2f   : > { %387 = sbr.rel (%p6710_p2) target bundleno = 1492 (0x5d4), region = 68 }
  0x34   : > { %p6711_p3 = scmp.eq.s32.totalorder %s4241_s25, 0 }
  0x36   : > { %4118 = dma.done.wait (%p6711_p3), [#allocation3], 128   ;;  %p6712_p13 = pmov %p6711_p3 }
  0x37   : > { %p6713_p9 = pmov %p6711_p3 }
  0x38   : > { %4120 = vsyncadd (%p6712_p13), [#allocation3], 4294967168 }
  0x39   : > { %4122 = dma.done.wait (%p6713_p9), [#allocation6], 128   ;;  %p6714_p5 = pmov %p6711_p3 }
  0x3a   : > { %p433_p6 = scmp.lt.s32.totalorder %s4241_s25, 1  ;;  %v6540_v0 = vmov 0   ;;  %s6715_s0 = sld [smem:[#allocation88_spill]]  ;;  %v453_v12 = vld [vmem:[%s6526_s2] sm:$0xff]  ;;  %vm459_vm0 = vcmask 261120   ;;  %v1498_v23 = vlaneseq  ;;  %v1461_v56 = vld [vmem:[%s6527_s3 + $0x8] sm:$0xff] }
  0x3b   : > { %4124 = vsyncadd (%p6714_p5), [#allocation6], 4294967168  ;;  %495 = vmatprep.mubr.bf16.mxu1 %v6540_v0  ;;  %3956 = vset.pattern.permute.xlu0 %v6540_v0  ;;  %v447_v14 = vld [vmem:[#allocation2] sm:$0xff]  ;;  %vm598_vm1 = vcmask 1046528   ;;  %vm704_vm2 = vcmask 1045504   ;;  %vm810_vm3 = vcmask 1044480  }
  0x3c   : > { %s434_s15 = scalar_select %p433_p6, %s4241_s25, 1  ;;  %456 = vperm.xlu0 %3956, %v453_v12   ;;  %v448_v15 = vpack.c.bf16 %v447_v14, %v447_v14  ;;  %v4336_v24 = vshrl.u32 %v1498_v23, 7  ;;  %v1460_v25 = vld [vmem:[%s6527_s3] sm:$0xff]  ;;  %vm916_vm4 = vcmask 1043456   ;;  %vm1202_vm5 = vcmask 1040384  }
  0x3d   : > { %vm1218_vm6 = vcmask 1041408   ;;  %vm1234_vm7 = vcmask 1042432   ;;  %vm3393_vm14 = vcmask 64512   ;;  %vm4151_vm15 = vmmov 0   ;;  %s3869_s20 = sshll.u32 %s4241_s25, 10  ;;  %p7045_p12 = scmp.ne.s32.totalorder %s6705_s13, 0 }
  0x3e   : > { %s3868_s17 = sshll.u32 %s434_s15, 6  ;;  %6718 = vst [vmem:[#allocation13_spill] sm:$0xff] %v4336_v24  ;;  %v4342_v26 = vsub.s32 0, %v4336_v24  ;;  %v4345_v27 = vsub.s32 1, %v4336_v24  ;;  %v4348_v28 = vsub.s32 2, %v4336_v24  ;;  %v4351_v29 = vsub.s32 3, %v4336_v24  ;;  %s6475_s26 = scalar_lea.hbm %s6536_s12, %s3869_s20 }
  0x3f   : > { %v4354_v30 = vsub.s32 4, %v4336_v24  ;;  %v4357_v31 = vsub.s32 5, %v4336_v24  ;;  %v4366_v42 = vsub.s32 6, %v4336_v24  ;;  %v4370_v55 = vsub.s32 7, %v4336_v24  ;;  %s430_s15 = sand.u32 1, %s4135_s22   ;;  %s4152_s16 = smov [#allocation7]  }
  0x40   : > { %s4316_s28 = scalar_lea.vmem %s6715_s0, %s3868_s17  ;;  %v1501_v32 = vrot.slane %v1460_v25, %v4342_v26  ;;  %v1506_v33 = vrot.slane %v1460_v25, %v4345_v27  ;;  %v1516_v34 = vrot.slane %v1460_v25, %v4348_v28  ;;  %v1526_v35 = vrot.slane %v1460_v25, %v4351_v29  ;;  %s3835_s17 = sshll.u32 %s430_s15, 6 }
  0x41   : > { %v444_v1 = vld [vmem:[%s4316_s28 + $0x28] sm:$0xff]  ;;  %v446_v2 = vld [vmem:[%s4316_s28 + $0x38] sm:$0xff]  ;;  %v443_v3 = vld [vmem:[%s4316_s28 + $0x20] sm:$0xff]  ;;  %v1535_v36 = vrot.slane %v1460_v25, %v4354_v30  ;;  %v1545_v41 = vrot.slane %v1460_v25, %v4357_v31  ;;  %v1555_v49 = vrot.slane %v1460_v25, %v4366_v42  ;;  %v1564_v60 = vrot.slane %v1460_v25, %v4370_v55  ;;  %s6456_s19 = scalar_lea.vmem [#allocation7], %s3835_s17  ;;  %s6484_s25 = scalar_lea.sflag [#allocation4], %s430_s15 }
  0x42   : > { %v452_v4 = vpack.c.bf16 %v446_v2, %v444_v1  ;;  %v445_v5 = vld [vmem:[%s4316_s28 + $0x30] sm:$0xff]  ;;  %v440_v6 = vld [vmem:[%s4316_s28 + $0x8] sm:$0xff]  ;;  %v442_v7 = vld [vmem:[%s4316_s28 + $0x18] sm:$0xff]  ;;  %v1502_v37 = vmul.f32 0.0, %v1501_v32  ;;  %v1507_v38 = vmul.f32 0.0, %v1506_v33  ;;  %v1517_v39 = vmul.f32 0.0, %v1516_v34 }
  0x43   : > { %v451_v8 = vpack.c.bf16 %v445_v5, %v443_v3  ;;  %v450_v9 = vpack.c.bf16 %v442_v7, %v440_v6  ;;  %v439_v10 = vld [vmem:[%s4316_s28] sm:$0xff]  ;;  %v441_v11 = vld [vmem:[%s4316_s28 + $0x10] sm:$0xff]  ;;  %v1527_v40 = vmul.f32 0.0, %v1526_v35  ;;  %v1536_v45 = vmul.f32 0.0, %v1535_v36  ;;  %s3743_s29 = sshll.u32 %s6456_s19, 4  ;;  %s4079_s20 = sshll.u32 %s4152_s16, 4  ;;  %s6477_s29 = int_to_ptr.vmem [resolvable:$true] %s3743_s29  ;;  %s4080_s20 = int_to_ptr.vmem [resolvable:$false] %s4079_s20 }
  0x44   : > { %475 = vmatprep.subr.bf16.mxu1 %v452_v4  ;;  %v449_v13 = vpack.c.bf16 %v441_v11, %v439_v10  ;;  %v1509_v43 = vrot.slane %v1507_v38, 3  ;;  %v1519_v44 = vrot.slane %v1517_v39, 6  ;;  %v1546_v48 = vmul.f32 0.0, %v1545_v41  ;;  %v3576_v7 = vld [vmem:[%s6534_s10] sm:$0xff]  ;;  %v1462_v32 = vld [vmem:[%s6527_s3 + $0x10] sm:$0xff]  ;;  %s4075_s17 = scalar_lea.vmem %s6477_s29, 1024  ;;  %p4082_p8 = scmp.lt.s32.totalorder %s6477_s29, %s4080_s20 }
  0x45   : > { %476 = vmatpush1.bf16.msra.mxu1 %v451_v8  ;;  %v1529_v47 = vrot.slane %v1527_v40, 1  ;;  %v1538_v51 = vrot.slane %v1536_v45, 4  ;;  %v1556_v54 = vmul.f32 0.0, %v1555_v49  ;;  %v1570_v61 = vrot.slane %v1461_v56, %v4342_v26  ;;  %p4076_p10 = scmp.ne.s32.totalorder %s6477_s29, %s4075_s17  ;;  %s4081_s18 = scalar_lea.vmem %s4080_s20, 2048 }
  0x46   : > { %477 = vmatprep.subr.bf16.mxu1 %v450_v9  ;;  %v1512_v46 = vadd.f32 %v1509_v43, %v1502_v37  ;;  %v1548_v53 = vrot.slane %v1546_v48, 7  ;;  %v1565_v63 = vmul.f32 0.0, %v1564_v60  ;;  %v1580_v2 = vrot.slane %v1461_v56, %v4345_v27  ;;  %p4083_p11 = scmp.lt.s32.totalorder %s4081_s18, %s4075_s17 }
  0x47   : > { %v1558_v59 = vrot.slane %v1556_v54, 2  ;;  %v1571_v1 = vmul.f32 0.0, %v1570_v61  ;;  %v1590_v6 = vrot.slane %v1461_v56, %v4348_v28  ;;  %v1599_v11 = vrot.slane %v1461_v56, %v4351_v29  ;;  %v4428_v61 = vld [vmem:[%s6527_s3 + $0x18] sm:$0xff]  ;;  %p4077_p4 = pnand %p4076_p10, %p7045_p12 }
  0x48   : > { %v1522_v50 = vadd.f32 %v1519_v44, %v1512_v46  ;;  %v1581_v5 = vmul.f32 0.0, %v1580_v2  ;;  %v1628_v35 = vrot.slane %v1461_v56, %v4366_v42  ;;  %v4390_v36 = vrot.slane %v1461_v56, %v4370_v55  ;;  %p4084_p0 = por %p4083_p11, %p4082_p8 }
  0x49   : > { %478 = vmatpush1.bf16.msra.mxu1 %v449_v13  ;;  %v1573_v4 = vrot.slane %v1571_v1, 3  ;;  %v1591_v10 = vmul.f32 0.0, %v1590_v6  ;;  %v1600_v14 = vmul.f32 0.0, %v1599_v11  ;;  %v4393_v37 = vrot.slane %v1462_v32, %v4342_v26  ;;  %p4078_p7 = pneg %p4077_p4 }
  0x4a   : > { %v1531_v52 = vadd.f32 %v1529_v47, %v1522_v50  ;;  %v1583_v9 = vrot.slane %v1581_v5, 6  ;;  %6719 = vst [vmem:[#allocation14_spill] sm:$0xff] %v4390_v36  ;;  %v1629_v39 = vmul.f32 0.0, %v1628_v35  ;;  %v1635_v40 = vmul.f32 0.0, %v4390_v36 }
  0x4b   : > { %v1593_v13 = vrot.slane %v1591_v10, 1  ;;  %6720 = vst [vmem:[#allocation15_spill] sm:$0xff] %v4393_v37  ;;  %v4397_v41 = vrot.slane %v1462_v32, %v4345_v27  ;;  %v4400_v43 = vrot.slane %v1462_v32, %v4348_v28  ;;  %v4403_v44 = vrot.slane %v1462_v32, %v4351_v29  ;;  %p4085_p1 = pnand %p4084_p0, %p4078_p7 }
  0x4c   : > { %3838 = vmatmul.mubr.msk.bf16.vlgmr.msra.gmra.mxu1 %vm459_vm0, %v448_v15  ;;  %v1541_v57 = vadd.f32 %v1538_v51, %v1531_v52  ;;  %v1609_v15 = vrot.slane %v1461_v56, %v4354_v30  ;;  %v1663_v46 = vmul.f32 0.0, %v4393_v37  ;;  %v1770_v47 = vrot.slane %v1462_v32, %v4354_v30 }
  0x4d   : > { %6721 = vst [vmem:[#allocation16_spill] sm:$0xff] %v4397_v41  ;;  %6722 = vst [vmem:[#allocation17_spill] sm:$0xff] %v4400_v43  ;;  %v4411_v49 = vrot.slane %v1635_v40, 3  ;;  %v1691_v50 = vmul.f32 0.0, %v4397_v41  ;;  %v1715_v52 = vmul.f32 0.0, %v4400_v43  ;;  %v1782_v54 = vrot.slane %v1462_v32, %v4357_v31 }
  0x4e   : > { %v1551_v58 = vadd.f32 %v1548_v53, %v1541_v57  ;;  %6723 = vst [vmem:[#allocation18_spill] sm:$0xff] %v4403_v44  ;;  %v1743_v53 = vmul.f32 0.0, %v4403_v44  ;;  %v4421_v57 = vrot.slane %v1663_v46, 6  ;;  %v4448_v10 = vrot.slane %v1462_v32, %v4370_v55 }
  0x4f   : > { %6725 = vst [vmem:[#allocation20_spill] sm:$0xff] %v4411_v49  ;;  %v1699_v2 = vrot.slane %v1691_v50, 1  ;;  %v4441_v6 = vmul.f32 0.0, %v1782_v54  ;;  %v4452_v11 = vrot.slane %v4428_v61, %v4345_v27  ;;  %vm3487_vm0 = vcmask 293888  }
  0x50   : > { %v1560_v62 = vadd.f32 %v1558_v59, %v1551_v58  ;;  %6726 = vst [vmem:[#allocation21_spill] sm:$0xff] %v4421_v57  ;;  %v1771_v58 = vmul.f32 0.0, %v1770_v47  ;;  %v4439_v5 = vrot.slane %v1743_v53, 7  ;;  %v4477_v35 = vmul.f32 0.0, %v4448_v10 }
  0x51   : > { %6729 = vst [vmem:[#allocation24_spill] sm:$0xff] %v4441_v6  ;;  %6730 = vst [vmem:[#allocation25_spill] sm:$0xff] %v4452_v11 }
  0x52   : > { %v1566_v3 = vadd.f32 %v1565_v63, %v1560_v62  ;;  %v4433_v63 = vrot.slane %v1462_v32, %v4366_v42  ;;  %6728 = vst [vmem:[#allocation23_spill] sm:$0xff] %v4439_v5  ;;  %v4471_v32 = vrot.slane %v4428_v61, %v4348_v28 }
  0x54   : > { %v1576_v8 = vadd.f32 %v1573_v4, %v1566_v3  ;;  %v4437_v4 = vrot.slane %v1715_v52, 4  ;;  %6733 = vst [vmem:[#allocation28_spill] sm:$0xff] %v4471_v32 }
  0x56   : > { %v1586_v12 = vadd.f32 %v1583_v9, %v1576_v8  ;;  %6727 = vst [vmem:[#allocation22_spill] sm:$0xff] %v4437_v4 }
  0xb7   : > { %v457_v16 = vpop.permute.xlu0 %456 }
 0x10c   : > { %v497_v17 = vpop.f32.mrf.mxu1 }
 0x10d   : > { %v4329_v18 = vadd.f32 %v497_v17, %v457_v16  ;;  %v1602_v17 = vrot.slane %v1600_v14, 4  ;;  %v4457_v14 = vrot.slane %v1771_v58, 2 }
 0x10e   : > { %v499_v19 = vpop.f32.mrf.mxu1 }
 0x10f   : > { %6716 = vst [vmem:[#allocation11_spill] sm:$0xff] %v4329_v18  ;;  %v4331_v20 = vadd.f32 %v499_v19, %v457_v16  ;;  %504 = vxpose.xlu0.b32.start.end [1/1] (short) %v4329_v18, 128  ;;  %v1595_v16 = vadd.f32 %v1593_v13, %v1586_v12  ;;  %v1610_v19 = vmul.f32 0.0, %v1609_v15  ;;  %6731 = vst [vmem:[#allocation26_spill] sm:$0xff] %v4457_v14  ;;  %v1792_v15 = vmul.f32 0.0, %v4433_v63 }
 0x110   : > { %v501_v21 = vpop.f32.mrf.mxu1 }
 0x111   : > { %6717 = vst [vmem:[#allocation12_spill] sm:$0xff] %v4331_v20  ;;  %536 = vxpose.xlu1.b32.start.end [1/1] (short) (narrow) %v4331_v20, 112  ;;  %v1619_v21 = vrot.slane %v1461_v56, %v4357_v31  ;;  %v1612_v23 = vrot.slane %v1610_v19, 7 }
 0x112   : > { %v502_v22 = vpop.f32.mrf.mxu1 }
 0x113   : > { %v1605_v22 = vadd.f32 %v1602_v17, %v1595_v16  ;;  %v1620_v25 = vmul.f32 0.0, %v1619_v21  ;;  %v4462_v16 = vrot.slane %v4428_v61, %v4342_v26 }
 0x115   : > { %v1615_v33 = vadd.f32 %v1612_v23, %v1605_v22  ;;  %v1622_v34 = vrot.slane %v1620_v25, 2  ;;  %6732 = vst [vmem:[#allocation27_spill] sm:$0xff] %v4462_v16 }
 0x117   : > { %v1624_v38 = vadd.f32 %v1622_v34, %v1615_v33  ;;  %v1997_v33 = vrot.slane %v4428_v61, %v4351_v29 }
 0x119   : > { %v4409_v48 = vadd.f32 %v1629_v39, %v1624_v38  ;;  %v4480_v38 = vmul.f32 0.0, %v4452_v11 }
 0x11b   : > { %6724 = vst [vmem:[#allocation19_spill] sm:$0xff] %v4409_v48  ;;  %v1655_v62 = vadd.f32 %v4411_v49, %v4409_v48 }
 0x11d   : > { %v1683_v13 = vadd.f32 %v4421_v57, %v1655_v62 }
 0x11f   : > { %v1707_v50 = vadd.f32 %v1699_v2, %v1683_v13 }
 0x12f   : > { %3957 = vset.pattern.permute.xlu1 %v6540_v0 }
 0x174   : > { %3582 = vperm.xlu0 %3956, %v3576_v7  }
 0x18b   : > { %v4405_v45 = vpop.trf.xlu0 }
 0x18c   : > { %v599_v59 = vrot.slane %v4405_v45, 1  ;;  %v705_v7 = vrot.slane %v4405_v45, 2  ;;  %v811_v34 = vrot.slane %v4405_v45, 3 }
 0x18d   : > { %v4414_v51 = vpop.trf.xlu1 }
 0x18e   : > { %v623_v17 = vrot.slane %v4414_v51, 1  ;;  %v729_v40 = vrot.slane %v4414_v51, 2  ;;  %v835_v46 = vrot.slane %v4414_v51, 3  ;;  %v941_v47 = vrot.slane %v4414_v51, 4 }
 0x18f   : > { %v4419_v56 = vpop.trf.xlu0 }
 0x190   : > { %v600_v60 = vrot.slane %v4419_v56, 1  ;;  %v706_v1 = vrot.slane %v4419_v56, 2  ;;  %v812_v21 = vrot.slane %v4419_v56, 3  ;;  %v918_v53 = vrot.slane %v4419_v56, 4 }
 0x191   : > { %v4454_v12 = vpop.trf.xlu1 }
 0x192   : > { %v601_v3 = vsel %vm598_vm1, %v599_v59, %v600_v60  ;;  %v707_v19 = vsel %vm704_vm2, %v705_v7, %v706_v1  ;;  %v624_v22 = vrot.slane %v4454_v12, 1  ;;  %v675_v23 = vmax.f32 %v4419_v56, %v600_v60 }
 0x193   : > { %v674_v8 = vmax.f32 %v4405_v45, %v601_v3  ;;  %v4445_v9 = vpop.trf.xlu0  ;;  %v813_v52 = vsel %vm810_vm3, %v811_v34, %v812_v21  ;;  %v730_v58 = vrot.slane %v4454_v12, 2  ;;  %v836_v3 = vrot.slane %v4454_v12, 3 }
 0x194   : > { %v625_v54 = vsel %vm598_vm1, %v623_v17, %v624_v22  ;;  %v781_v60 = vmax.f32 %v675_v23, %v706_v1  ;;  %v6543_v7 = vrot.slane %v4454_v12, 4  ;;  %v691_v2 = vmax.f32 %v4454_v12, %v624_v22 }
 0x195   : > { %v780_v25 = vmax.f32 %v674_v8, %v707_v19  ;;  %v917_v8 = vrot.slane %v4405_v45, 4  ;;  %v4497_v13 = vpop.trf.xlu1  ;;  %v4499_v56 = vrot.slane %v1792_v15, 3  ;;  %v1956_v17 = vmul.f32 0.0, %v4471_v32 }
 0x196   : > { %v690_v19 = vmax.f32 %v4414_v51, %v625_v54  ;;  %v1735_v23 = vadd.f32 %v4437_v4, %v1707_v50  ;;  %v731_v45 = vsel %vm704_vm2, %v729_v40, %v730_v58  ;;  %v887_v0 = vmax.f32 %v781_v60, %v812_v21 }
 0x197   : > { %v4491_v59 = vpop.trf.xlu0  ;;  %v886_v62 = vmax.f32 %v780_v25, %v813_v52  ;;  %v1998_v25 = vmul.f32 0.0, %v1997_v33  ;;  %v919_v34 = vsel %vm916_vm4, %v917_v8, %v918_v53  ;;  %v602_v52 = vrot.slane %v4445_v9, 1 }
 0x198   : > { %v603_v1 = vrot.slane %v4491_v59, 1  ;;  %v709_v22 = vrot.slane %v4491_v59, 2  ;;  %v837_v39 = vsel %vm810_vm3, %v835_v46, %v836_v3  ;;  %v943_v51 = vsel %vm916_vm4, %v941_v47, %v6543_v7 }
 0x199   : > { %v4509_v15 = vmax.f32 %v886_v62, %v919_v34  ;;  %v797_v50 = vmax.f32 %v691_v2, %v730_v58  ;;  %v708_v33 = vrot.slane %v4445_v9, 2  ;;  %v815_v40 = vrot.slane %v4491_v59, 3  ;;  %v4525_v2 = vpop.trf.xlu1 }
 0x19a   : > { %v604_v54 = vsel %vm598_vm1, %v602_v52, %v603_v1  ;;  %v796_v8 = vmax.f32 %v690_v19, %v731_v45  ;;  %v814_v20 = vrot.slane %v4445_v9, 3  ;;  %v626_v21 = vrot.slane %v4497_v13, 1 }
 0x19b   : > { %v676_v60 = vmax.f32 %v4445_v9, %v604_v54  ;;  %v920_v46 = vrot.slane %v4445_v9, 4  ;;  %v732_v62 = vrot.slane %v4497_v13, 2  ;;  %v710_v47 = vsel %vm704_vm2, %v708_v33, %v709_v22  ;;  %v4530_v7 = vpop.trf.xlu0 }
 0x19c   : > { %v921_v58 = vrot.slane %v4491_v59, 4  ;;  %v1037_v34 = vrot.slane %v4509_v15, 1  ;;  %v627_v19 = vrot.slane %v4525_v2, 1  ;;  %v733_v45 = vrot.slane %v4525_v2, 2 }
 0x19d   : > { %v782_v52 = vmax.f32 %v676_v60, %v710_v47  ;;  %v838_v9 = vrot.slane %v4497_v13, 3  ;;  %v677_v54 = vmax.f32 %v4491_v59, %v603_v1  ;;  %v816_v33 = vsel %vm810_vm3, %v814_v20, %v815_v40 }
 0x19e   : > { %v6558_v18 = vrot.slane %v4525_v2, 3  ;;  %v4536_v24 = vmax.f32 %v887_v0, %v918_v53  ;;  %v902_v4 = vmax.f32 %v796_v8, %v837_v39  ;;  %v628_v60 = vsel %vm598_vm1, %v626_v21, %v627_v19 }
 0x19f   : > { %v888_v32 = vmax.f32 %v782_v52, %v816_v33  ;;  %v903_v47 = vmax.f32 %v797_v50, %v836_v3  ;;  %v922_v44 = vsel %vm916_vm4, %v920_v46, %v921_v58  ;;  %v692_v11 = vmax.f32 %v4497_v13, %v628_v60  ;;  %v4550_v8 = vpop.trf.xlu0 }
 0x1a0   : > { %v734_v57 = vsel %vm704_vm2, %v732_v62, %v733_v45  ;;  %v1067_v16 = vrot.slane %v4509_v15, 2  ;;  %v1203_v20 = vsel %vm1202_vm5, %v4509_v15, %v1037_v34  ;;  %v944_v59 = vrot.slane %v4497_v13, 4  ;;  %v4576_v34 = vpop.trf.xlu1 }
 0x1a1   : > { %v994_v0 = vmax.f32 %v888_v32, %v922_v44  ;;  %v783_v53 = vmax.f32 %v677_v54, %v709_v22  ;;  %v798_v39 = vmax.f32 %v692_v11, %v734_v57  ;;  %v840_v3 = vsel %vm810_vm3, %v838_v9, %v6558_v18 }
 0x1a2   : > { %v6557_v1 = vrot.slane %v4525_v2, 4  ;;  %v1008_v50 = vmax.f32 %v902_v4, %v943_v51  ;;  %v4553_v21 = vrot.slane %v4477_v35, 6  ;;  %v4556_v46 = vrot.slane %v4480_v38, 4 }
 0x1a3   : > { %v6736_v44 = vrot.slane %v4428_v61, %v4354_v30  ;;  %v6738_v57 = vrot.slane %v4454_v12, 4  ;;  %v4568_v13 = vadd.f32 %v4439_v5, %v1735_v23  ;;  %v4570_v4 = vrot.slane %v1956_v17, 7 }
 0x1a4   : > { %6734 = vst [vmem:[#allocation29_spill] sm:$0xff] %v4553_v21  ;;  %6735 = vst [vmem:[#allocation30_spill] sm:$0xff] %v4556_v46  ;;  %v4572_v22 = vrot.slane %v1998_v25, 2  ;;  %v1142_v35 = vrot.slane %v4536_v24, 4  ;;  %v1219_v38 = vsel %vm1218_vm6, %v1203_v20, %v1067_v16  ;;  %v1038_v51 = vrot.slane %v994_v0, 1 }
 0x1a5   : > { %v4561_v32 = vmul.f32 0.0, %v6736_v44  ;;  %v4565_v11 = vmax.f32 %v903_v47, %v6738_v57  ;;  %6739 = vst [vmem:[#allocation32_spill] sm:$0xff] %v4570_v4  ;;  %v904_v62 = vmax.f32 %v798_v39, %v840_v3  ;;  %v889_v52 = vmax.f32 %v783_v53, %v815_v40 }
 0x1a6   : > { %6740 = vst [vmem:[#allocation33_spill] sm:$0xff] %v4572_v22  ;;  %v693_v12 = vmax.f32 %v4525_v2, %v627_v19  ;;  %v946_v23 = vsel %vm916_vm4, %v944_v59, %v6557_v1  ;;  %v606_v17 = vrot.slane %v4550_v8, 1  ;;  %v1097_v25 = vrot.slane %v4509_v15, 3  ;;  %v4609_v22 = vpop.trf.xlu0 }
 0x1a7   : > { %6737 = vst [vmem:[#allocation31_spill] sm:$0xff] %v4561_v32  ;;  %v1172_v9 = vrot.slane %v4536_v24, 5  ;;  %v1045_v54 = vrot.slane %v1008_v50, 1  ;;  %v605_v16 = vrot.slane %v4530_v7, 1  ;;  %v1075_v33 = vrot.slane %v1008_v50, 2  ;;  %v4596_v32 = vpop.trf.xlu1 }
 0x1a8   : > { %v1150_v60 = vrot.slane %v4565_v11, 4  ;;  %v1068_v47 = vrot.slane %v994_v0, 2  ;;  %v712_v40 = vrot.slane %v4550_v8, 2  ;;  %v1235_v19 = vsel %vm1234_vm7, %v1219_v38, %v1097_v25 }
 0x1a9   : > { %v1204_v20 = vsel %vm1202_vm5, %v994_v0, %v1038_v51  ;;  %v1010_v59 = vmax.f32 %v904_v62, %v946_v23  ;;  %v607_v53 = vsel %vm598_vm1, %v605_v16, %v606_v17  ;;  %v995_v39 = vmax.f32 %v889_v52, %v921_v58 }
 0x1aa   : > { %v799_v15 = vmax.f32 %v693_v12, %v733_v45  ;;  %v711_v24 = vrot.slane %v4530_v7, 2  ;;  %v678_v3 = vmax.f32 %v4530_v7, %v607_v53  ;;  %v1105_v44 = vrot.slane %v1008_v50, 3 }
 0x1ab   : > { %v1211_v57 = vsel %vm1202_vm5, %v1008_v50, %v1045_v54  ;;  %v629_v1 = vrot.slane %v4576_v34, 1  ;;  %v679_v18 = vmax.f32 %v4550_v8, %v606_v17  ;;  %v1220_v38 = vsel %vm1218_vm6, %v1204_v20, %v1068_v47 }
 0x1ac   : > { %v713_v51 = vsel %vm704_vm2, %v711_v24, %v712_v40  ;;  %v818_v58 = vrot.slane %v4550_v8, 3  ;;  %v630_v45 = vrot.slane %v4596_v32, 1  ;;  %v1250_v62 = vsel %vm916_vm4, %v1235_v19, %v1142_v35 }
 0x1ad   : > { %v1098_v52 = vrot.slane %v994_v0, 3  ;;  %v1046_v12 = vrot.slane %v1010_v59, 1  ;;  %v784_v23 = vmax.f32 %v678_v3, %v713_v51  ;;  %v1227_v50 = vsel %vm1218_vm6, %v1211_v57, %v1075_v33 }
 0x1ae   : > { %v1143_v25 = vrot.slane %v995_v39, 4  ;;  %v6741_v17 = vrot.slane %v4525_v2, 3  ;;  %v817_v16 = vrot.slane %v4530_v7, 3  ;;  %v1076_v20 = vrot.slane %v1010_v59, 2 }
 0x1af   : > { %v1236_v47 = vsel %vm1234_vm7, %v1220_v38, %v1098_v52  ;;  %v735_v53 = vrot.slane %v4576_v34, 2  ;;  %v785_v24 = vmax.f32 %v679_v18, %v712_v40  ;;  %v924_v35 = vrot.slane %v4550_v8, 4 }
 0x1b0   : > { %v905_v54 = vmax.f32 %v799_v15, %v6741_v17  ;;  %v819_v0 = vsel %vm810_vm3, %v817_v16, %v818_v58  ;;  %v631_v33 = vsel %vm598_vm1, %v629_v1, %v630_v45  ;;  %v736_v19 = vrot.slane %v4596_v32, 2 }
 0x1b1   : > { %v1243_v15 = vsel %vm1234_vm7, %v1227_v50, %v1105_v44  ;;  %v1173_v3 = vrot.slane %v995_v39, 5  ;;  %v1212_v57 = vsel %vm1202_vm5, %v1010_v59, %v1046_v12  ;;  %v890_v38 = vmax.f32 %v784_v23, %v819_v0  ;;  %v4626_v39 = vpop.trf.xlu1 }
 0x1b2   : > { %v1251_v51 = vsel %vm916_vm4, %v1236_v47, %v1143_v25  ;;  %v6742_v18 = vrot.slane %v4525_v2, 4  ;;  %v923_v52 = vrot.slane %v4530_v7, 4  ;;  %v841_v8 = vrot.slane %v4576_v34, 3  ;;  %v4638_v25 = vpop.trf.xlu0 }
 0x1b3   : > { %v1106_v17 = vrot.slane %v1010_v59, 3  ;;  %v891_v1 = vmax.f32 %v785_v24, %v818_v58  ;;  %v694_v16 = vmax.f32 %v4576_v34, %v631_v33  ;;  %v695_v44 = vmax.f32 %v4596_v32, %v630_v45 }
 0x1b4   : > { %v4620_v40 = vmax.f32 %v905_v54, %v6742_v18  ;;  %v1228_v12 = vsel %vm1218_vm6, %v1212_v57, %v1076_v20  ;;  %v925_v23 = vsel %vm916_vm4, %v923_v52, %v924_v35  ;;  %v737_v2 = vsel %vm704_vm2, %v735_v53, %v736_v19 }
 0x1b5   : > { %v842_v50 = vrot.slane %v4596_v32, 3  ;;  %v4633_v7 = vsel %vm810_vm3, %v1250_v62, %v1172_v9  ;;  %v1180_v59 = vrot.slane %v4565_v11, 5  ;;  %v4636_v58 = vmax.f32 %v890_v38, %v925_v23 }
 0x1b6   : > { %v4642_v45 = vadd.f32 %v4457_v14, %v4568_v13  ;;  %v1258_v54 = vsel %vm916_vm4, %v1243_v15, %v1150_v60  ;;  %v4646_v47 = vsel %vm810_vm3, %v1251_v51, %v1173_v3  ;;  %v1151_v20 = vrot.slane %v4620_v40, 4  ;;  %v4674_v23 = vpop.trf.xlu0 }
 0x1b7   : > { %v947_v9 = vrot.slane %v4576_v34, 4  ;;  %v1244_v62 = vsel %vm1234_vm7, %v1228_v12, %v1106_v17  ;;  %v4651_v11 = vmax.f32 %v891_v1, %v924_v35  ;;  %v800_v53 = vmax.f32 %v694_v16, %v737_v2  ;;  %v4661_v35 = vpop.trf.xlu1 }
 0x1b8   : > { %v801_v24 = vmax.f32 %v695_v44, %v736_v19  ;;  %v843_v0 = vsel %vm810_vm3, %v841_v8, %v842_v50  ;;  %v608_v13 = vrot.slane %v4609_v22, 1  ;;  %v609_v33 = vrot.slane %v4638_v25, 1 }
 0x1b9   : > { %v715_v60 = vrot.slane %v4638_v25, 2  ;;  %v1039_v15 = vrot.slane %v4636_v58, 1  ;;  %v1069_v3 = vrot.slane %v4636_v58, 2  ;;  %v948_v34 = vrot.slane %v4596_v32, 4 }
 0x1ba   : > { %v714_v57 = vrot.slane %v4609_v22, 2  ;;  %v632_v19 = vrot.slane %v4626_v39, 1  ;;  %v738_v38 = vrot.slane %v4626_v39, 2  ;;  %v610_v51 = vsel %vm598_vm1, %v608_v13, %v609_v33 }
 0x1bb   : > { %v821_v18 = vrot.slane %v4638_v25, 3  ;;  %v906_v52 = vmax.f32 %v800_v53, %v843_v0  ;;  %v820_v8 = vrot.slane %v4609_v22, 3  ;;  %v844_v17 = vrot.slane %v4626_v39, 3 }
 0x1bc   : > { %v680_v1 = vmax.f32 %v4609_v22, %v610_v51  ;;  %v716_v32 = vsel %vm704_vm2, %v714_v57, %v715_v60  ;;  %v927_v16 = vrot.slane %v4638_v25, 4  ;;  %v633_v44 = vrot.slane %v4661_v35, 1 }
 0x1bd   : > { %v739_v12 = vrot.slane %v4661_v35, 2  ;;  %v949_v2 = vsel %vm916_vm4, %v947_v9, %v948_v34  ;;  %v681_v53 = vmax.f32 %v4638_v25, %v609_v33  ;;  %v845_v13 = vrot.slane %v4661_v35, 3 }
 0x1be   : > { %v786_v0 = vmax.f32 %v680_v1, %v716_v32  ;;  %v926_v14 = vrot.slane %v4609_v22, 4  ;;  %v822_v51 = vsel %vm810_vm3, %v820_v8, %v821_v18  ;;  %v634_v57 = vsel %vm598_vm1, %v632_v19, %v633_v44 }
 0x1bf   : > { %v740_v4 = vsel %vm704_vm2, %v738_v38, %v739_v12  ;;  %v1205_v5 = vsel %vm1202_vm5, %v4636_v58, %v1039_v15  ;;  %v907_v46 = vmax.f32 %v801_v24, %v842_v50  ;;  %v696_v9 = vmax.f32 %v4626_v39, %v634_v57 }
 0x1c0   : > { %v892_v21 = vmax.f32 %v786_v0, %v822_v51  ;;  %v950_v25 = vrot.slane %v4626_v39, 4  ;;  %v928_v33 = vsel %vm916_vm4, %v926_v14, %v927_v16  ;;  %v846_v1 = vsel %vm810_vm3, %v844_v17, %v845_v13  ;;  %v529_v14 = vpop.trf.xlu0 }
 0x1c1   : > { %v951_v22 = vrot.slane %v4661_v35, 4  ;;  %v4690_v8 = vmax.f32 %v906_v52, %v949_v2  ;;  %v787_v19 = vmax.f32 %v681_v53, %v715_v60  ;;  %v802_v38 = vmax.f32 %v696_v9, %v740_v4 }
 0x1c2   : > { %v998_v32 = vmax.f32 %v892_v21, %v928_v33  ;;  %v4693_v43 = vsel %vm810_vm3, %v1258_v54, %v1180_v59  ;;  %v1280_v50 = vmax.f32 %v4633_v7, %v4646_v47  ;;  %v1181_v24 = vrot.slane %v4620_v40, 5 }
 0x1c3   : > { %6743 = vst [vmem:[#allocation34_spill] sm:$0xff] %v4693_v43  ;;  %v1221_v39 = vsel %vm1218_vm6, %v1205_v5, %v1069_v3  ;;  %v1099_v15 = vrot.slane %v4636_v58, 3  ;;  %v697_v52 = vmax.f32 %v4661_v35, %v633_v44  ;;  %v908_v2 = vmax.f32 %v802_v38, %v846_v1 }
 0x1c4   : > { %v1040_v17 = vrot.slane %v998_v32, 1  ;;  %v1259_v21 = vsel %vm916_vm4, %v1244_v62, %v1151_v20  ;;  %v1144_v4 = vrot.slane %v4651_v11, 4  ;;  %v4703_v59 = vmax.f32 %v907_v46, %v948_v34 }
 0x1c5   : > { %v952_v54 = vsel %vm916_vm4, %v950_v25, %v951_v22  ;;  %v1237_v40 = vsel %vm1234_vm7, %v1221_v39, %v1099_v15  ;;  %v1047_v5 = vrot.slane %v4690_v8, 1  ;;  %v893_v60 = vmax.f32 %v787_v19, %v821_v18 }
 0x1c6   : > { %v612_v58 = vrot.slane %v529_v14, 1  ;;  %v1077_v3 = vrot.slane %v4690_v8, 2  ;;  %v1070_v44 = vrot.slane %v998_v32, 2  ;;  %v611_v53 = vrot.slane %v4674_v23, 1 }
 0x1c7   : > { %v718_v20 = vrot.slane %v529_v14, 2  ;;  %v1107_v62 = vrot.slane %v4690_v8, 3  ;;  %v1206_v46 = vsel %vm1202_vm5, %v998_v32, %v1040_v17  ;;  %v803_v34 = vmax.f32 %v697_v52, %v739_v12 }
 0x1c8   : > { %v1014_v0 = vmax.f32 %v908_v2, %v952_v54  ;;  %v717_v51 = vrot.slane %v4674_v23, 2  ;;  %v613_v57 = vsel %vm598_vm1, %v611_v53, %v612_v58  ;;  %v683_v9 = vmax.f32 %v529_v14, %v612_v58 }
 0x1c9   : > { %v824_v25 = vrot.slane %v529_v14, 3  ;;  %v1252_v18 = vsel %vm916_vm4, %v1237_v40, %v1144_v4  ;;  %v1213_v33 = vsel %vm1202_vm5, %v4690_v8, %v1047_v5  ;;  %v999_v1 = vmax.f32 %v893_v60, %v927_v16 }
 0x1ca   : > { %v682_v19 = vmax.f32 %v4674_v23, %v613_v57  ;;  %v1222_v38 = vsel %vm1218_vm6, %v1206_v46, %v1070_v44  ;;  %v823_v39 = vrot.slane %v4674_v23, 3  ;;  %v719_v12 = vsel %vm704_vm2, %v717_v51, %v718_v20  ;;  %v4731_v46 = vpop.trf.xlu1 }
 0x1cb   : > { %v789_v15 = vmax.f32 %v683_v9, %v718_v20  ;;  %v1100_v17 = vrot.slane %v998_v32, 3  ;;  %v1048_v52 = vrot.slane %v1014_v0, 1  ;;  %v930_v54 = vrot.slane %v529_v14, 4 }
 0x1cc   : > { %v788_v2 = vmax.f32 %v682_v19, %v719_v12  ;;  %v909_v58 = vmax.f32 %v803_v34, %v845_v13  ;;  %v929_v4 = vrot.slane %v4674_v23, 4  ;;  %v825_v40 = vsel %vm810_vm3, %v823_v39, %v824_v25 }
 0x1cd   : > { %v895_v8 = vmax.f32 %v789_v15, %v824_v25  ;;  %v1174_v16 = vrot.slane %v4651_v11, 5  ;;  %v1229_v5 = vsel %vm1218_vm6, %v1213_v33, %v1077_v3  ;;  %v1238_v60 = vsel %vm1234_vm7, %v1222_v38, %v1100_v17 }
 0x1ce   : > { %v894_v44 = vmax.f32 %v788_v2, %v825_v40  ;;  %v4729_v53 = vsel %vm810_vm3, %v1259_v21, %v1181_v24  ;;  %v1145_v32 = vrot.slane %v999_v1, 4  ;;  %v1078_v20 = vrot.slane %v1014_v0, 2  ;;  %v561_v17 = vpop.trf.xlu1 }
 0x1cf   : > { %6744 = vst [vmem:[#allocation35_spill] sm:$0xff] %v4729_v53  ;;  %v931_v13 = vsel %vm916_vm4, %v929_v4, %v930_v54  ;;  %v4735_v23 = vsel %vm810_vm3, %v1252_v18, %v1174_v16  ;;  %v1152_v14 = vrot.slane %v4703_v59, 4  ;;  %v1214_v11 = vsel %vm1202_vm5, %v1014_v0, %v1048_v52 }
 0x1d0   : > { %v1000_v3 = vmax.f32 %v894_v44, %v931_v13  ;;  %v1245_v34 = vsel %vm1234_vm7, %v1229_v5, %v1107_v62  ;;  %v1253_v51 = vsel %vm916_vm4, %v1238_v60, %v1145_v32  ;;  %v1015_v24 = vmax.f32 %v909_v58, %v951_v22 }
 0x1d1   : > { %v1001_v21 = vmax.f32 %v895_v8, %v930_v54  ;;  %v1175_v57 = vrot.slane %v999_v1, 5  ;;  %v1108_v9 = vrot.slane %v1014_v0, 3  ;;  %v1284_v18 = vmax.f32 %v4693_v43, %v4729_v53 }
 0x1d2   : > { %v1041_v25 = vrot.slane %v1000_v3, 1  ;;  %v1071_v33 = vrot.slane %v1000_v3, 2  ;;  %v1182_v19 = vrot.slane %v4703_v59, 5  ;;  %v1230_v38 = vsel %vm1218_vm6, %v1214_v11, %v1078_v20  ;;  %v4784_v20 = vpop.trf.xlu0 }
 0x1d3   : > { %v4749_v62 = vadd.f32 %v4441_v6, %v4642_v45  ;;  %v1286_v35 = vmax.f32 %v1280_v50, %v4735_v23  ;;  %v4756_v22 = vsel %vm810_vm3, %v1253_v51, %v1175_v57  ;;  %v1101_v0 = vrot.slane %v1000_v3, 3 }
 0x1d4   : > { %v1207_v1 = vsel %vm1202_vm5, %v1000_v3, %v1041_v25  ;;  %v1260_v39 = vsel %vm916_vm4, %v1245_v34, %v1152_v14  ;;  %v1153_v59 = vrot.slane %v1015_v24, 4  ;;  %v1146_v12 = vrot.slane %v1001_v21, 4 }
 0x1d5   : > { %6745 = vst [vmem:[#allocation36_spill] sm:$0xff] %v4749_v62  ;;  %v1223_v15 = vsel %vm1218_vm6, %v1207_v1, %v1071_v33  ;;  %v1246_v45 = vsel %vm1234_vm7, %v1230_v38, %v1108_v9  ;;  %v635_v52 = vrot.slane %v4731_v46, 1  ;;  %v1176_v2 = vrot.slane %v1001_v21, 5 }
 0x1d6   : > { %v1239_v7 = vsel %vm1234_vm7, %v1223_v15, %v1101_v0  ;;  %v1292_v47 = vmax.f32 %v1286_v35, %v4756_v22  ;;  %v741_v50 = vrot.slane %v4731_v46, 2  ;;  %v4769_v58 = vrot.slane %v4428_v61, %v4357_v31  ;;  %v4813_v15 = vpop.trf.xlu1 }
 0x1d7   : > { %v1254_v54 = vsel %vm916_vm4, %v1239_v7, %v1146_v12  ;;  %v847_v4 = vrot.slane %v4731_v46, 3  ;;  %v953_v40 = vrot.slane %v4731_v46, 4  ;;  %v636_v16 = vrot.slane %v561_v17, 1 }
 0x1d8   : > { %6746 = vst [vmem:[#allocation37_spill] sm:$0xff] %v4769_v58  ;;  %v4774_v8 = vsel %vm810_vm3, %v1254_v54, %v1176_v2  ;;  %v1183_v5 = vrot.slane %v1015_v24, 5  ;;  %v1261_v60 = vsel %vm916_vm4, %v1246_v45, %v1153_v59  ;;  %v4782_v32 = vrot.slane %v4428_v61, %v4366_v42  ;;  %v4819_v2 = vpop.trf.xlu0 }
 0x1d9   : > { %v4778_v44 = vmax.f32 %v1292_v47, %v4774_v8  ;;  %v637_v13 = vsel %vm598_vm1, %v635_v52, %v636_v16  ;;  %v699_v14 = vmax.f32 %v561_v17, %v636_v16  ;;  %v742_v11 = vrot.slane %v561_v17, 2 }
 0x1da   : > { %6747 = vst [vmem:[#allocation38_spill] sm:$0xff] %v4782_v32  ;;  %v848_v3 = vrot.slane %v561_v17, 3  ;;  %v4788_v34 = vsel %vm810_vm3, %v1260_v39, %v1182_v19  ;;  %v2023_v24 = vmul.f32 0.0, %v4769_v58  ;;  %v698_v21 = vmax.f32 %v4731_v46, %v637_v13  ;;  %v4806_v46 = vld [vmem:[%s6527_s3 + $0x20] sm:$0xff] }
 0x1db   : > { %v4791_v51 = vmul.f32 0.70710677, %v4778_v44  ;;  %v743_v57 = vsel %vm704_vm2, %v741_v50, %v742_v11  ;;  %v805_v9 = vmax.f32 %v699_v14, %v742_v11  ;;  %v954_v33 = vrot.slane %v561_v17, 4 }
 0x1dc   : > { %v849_v25 = vsel %vm810_vm3, %v847_v4, %v848_v3  ;;  %v4798_v38 = vsel %vm810_vm3, %v1261_v60, %v1183_v5  ;;  %v2053_v19 = vmul.f32 0.0, %v4782_v32  ;;  %v804_v0 = vmax.f32 %v698_v21, %v743_v57 }
 0x1dd   : > { %v1328_v35 = vand.u32 2147483647, %v4791_v51  ;;  %v1290_v1 = vmax.f32 %v1284_v18, %v4788_v34  ;;  %v4810_v39 = vrot.slane %v4428_v61, %v4370_v55  ;;  %v911_v59 = vmax.f32 %v805_v9, %v848_v3 }
 0x1de   : > { %v955_v12 = vsel %vm916_vm4, %v953_v40, %v954_v33  ;;  %v910_v52 = vmax.f32 %v804_v0, %v849_v25  ;;  %v4822_v47 = vrot.slane %v2023_v24, 3  ;;  %v4825_v4 = vrot.slane %v2053_v19, 6 }
 0x1df   : > { %6748 = vst [vmem:[#allocation39_spill] sm:$0xff] %v4810_v39  ;;  %v1334_v45 = vmul.f32 0.3275911, %v1328_v35  ;;  %v1296_v7 = vmax.f32 %v1290_v1, %v4798_v38  ;;  %v2086_v61 = vmul.f32 0.0, %v4810_v39  ;;  %v1017_v50 = vmax.f32 %v911_v59, %v954_v33  ;;  %v4841_v33 = vpop.trf.xlu1 }
 0x1e0   : > { %6749 = vst [vmem:[#allocation40_spill] sm:$0xff] %v4822_v47  ;;  %6750 = vst [vmem:[#allocation41_spill] sm:$0xff] %v4825_v4  ;;  %v4829_v40 = vrot.slane %v4806_v46, %v4342_v26  ;;  %v1016_v16 = vmax.f32 %v910_v52, %v955_v12  ;;  %v4833_v5 = vrot.slane %v4806_v46, %v4345_v27  ;;  %v614_v60 = vrot.slane %v4784_v20, 1 }
 0x1e1   : > { %v1340_v54 = vadd.f32 1.0, %v1334_v45  ;;  %v720_v13 = vrot.slane %v4784_v20, 2  ;;  %v615_v14 = vrot.slane %v4819_v2, 1  ;;  %v826_v24 = vrot.slane %v4784_v20, 3 }
 0x1e2   : > { %6751 = vst [vmem:[#allocation42_spill] sm:$0xff] %v4829_v40  ;;  %6752 = vst [vmem:[#allocation43_spill] sm:$0xff] %v4833_v5  ;;  %v1049_v11 = vrot.slane %v1016_v16, 1  ;;  %v1079_v3 = vrot.slane %v1016_v16, 2  ;;  %v1109_v21 = vrot.slane %v1016_v16, 3  ;;  %v1154_v57 = vrot.slane %v1017_v50, 4 }
 0x1e3   : > { %3958 = vrcp.f32 %v1340_v54  ;;  %v616_v9 = vsel %vm598_vm1, %v614_v60, %v615_v14  ;;  %v721_v25 = vrot.slane %v4819_v2, 2  ;;  %v1184_v19 = vrot.slane %v1017_v50, 5 }
 0x1e4   : > { %v1215_v0 = vsel %vm1202_vm5, %v1016_v16, %v1049_v11  ;;  %v684_v1 = vmax.f32 %v4784_v20, %v616_v9  ;;  %v827_v59 = vrot.slane %v4819_v2, 3  ;;  %v638_v45 = vrot.slane %v4813_v15, 1 }
 0x1e5   : > { %v1231_v12 = vsel %vm1218_vm6, %v1215_v0, %v1079_v3  ;;  %v722_v52 = vsel %vm704_vm2, %v720_v13, %v721_v25  ;;  %v933_v54 = vrot.slane %v4819_v2, 4  ;;  %v1406_v60 = vsub.f32 0.0, %v1328_v35 }
 0x1e6   : > { %v1247_v18 = vsel %vm1234_vm7, %v1231_v12, %v1109_v21  ;;  %v790_v17 = vmax.f32 %v684_v1, %v722_v52  ;;  %v639_v50 = vrot.slane %v4841_v33, 1  ;;  %v932_v11 = vrot.slane %v4784_v20, 4 }
 0x1e7   : > { %v1262_v16 = vsel %vm916_vm4, %v1247_v18, %v1154_v57  ;;  %v685_v9 = vmax.f32 %v4819_v2, %v615_v14  ;;  %v828_v3 = vsel %vm810_vm3, %v826_v24, %v827_v59  ;;  %v4856_v0 = vrot.slane %v2086_v61, 1 }
 0x1e8   : > { %v4859_v13 = vsel %vm810_vm3, %v1262_v16, %v1184_v19  ;;  %v744_v4 = vrot.slane %v4813_v15, 2  ;;  %v896_v47 = vmax.f32 %v790_v17, %v828_v3  ;;  %v934_v1 = vsel %vm916_vm4, %v932_v11, %v933_v54 }
 0x1e9   : > { %6753 = vst [vmem:[#allocation44_spill] sm:$0xff] %v4856_v0  ;;  %v4863_v21 = vmax.f32 %v1296_v7, %v4859_v13  ;;  %v640_v18 = vsel %vm598_vm1, %v638_v45, %v639_v50  ;;  %v745_v20 = vrot.slane %v4841_v33, 2  ;;  %v1412_v2 = vmul.f32 %v1406_v60, %v1328_v35 }
 0x1ea   : > { %v2110_v14 = vmul.f32 0.0, %v4829_v40  ;;  %v2140_v61 = vmul.f32 0.0, %v4833_v5  ;;  %v1002_v24 = vmax.f32 %v896_v47, %v934_v1  ;;  %v2168_v57 = vrot.slane %v4806_v46, %v4348_v28 }
 0x1eb   : > { %v2182_v17 = vrot.slane %v4806_v46, %v4351_v29  ;;  %v4875_v7 = vmul.f32 0.70710677, %v4863_v21  ;;  %v791_v19 = vmax.f32 %v685_v9, %v721_v25  ;;  %v2193_v12 = vrot.slane %v4806_v46, %v4354_v30 }
 0x1ec   : > { %v850_v35 = vrot.slane %v4813_v15, 3  ;;  %v700_v45 = vmax.f32 %v4813_v15, %v640_v18  ;;  %v701_v52 = vmax.f32 %v4841_v33, %v639_v50  ;;  %v1042_v60 = vrot.slane %v1002_v24, 1 }
 0x1ed   : > { %v1332_v47 = vand.u32 2147483647, %v4875_v7  ;;  %v746_v16 = vsel %vm704_vm2, %v744_v4, %v745_v20  ;;  %v851_v11 = vrot.slane %v4841_v33, 3  ;;  %v1418_v3 = vmul.f32 1.442695, %v1412_v2 }
 0x1ee   : > { %v4885_v1 = vrot.slane %v2110_v14, 4  ;;  %v2208_v25 = vrot.slane %v4806_v46, %v4357_v31  ;;  %v2223_v9 = vrot.slane %v4806_v46, %v4366_v42  ;;  %v4893_v18 = vrot.slane %v2140_v61, 7 }
 0x1ef   : > { %v1338_v50 = vmul.f32 0.3275911, %v1332_v47  ;;  %v956_v53 = vrot.slane %v4813_v15, 4  ;;  %v897_v43 = vmax.f32 %v791_v19, %v827_v59  ;;  %v1072_v5 = vrot.slane %v1002_v24, 2 }
 0x1f0   : > { %6754 = vst [vmem:[#allocation45_spill] sm:$0xff] %v4885_v1  ;;  %v4891_v0 = vpop.eup %3958  ;;  %6755 = vst [vmem:[#allocation46_spill] sm:$0xff] %v4893_v18  ;;  %v806_v2 = vmax.f32 %v700_v45, %v746_v16  ;;  %v807_v14 = vmax.f32 %v701_v52, %v745_v20  ;;  %v1208_v40 = vsel %vm1202_vm5, %v1002_v24, %v1042_v60  ;;  %v957_v32 = vrot.slane %v4841_v33, 4 }
 0x1f1   : > { %v1352_v4 = vmul.f32 1.0614054, %v4891_v0  ;;  %v1344_v1 = vadd.f32 1.0, %v1338_v50  ;;  %v852_v39 = vsel %vm810_vm3, %v850_v35, %v851_v11  ;;  %3960 = vpow2.f32 %v1418_v3  ;;  %v4905_v3 = vpop.trf.xlu0 }
 0x1f2   : > { %v2169_v61 = vmul.f32 0.0, %v2168_v57  ;;  %v2237_v18 = vrot.slane %v4806_v46, %v4370_v55  ;;  %v2194_v15 = vmul.f32 0.0, %v2193_v12  ;;  %v2209_v59 = vmul.f32 0.0, %v2208_v25 }
 0x1f3   : > { %v1358_v58 = vadd.f32 -1.4531521, %v1352_v4  ;;  %v2224_v19 = vmul.f32 0.0, %v2223_v9  ;;  %3962 = vrcp.f32 %v1344_v1  ;;  %v1003_v20 = vmax.f32 %v897_v43, %v933_v54  ;;  %v4937_v9 = vpop.trf.xlu1 }
 0x1f4   : > { %v1224_v52 = vsel %vm1218_vm6, %v1208_v40, %v1072_v5  ;;  %v912_v60 = vmax.f32 %v806_v2, %v852_v39  ;;  %v1410_v16 = vsub.f32 0.0, %v1332_v47  ;;  %v1102_v35 = vrot.slane %v1002_v24, 3 }
 0x1f5   : > { %v1364_v45 = vmul.f32 %v4891_v0, %v1358_v58  ;;  %v913_v50 = vmax.f32 %v807_v14, %v851_v11  ;;  %v958_v33 = vsel %vm916_vm4, %v956_v53, %v957_v32  ;;  %v4907_v4 = vrot.slane %v2169_v61, 2  ;;  %v4949_v14 = vpop.trf.xlu0 }
 0x1f6   : > { %v4909_v46 = vmul.f32 0.0, %v2182_v17  ;;  %v2238_v12 = vmul.f32 0.0, %v2237_v18  ;;  %v6758_v43 = vmax.f32 %v4735_v23, %v4756_v22  ;;  %v4917_v39 = vrot.slane %v2194_v15, 3 }
 0x1f7   : > { %v1370_v57 = vadd.f32 1.4214138, %v1364_v45  ;;  %6756 = vst [vmem:[#allocation47_spill] sm:$0xff] %v4907_v4  ;;  %v4919_v40 = vrot.slane %v2209_v59, 6  ;;  %v1240_v53 = vsel %vm1234_vm7, %v1224_v52, %v1102_v35  ;;  %vm1316_vm8 = vcmp.ge.f32.partialorder %v4791_v51, 0.0 }
 0x1f8   : > { %6757 = vst [vmem:[#allocation48_spill] sm:$0xff] %v4909_v46  ;;  %v4915_v58 = vmax.f32 %v6758_v43, %v4774_v8  ;;  %6759 = vst [vmem:[#allocation49_spill] sm:$0xff] %v4917_v39  ;;  %v1147_v54 = vrot.slane %v1003_v20, 4  ;;  %v4924_v24 = vmax.f32 %v912_v60, %v958_v33  ;;  %v4926_v17 = vrot.slane %v2224_v19, 1  ;;  %v6773_v39 = vld [vmem:[#allocation18_spill] sm:$0xff] }
 0x1f9   : > { %6760 = vst [vmem:[#allocation50_spill] sm:$0xff] %v4919_v40  ;;  %v1376_v5 = vmul.f32 %v4891_v0, %v1370_v57  ;;  %vm1320_vm9 = vcmp.ge.f32.partialorder %v4875_v7, 0.0  ;;  %v1416_v23 = vmul.f32 %v1410_v16, %v1332_v47  ;;  %v4929_v22 = vmax.f32 %v913_v50, %v957_v32 }
 0x1fa   : > { %6761 = vst [vmem:[#allocation51_spill] sm:$0xff] %v4926_v17  ;;  %v4932_v11 = vmul.f32 0.5, %v4778_v44  ;;  %v4934_v25 = vrot.slane %v2238_v12, 4  ;;  %v1255_v51 = vsel %vm916_vm4, %v1240_v53, %v1147_v54  ;;  %v6588_v18 = vmov -1.0  }
 0x1fb   : > { %v1382_v1 = vadd.f32 -0.28449672, %v1376_v5  ;;  %v1322_v2 = vsel %vm1316_vm8, 1.0, %v6588_v18  ;;  %v6763_v7 = vmax.f32 %v4788_v34, %v4798_v38  ;;  %v4947_v32 = vmul.f32 0.5, %v4863_v21 }
 0x1fc   : > { %6762 = vst [vmem:[#allocation52_spill] sm:$0xff] %v4934_v25  ;;  %v1177_v44 = vrot.slane %v1003_v20, 5  ;;  %v4953_v15 = vsel %vm1320_vm9, 1.0, %v6588_v18  ;;  %v1050_v59 = vrot.slane %v4924_v24, 1  ;;  %v617_v19 = vrot.slane %v4905_v3, 1 }
 0x1fd   : > { %v4944_v47 = vmax.f32 %v6763_v7, %v4859_v13  ;;  %v1388_v61 = vmul.f32 %v4891_v0, %v1382_v1  ;;  %v1426_v45 = vmul.f32 1.442695, %v1416_v23  ;;  %v1080_v52 = vrot.slane %v4924_v24, 2  ;;  %v4976_v1 = vpop.trf.xlu1 }
 0x1fe   : > { %v4958_v38 = vsel %vm810_vm3, %v1255_v51, %v1177_v44  ;;  %v1110_v60 = vrot.slane %v4924_v24, 3  ;;  %v618_v16 = vrot.slane %v4949_v14, 1  ;;  %v3961_v35 = vpop.eup %3960  ;;  %v723_v50 = vrot.slane %v4905_v3, 2 }
 0x1ff   : > { %v1394_v20 = vadd.f32 0.2548296, %v1388_v61  ;;  %v829_v33 = vrot.slane %v4905_v3, 3  ;;  %v935_v57 = vrot.slane %v4905_v3, 4  ;;  %v724_v12 = vrot.slane %v4949_v14, 2 }
 0x200   : > { %v4969_v43 = vpop.eup %3962  ;;  %v1216_v5 = vsel %vm1202_vm5, %v4924_v24, %v1050_v59  ;;  %v619_v54 = vsel %vm598_vm1, %v617_v19, %v618_v16  ;;  %v830_v23 = vrot.slane %v4949_v14, 3  ;;  %v641_v7 = vrot.slane %v4937_v9, 1 }
 0x201   : > { %v1400_v53 = vmul.f32 %v4891_v0, %v1394_v20  ;;  %v1356_v51 = vmul.f32 1.0614054, %v4969_v43  ;;  %v686_v44 = vmax.f32 %v4905_v3, %v619_v54  ;;  %v687_v61 = vmax.f32 %v4949_v14, %v618_v16 }
 0x202   : > { %v747_v0 = vrot.slane %v4937_v9, 2  ;;  %v725_v20 = vsel %vm704_vm2, %v723_v50, %v724_v12  ;;  %v936_v24 = vrot.slane %v4949_v14, 4  ;;  %v642_v13 = vrot.slane %v4976_v1, 1 }
 0x203   : > { %v1430_v18 = vmul.f32 %v3961_v35, %v1400_v53  ;;  %v1362_v59 = vadd.f32 -1.4531521, %v1356_v51  ;;  %v792_v19 = vmax.f32 %v686_v44, %v725_v20  ;;  %v793_v21 = vmax.f32 %v687_v61, %v724_v12 }
 0x204   : > { %v1232_v17 = vsel %vm1218_vm6, %v1216_v5, %v1080_v52  ;;  %v831_v40 = vsel %vm810_vm3, %v829_v33, %v830_v23  ;;  %v748_v3 = vrot.slane %v4976_v1, 2  ;;  %v853_v35 = vrot.slane %v4937_v9, 3 }
 0x205   : > { %v1436_v25 = vsub.f32 1.0, %v1430_v18  ;;  %v1368_v16 = vmul.f32 %v4969_v43, %v1362_v59  ;;  %v898_v53 = vmax.f32 %v792_v19, %v831_v40  ;;  %v643_v50 = vsel %vm598_vm1, %v641_v7, %v642_v13 }
 0x206   : > { %v899_v54 = vmax.f32 %v793_v21, %v830_v23  ;;  %v937_v12 = vsel %vm916_vm4, %v935_v57, %v936_v24  ;;  %v702_v51 = vmax.f32 %v4937_v9, %v643_v50  ;;  %v749_v52 = vsel %vm704_vm2, %v747_v0, %v748_v3 }
 0x207   : > { %v1442_v14 = vmul.f32 %v1436_v25, %v1322_v2  ;;  %v1374_v18 = vadd.f32 1.4214138, %v1368_v16  ;;  %v1004_v44 = vmax.f32 %v898_v53, %v937_v12  ;;  %v854_v33 = vrot.slane %v4976_v1, 3  ;;  %v5003_v2 = vld [vmem:[%s6527_s3 + $0x28] sm:$0xff] }
 0x208   : > { %3964 = vpow2.f32 %v1426_v45  ;;  %v959_v40 = vrot.slane %v4937_v9, 4  ;;  %v703_v23 = vmax.f32 %v4976_v1, %v642_v13  ;;  %v1248_v45 = vsel %vm1234_vm7, %v1232_v17, %v1110_v60 }
 0x209   : > { %v1448_v5 = vadd.f32 1.0, %v1442_v14  ;;  %v1380_v25 = vmul.f32 %v4969_v43, %v1374_v18  ;;  %v1043_v21 = vrot.slane %v1004_v44, 1  ;;  %v1073_v57 = vrot.slane %v1004_v44, 2 }
 0x20a   : > { %v1005_v0 = vmax.f32 %v899_v54, %v936_v24  ;;  %v808_v20 = vmax.f32 %v702_v51, %v749_v52  ;;  %v855_v19 = vsel %vm810_vm3, %v853_v35, %v854_v33  ;;  %v960_v16 = vrot.slane %v4976_v1, 4 }
 0x20b   : > { %v1454_v7 = vmul.f32 %v1448_v5, %v4932_v11  ;;  %v1386_v59 = vadd.f32 -0.28449672, %v1380_v25  ;;  %v1209_v9 = vsel %vm1202_vm5, %v1004_v44, %v1043_v21  ;;  %v2252_v50 = vrot.slane %v5003_v2, %v4342_v26 }
 0x20c   : > { %v1103_v14 = vrot.slane %v1004_v44, 3  ;;  %v1225_v13 = vsel %vm1218_vm6, %v1209_v9, %v1073_v57  ;;  %v1293_v11 = vmax.f32 %v4915_v58, %v4958_v38  ;;  %v6764_v17 = vrot.slane %v4929_v22, 4 }
 0x20d   : > { %v1474_v53 = vrot.slane %v1454_v7, 7  ;;  %v2267_v24 = vrot.slane %v5003_v2, %v4345_v27  ;;  %v809_v35 = vmax.f32 %v703_v23, %v748_v3  ;;  %v1392_v54 = vmul.f32 %v4969_v43, %v1386_v59 }
 0x20e   : > { %v1263_v60 = vsel %vm916_vm4, %v1248_v45, %v6764_v17  ;;  %v1241_v12 = vsel %vm1234_vm7, %v1225_v13, %v1103_v14  ;;  %v914_v51 = vmax.f32 %v808_v20, %v855_v19  ;;  %v2281_v58 = vrot.slane %v5003_v2, %v4348_v28 }
 0x20f   : > { %v1486_v1 = vsel %vm1202_vm5, 0.0, %v1474_v53  ;;  %v1148_v44 = vrot.slane %v1005_v0, 4  ;;  %v961_v52 = vsel %vm916_vm4, %v959_v40, %v960_v16  ;;  %v6765_v3 = vrot.slane %v4929_v22, 5 }
 0x210   : > { %v5025_v18 = vsel %vm598_vm1, %v1486_v1, 0.0  ;;  %v2253_v21 = vmul.f32 0.0, %v2252_v50  ;;  %v1178_v57 = vrot.slane %v1005_v0, 5  ;;  %v915_v20 = vmax.f32 %v809_v35, %v854_v33 }
 0x211   : > { %v1636_v5 = vmul.f32 %v4390_v36, %v5025_v18  ;;  %v5035_v25 = vsel %vm810_vm3, %v1263_v60, %v6765_v3  ;;  %v1664_v23 = vmul.f32 %v4393_v37, %v5025_v18  ;;  %v1793_v7 = vmul.f32 %v4433_v63, %v5025_v18 }
 0x212   : > { %v1256_v45 = vsel %vm916_vm4, %v1241_v12, %v1148_v44  ;;  %v1836_v59 = vmul.f32 %v4448_v10, %v5025_v18  ;;  %v1398_v9 = vadd.f32 0.2548296, %v1392_v54  ;;  %v1020_v22 = vmax.f32 %v914_v51, %v961_v52 }
 0x213   : > { %v1645_v40 = vrot.slane %v1636_v5, 3  ;;  %v1807_v19 = vrot.slane %v1793_v7, 3  ;;  %v2268_v53 = vmul.f32 0.0, %v2267_v24  ;;  %v2292_v0 = vrot.slane %v5003_v2, %v4351_v29  ;;  %v5073_v7 = vpop.trf.xlu0 }
 0x214   : > { %v2307_v50 = vrot.slane %v5003_v2, %v4354_v30  ;;  %v1297_v33 = vmax.f32 %v4944_v47, %v5035_v25  ;;  %v5052_v13 = vmul.f32 0.0, %v2281_v58  ;;  %v5055_v17 = vsel %vm810_vm3, %v1256_v45, %v1178_v57  ;;  %v6770_v45 = vld [vmem:[#allocation21_spill] sm:$0xff] }
 0x215   : > { %v1646_v14 = vsel %vm810_vm3, %v4411_v49, %v1645_v40  ;;  %v3965_v60 = vpop.eup %3964  ;;  %v1673_v35 = vrot.slane %v1664_v23, 6  ;;  %v1808_v24 = vsel %vm810_vm3, %v4499_v56, %v1807_v19  ;;  %v5059_v1 = vrot.slane %v2253_v21, 7  ;;  %v6768_v21 = vld [vmem:[#allocation17_spill] sm:$0xff] }
 0x216   : > { %6766 = vst [vmem:[#allocation53_spill] sm:$0xff] %v5052_v13  ;;  %v1021_v54 = vmax.f32 %v915_v20, %v960_v16  ;;  %v1850_v12 = vrot.slane %v1836_v59, 6  ;;  %v1404_v51 = vmul.f32 %v4969_v43, %v1398_v9  ;;  %v1051_v44 = vrot.slane %v1020_v22, 1  ;;  %v6769_v16 = vld [vmem:[#allocation27_spill] sm:$0xff]  ;;  %v6771_v40 = vld [vmem:[#allocation25_spill] sm:$0xff] }
 0x217   : > { %6767 = vst [vmem:[#allocation54_spill] sm:$0xff] %v5059_v1  ;;  %v1081_v52 = vrot.slane %v1020_v22, 2  ;;  %v1656_v47 = vadd.f32 %v1646_v14, %v4409_v48  ;;  %v1825_v58 = vadd.f32 %v1808_v24, %v4749_v62  ;;  %v5065_v5 = vmax.f32 %v1293_v11, %v5055_v17  ;;  %v6772_v19 = vld [vmem:[#allocation29_spill] sm:$0xff] }
 0x218   : > { %v1111_v3 = vrot.slane %v1020_v22, 3  ;;  %v1692_v25 = vmul.f32 %v4397_v41, %v5025_v18  ;;  %v1716_v57 = vmul.f32 %v6768_v21, %v5025_v18  ;;  %v1878_v23 = vmul.f32 %v6769_v16, %v5025_v18 }
 0x219   : > { %v1434_v43 = vmul.f32 %v3965_v60, %v1404_v51  ;;  %v1674_v20 = vsel %vm1218_vm6, %v6770_v45, %v1673_v35  ;;  %v1912_v11 = vmul.f32 %v6771_v40, %v5025_v18  ;;  %v5080_v59 = vmul.f32 0.70710677, %v5065_v5 }
 0x21a   : > { %v1156_v9 = vrot.slane %v1021_v54, 4  ;;  %v1851_v14 = vsel %vm1218_vm6, %v6772_v19, %v1850_v12  ;;  %v1186_v61 = vrot.slane %v1021_v54, 5  ;;  %v1217_v13 = vsel %vm1202_vm5, %v1020_v22, %v1051_v44 }
 0x21b   : > { %v1440_v24 = vsub.f32 1.0, %v1434_v43  ;;  %v1684_v60 = vadd.f32 %v1674_v20, %v1656_v47  ;;  %v1868_v51 = vadd.f32 %v1851_v14, %v1825_v58  ;;  %v1329_v1 = vand.u32 2147483647, %v5080_v59  ;;  %v6774_v47 = vld [vmem:[#allocation28_spill] sm:$0xff] }
 0x21c   : > { %v1233_v35 = vsel %vm1218_vm6, %v1217_v13, %v1081_v52  ;;  %v1744_v46 = vmul.f32 %v6773_v39, %v5025_v18  ;;  %v2293_v62 = vmul.f32 0.0, %v2292_v0  ;;  %v1700_v48 = vrot.slane %v1692_v25, 1  ;;  %v5095_v52 = vpop.trf.xlu0 }
 0x21d   : > { %v1446_v4 = vmul.f32 %v1440_v24, %v4953_v15  ;;  %v1249_v45 = vsel %vm1234_vm7, %v1233_v35, %v1111_v3  ;;  %v1890_v12 = vrot.slane %v1878_v23, 1  ;;  %v1335_v43 = vmul.f32 0.3275911, %v1329_v1  ;;  %v3839_v3 = vld [vmem:[%s6527_s3 + $0x30] ss:$0 sm:$0xff] }
 0x21e   : > { %v1264_v54 = vsel %vm916_vm4, %v1249_v45, %v1156_v9  ;;  %v1725_v22 = vrot.slane %v1716_v57, 4  ;;  %v1926_v44 = vrot.slane %v1912_v11, 4  ;;  %v1955_v58 = vmul.f32 %v6774_v47, %v5025_v18  ;;  %v6776_v18 = vld [vmem:[#allocation22_spill] sm:$0xff] }
 0x21f   : > { %v1279_v13 = vsel %vm810_vm3, %v1264_v54, %v1186_v61  ;;  %v1708_v20 = vadd.f32 %v1700_v48, %v1684_v60  ;;  %v1902_v14 = vadd.f32 %v1890_v12, %v1868_v51  ;;  %v2308_v15 = vmul.f32 0.0, %v2307_v50 }
 0x220   : > { %v1341_v0 = vadd.f32 1.0, %v1335_v43  ;;  %v1452_v24 = vadd.f32 1.0, %v1446_v4  ;;  %v5100_v25 = vrot.slane %v2268_v53, 2  ;;  %v2322_v57 = vrot.slane %v5003_v2, %v4357_v31  ;;  %v6777_v53 = vld [vmem:[#allocation30_spill] sm:$0xff] }
 0x221   : > { %v5104_v23 = vmax.f32 %v1297_v33, %v1279_v13  ;;  %v2336_v61 = vrot.slane %v5003_v2, %v4366_v42  ;;  %v2351_v48 = vrot.slane %v5003_v2, %v4370_v55  ;;  %v621_v4 = vrot.slane %v5095_v52, 1 }
 0x222   : > { %6775 = vst [vmem:[#allocation27_spill] sm:$0xff] %v5100_v25  ;;  %3966 = vrcp.f32 %v1341_v0  ;;  %v1726_v50 = vsel %vm916_vm4, %v1725_v22, %v6776_v18  ;;  %v1753_v45 = vrot.slane %v1744_v46, 7  ;;  %v1928_v11 = vsel %vm916_vm4, %v1926_v44, %v6777_v53 }
 0x223   : > { %v1969_v9 = vrot.slane %v1955_v58, 7  ;;  %v1736_v60 = vadd.f32 %v1726_v50, %v1708_v20  ;;  %v1945_v33 = vadd.f32 %v1928_v11, %v1902_v14  ;;  %v2367_v51 = vmul.f32 0.0, %v3839_v3  ;;  %v6780_v58 = vld [vmem:[#allocation23_spill] sm:$0xff]  ;;  %v6781_v14 = vld [vmem:[#allocation32_spill] sm:$0xff] }
 0x224   : > { %v620_v35 = vrot.slane %v5073_v7, 1  ;;  %v1458_v12 = vmul.f32 %v1452_v24, %v4947_v32  ;;  %v5117_v43 = vrot.slane %v2293_v62, 3  ;;  %v2323_v2 = vmul.f32 0.0, %v2322_v57 }
 0x225   : > { %v1315_v54 = vmul.f32 0.70710677, %v5104_v23  ;;  %v5120_v13 = vrot.slane %v2308_v15, 6  ;;  %v1407_v22 = vsub.f32 0.0, %v1329_v1  ;;  %v689_v44 = vmax.f32 %v5095_v52, %v621_v4 }
 0x226   : > { %6778 = vst [vmem:[#allocation25_spill] sm:$0xff] %v5117_v43  ;;  %v622_v46 = vsel %vm598_vm1, %v620_v35, %v621_v4  ;;  %v1754_v20 = vsel %vm1202_vm5, %v1753_v45, %v6780_v58  ;;  %v1971_v0 = vsel %vm1202_vm5, %v1969_v9, %v6781_v14  ;;  %v2337_v3 = vmul.f32 0.0, %v2336_v61 }
 0x227   : > { %6779 = vst [vmem:[#allocation29_spill] sm:$0xff] %v5120_v13  ;;  %v2352_v32 = vmul.f32 0.0, %v2351_v48  ;;  %v1764_v62 = vadd.f32 %v1754_v20, %v1736_v60  ;;  %v1988_v24 = vadd.f32 %v1971_v0, %v1945_v33  ;;  %v5128_v57 = vrot.slane %v2367_v51, 2  ;;  %v6787_v51 = vld [vmem:[#allocation26_spill] sm:$0xff] }
 0x228   : > { %v727_v15 = vrot.slane %v5095_v52, 2  ;;  %v1478_v50 = vrot.slane %v1458_v12, 7  ;;  %v5131_v11 = vrot.slane %v2323_v2, 1  ;;  %v5133_v35 = vand.u32 2147483647, %v1315_v54 }
 0x229   : > { %6782 = vst [vmem:[#allocation28_spill] sm:$0xff] %v5128_v57  ;;  %v688_v4 = vmax.f32 %v5073_v7, %v622_v46  ;;  %v1413_v13 = vmul.f32 %v1407_v22, %v1329_v1  ;;  %v726_v45 = vrot.slane %v5073_v7, 2  ;;  %v833_v61 = vrot.slane %v5095_v52, 3  ;;  %v6788_v1 = vld [vmem:[#allocation33_spill] sm:$0xff] }
 0x22a   : > { %6783 = vst [vmem:[#allocation22_spill] sm:$0xff] %v5131_v11  ;;  %v795_v43 = vmax.f32 %v689_v44, %v727_v15  ;;  %v5138_v48 = vrot.slane %v2337_v3, 4  ;;  %v5140_v9 = vrot.slane %v2352_v32, 7  ;;  %v6786_v60 = vmax.f32 %v4774_v8, %v4958_v38 }
 0x22b   : > { %vm1317_vm10 = vcmp.ge.f32.partialorder %v5080_v59, 0.0  ;;  %v1776_v12 = vadd.f32 %v6787_v51, %v1764_v62  ;;  %v2002_v2 = vadd.f32 %v6788_v1, %v1988_v24  ;;  %v832_v22 = vrot.slane %v5073_v7, 3  ;;  %v6797_v1 = vld [vmem:[#allocation43_spill] sm:$0xff] }
 0x22c   : > { %6784 = vst [vmem:[#allocation30_spill] sm:$0xff] %v5138_v48  ;;  %6785 = vst [vmem:[#allocation23_spill] sm:$0xff] %v5140_v9  ;;  %v5146_v33 = vmax.f32 %v6786_v60, %v5055_v17  ;;  %v728_v46 = vsel %vm704_vm2, %v726_v45, %v727_v15  ;;  %v1490_v44 = vsel %vm1202_vm5, 0.0, %v1478_v50  ;;  %v1339_v20 = vmul.f32 0.3275911, %v5133_v35 }
 0x22d   : > { %v938_v0 = vrot.slane %v5073_v7, 4  ;;  %v794_v3 = vmax.f32 %v688_v4, %v728_v46  ;;  %v1420_v8 = vmul.f32 1.442695, %v1413_v13  ;;  %v834_v38 = vsel %vm810_vm3, %v832_v22, %v833_v61  ;;  %v6791_v4 = vld [vmem:[#allocation31_spill] sm:$0xff] }
 0x22e   : > { %v901_v32 = vmax.f32 %v795_v43, %v833_v61  ;;  %v939_v59 = vrot.slane %v5095_v52, 4  ;;  %v5161_v24 = vmul.f32 0.5, %v5065_v5  ;;  %v6789_v60 = vmov -1.0  }
 0x22f   : > { %v5158_v62 = vpop.eup %3966  ;;  %v5164_v15 = vsel %vm1317_vm10, 1.0, %v6789_v60  ;;  %v1345_v50 = vadd.f32 1.0, %v1339_v20  ;;  %v900_v45 = vmax.f32 %v794_v3, %v834_v38  ;;  %v1496_v57 = vsel %vm598_vm1, %v1490_v44, 0.0 }
 0x230   : > { %v1353_v7 = vmul.f32 1.0614054, %v5158_v62  ;;  %vm1321_vm11 = vcmp.ge.f32.partialorder %v1315_v54, 0.0  ;;  %v940_v13 = vsel %vm916_vm4, %v938_v0, %v939_v59  ;;  %v5170_v43 = vadd.f32 %v4441_v6, %v1776_v12 }
 0x231   : > { %v5173_v52 = vmul.f32 0.5, %v5104_v23  ;;  %3968 = vrcp.f32 %v1345_v50  ;;  %v1006_v5 = vmax.f32 %v900_v45, %v940_v13  ;;  %v5176_v61 = vadd.f32 %v6791_v4, %v2002_v2  ;;  %v6794_v45 = vld [vmem:[#allocation38_spill] sm:$0xff] }
 0x232   : > { %6790 = vst [vmem:[#allocation32_spill] sm:$0xff] %v5170_v43  ;;  %v1359_v22 = vadd.f32 -1.4531521, %v1353_v7  ;;  %3970 = vpow2.f32 %v1420_v8  ;;  %v1007_v46 = vmax.f32 %v901_v32, %v939_v59  ;;  %v1797_v44 = vmul.f32 %v4433_v63, %v1496_v57  ;;  %v6793_v8 = vld [vmem:[#allocation37_spill] sm:$0xff]  ;;  %v6795_v43 = vld [vmem:[#allocation39_spill] sm:$0xff] }
 0x233   : > { %6792 = vst [vmem:[#allocation55_spill] sm:$0xff] %v5176_v61  ;;  %v5180_v54 = vsel %vm1321_vm11, 1.0, %v6789_v60  ;;  %v1044_v20 = vrot.slane %v1006_v5, 1  ;;  %v1074_v0 = vrot.slane %v1006_v5, 2  ;;  %v1840_v12 = vmul.f32 %v4448_v10, %v1496_v57 }
 0x234   : > { %v5184_v23 = vmul.f32 %v6769_v16, %v1496_v57  ;;  %v1917_v3 = vmul.f32 %v6771_v40, %v1496_v57  ;;  %v1365_v2 = vmul.f32 %v5158_v62, %v1359_v22  ;;  %v1960_v38 = vmul.f32 %v6774_v47, %v1496_v57 }
 0x235   : > { %v2025_v32 = vmul.f32 %v6793_v8, %v1496_v57  ;;  %v1104_v59 = vrot.slane %v1006_v5, 3  ;;  %v1210_v50 = vsel %vm1202_vm5, %v1006_v5, %v1044_v20  ;;  %v2055_v7 = vmul.f32 %v6794_v45, %v1496_v57  ;;  %v6798_v20 = vld [vmem:[#allocation34_spill] sm:$0xff] }
 0x236   : > { %v1371_v13 = vadd.f32 1.4214138, %v1365_v2  ;;  %v1149_v61 = vrot.slane %v1007_v46, 4  ;;  %v1226_v9 = vsel %vm1218_vm6, %v1210_v50, %v1074_v0  ;;  %v5194_v48 = vmul.f32 %v6795_v43, %v1496_v57  ;;  %v6796_v2 = vld [vmem:[#allocation42_spill] sm:$0xff] }
 0x237   : > { %v1411_v11 = vsub.f32 0.0, %v5133_v35  ;;  %v1179_v25 = vrot.slane %v1007_v46, 5  ;;  %v1242_v22 = vsel %vm1234_vm7, %v1226_v9, %v1104_v59  ;;  %v1815_v4 = vrot.slane %v1797_v44, 3 }
 0x238   : > { %v1858_v6 = vrot.slane %v1840_v12, 6  ;;  %v1377_v8 = vmul.f32 %v5158_v62, %v1371_v13  ;;  %v1257_v5 = vsel %vm916_vm4, %v1242_v22, %v1149_v61  ;;  %v2111_v45 = vmul.f32 %v6796_v2, %v1496_v57  ;;  %v5264_v61 = vld [vmem:[%s6529_s5 + $0x8] sm:$0xff] }
 0x239   : > { %v2141_v0 = vmul.f32 %v6797_v1, %v1496_v57  ;;  %v1272_v50 = vsel %vm810_vm3, %v1257_v5, %v1179_v25  ;;  %v1935_v43 = vrot.slane %v1917_v3, 4  ;;  %v1978_v44 = vrot.slane %v1960_v38, 7  ;;  %v6800_v38 = vld [vmem:[#allocation35_spill] sm:$0xff] }
 0x23a   : > { %v1383_v51 = vadd.f32 -0.28449672, %v1377_v8  ;;  %v1283_v46 = vmax.f32 %v5055_v17, %v1272_v50  ;;  %v1294_v9 = vmax.f32 %v5146_v33, %v1272_v50  ;;  %v2034_v12 = vrot.slane %v2025_v32, 3 }
 0x23b   : > { %v2064_v59 = vrot.slane %v2055_v7, 6  ;;  %v1417_v13 = vmul.f32 %v1411_v11, %v5133_v35  ;;  %v5215_v25 = vsel %vm810_vm3, %v4499_v56, %v1815_v4  ;;  %v5219_v17 = vsel %vm1218_vm6, %v6772_v19, %v1858_v6  ;;  %v6802_v6 = vld [vmem:[#allocation40_spill] sm:$0xff] }
 0x23c   : > { %v1389_v22 = vmul.f32 %v5158_v62, %v1383_v51  ;;  %v1289_v2 = vmax.f32 %v1283_v46, %v6798_v20  ;;  %v5211_v57 = vmax.f32 %v1294_v9, %v6798_v20  ;;  %v2120_v33 = vrot.slane %v2111_v45, 4  ;;  %v6804_v9 = vld [vmem:[#allocation41_spill] sm:$0xff] }
 0x23d   : > { %v2150_v3 = vrot.slane %v2141_v0, 7  ;;  %v5225_v35 = vsel %vm916_vm4, %v1935_v43, %v6777_v53  ;;  %v5233_v7 = vsel %vm1202_vm5, %v1978_v44, %v6781_v14  ;;  %v5237_v45 = vsel %vm810_vm3, %v6802_v6, %v2034_v12  ;;  %v2389_v43 = vld [vmem:[%s6529_s5] sm:$0xff] }
 0x23e   : > { %v5221_v11 = vpop.eup %3968  ;;  %6799 = vst [vmem:[#allocation34_spill] sm:$0xff] %v5225_v35  ;;  %v1395_v51 = vadd.f32 0.2548296, %v1389_v22  ;;  %v1295_v8 = vmax.f32 %v1289_v2, %v6800_v38  ;;  %v5229_v32 = vmul.f32 0.70710677, %v5211_v57  ;;  %6801 = vst [vmem:[#allocation35_spill] sm:$0xff] %v5233_v7  ;;  %v5247_v46 = vrot.slane %v2389_v43, %v4351_v29 }
 0x23f   : > { %v3971_v4 = vpop.eup %3970  ;;  %v1357_v5 = vmul.f32 1.0614054, %v5221_v11  ;;  %v1428_v20 = vmul.f32 1.442695, %v1417_v13  ;;  %v5251_v44 = vsel %vm1218_vm6, %v6804_v9, %v2064_v59  ;;  %v6805_v12 = vld [vmem:[#allocation45_spill] sm:$0xff]  ;;  %v6807_v22 = vld [vmem:[#allocation46_spill] sm:$0xff]  ;;  %v5267_v59 = vrot.slane %v2389_v43, %v4354_v30 }
 0x240   : > { %v1401_v2 = vmul.f32 %v5158_v62, %v1395_v51  ;;  %v1301_v0 = vmax.f32 %v1295_v8, %v4788_v34  ;;  %v1330_v50 = vand.u32 2147483647, %v5229_v32  ;;  %6803 = vst [vmem:[#allocation56_spill] sm:$0xff] %v5247_v46  ;;  %v5255_v13 = vsel %vm916_vm4, %v2120_v33, %v6805_v12 }
 0x241   : > { %6806 = vst [vmem:[#allocation57_spill] sm:$0xff] %v5255_v13  ;;  %v5259_v38 = vsel %vm1202_vm5, %v2150_v3, %v6807_v22  ;;  %v1363_v62 = vadd.f32 -1.4531521, %v1357_v5  ;;  %6809 = vst [vmem:[#allocation59_spill] sm:$0xff] %v5267_v59  ;;  %3972 = vpow2.f32 %v1428_v20  ;;  %v5271_v12 = vrot.slane %v2389_v43, %v4345_v27 }
 0x242   : > { %6808 = vst [vmem:[#allocation58_spill] sm:$0xff] %v5259_v38  ;;  %v1431_v51 = vmul.f32 %v3971_v4, %v1401_v2  ;;  %v1313_v34 = vmul.f32 0.70710677, %v1301_v0  ;;  %v1336_v8 = vmul.f32 0.3275911, %v1330_v50  ;;  %v1408_v33 = vsub.f32 0.0, %v1330_v50 }
 0x243   : > { %v1369_v9 = vmul.f32 %v5221_v11, %v1363_v62  ;;  %6810 = vst [vmem:[#allocation60_spill] sm:$0xff] %v5271_v12  ;;  %v2489_v2 = vmul.f32 0.0, %v5247_v46  ;;  %v5275_v6 = vrot.slane %v2389_v43, %v4342_v26  ;;  %v5279_v1 = vrot.slane %v5264_v61, %v4342_v26 }
 0x244   : > { %v1437_v3 = vsub.f32 1.0, %v1431_v51  ;;  %v1331_v5 = vand.u32 2147483647, %v1313_v34  ;;  %v1342_v4 = vadd.f32 1.0, %v1336_v8  ;;  %v1414_v38 = vmul.f32 %v1408_v33, %v1330_v50 }
 0x245   : > { %v1375_v22 = vadd.f32 1.4214138, %v1369_v9  ;;  %6811 = vst [vmem:[#allocation61_spill] sm:$0xff] %v5275_v6  ;;  %6812 = vst [vmem:[#allocation62_spill] sm:$0xff] %v5279_v1  ;;  %v6613_v7 = vmov 0.0   ;;  %v2523_v51 = vmul.f32 0.0, %v5267_v59  ;;  %v5288_v46 = vrot.slane %v5264_v61, %v4345_v27 }
 0x246   : > { %v1443_v62 = vmul.f32 %v1437_v3, %v5164_v15  ;;  %v1337_v20 = vmul.f32 0.3275911, %v1331_v5  ;;  %3876 = vmatprep.subr.mxu1 %v6613_v7  ;;  %3561 = vmatprep.mubr.f32.mxu0 %v6613_v7  ;;  %3974 = vrcp.f32 %v1342_v4  ;;  %v1409_v8 = vsub.f32 0.0, %v1331_v5 }
 0x247   : > { %v1381_v9 = vmul.f32 %v5221_v11, %v1375_v22  ;;  %6813 = vst [vmem:[#allocation63_spill] sm:$0xff] %v5288_v46  ;;  %v5291_v15 = vrot.slane %v2389_v43, %v4348_v28  ;;  %v5293_v50 = vrot.slane %v2489_v2, 3  ;;  %vm1318_vm12 = vcmp.ge.f32.partialorder %v5229_v32, 0.0 }
 0x248   : > { %v1449_v13 = vadd.f32 1.0, %v1443_v62  ;;  %v1343_v35 = vadd.f32 1.0, %v1337_v20  ;;  %v5297_v3 = vrot.slane %v2389_v43, %v4357_v31  ;;  %v2641_v22 = vmul.f32 0.0, %v5279_v1 }
 0x249   : > { %6814 = vst [vmem:[#allocation64_spill] sm:$0xff] %v5291_v15  ;;  %6815 = vst [vmem:[#allocation65_spill] sm:$0xff] %v5293_v50  ;;  %v1387_v33 = vadd.f32 -0.28449672, %v1381_v9  ;;  %vm1319_vm13 = vcmp.ge.f32.partialorder %v1313_v34, 0.0  ;;  %v1415_v20 = vmul.f32 %v1409_v8, %v1331_v5  ;;  %v5302_v59 = vrot.slane %v2523_v51, 4 }
 0x24a   : > { %6816 = vst [vmem:[#allocation66_spill] sm:$0xff] %v5297_v3  ;;  %v1455_v4 = vmul.f32 %v1449_v13, %v5161_v24  ;;  %3976 = vrcp.f32 %v1343_v35  ;;  %v1422_v7 = vmul.f32 1.442695, %v1414_v38  ;;  %v2681_v2 = vmul.f32 0.0, %v5288_v46 }
 0x24b   : > { %v1393_v62 = vmul.f32 %v5221_v11, %v1387_v33  ;;  %6817 = vst [vmem:[#allocation67_spill] sm:$0xff] %v5302_v59  ;;  %v5306_v50 = vmul.f32 0.5, %v5211_v57  ;;  %v5309_v3 = vrot.slane %v2389_v43, %v4366_v42  ;;  %v5312_v1 = vrot.slane %v2389_v43, %v4370_v55 }
 0x24c   : > { %v1475_v9 = vrot.slane %v1455_v4, 7  ;;  %v5314_v24 = vmul.f32 0.5, %v1301_v0  ;;  %v5319_v35 = vsel %vm1318_vm12, 1.0, %v6789_v60  ;;  %v5322_v13 = vsel %vm1319_vm13, 1.0, %v6789_v60 }
 0x24d   : > { %6818 = vst [vmem:[#allocation68_spill] sm:$0xff] %v5309_v3  ;;  %6819 = vst [vmem:[#allocation69_spill] sm:$0xff] %v5312_v1  ;;  %v5324_v38 = vrot.slane %v2641_v22, 3  ;;  %v1399_v34 = vadd.f32 0.2548296, %v1393_v62  ;;  %3978 = vpow2.f32 %v1422_v7  ;;  %v5329_v43 = vrot.slane %v5264_v61, %v4348_v28 }
 0x24e   : > { %v1487_v57 = vsel %vm1202_vm5, 0.0, %v1475_v9  ;;  %v1424_v5 = vmul.f32 1.442695, %v1415_v20  ;;  %v5332_v51 = vrot.slane %v2681_v2, 4  ;;  %v5336_v32 = vrot.slane %v5264_v61, %v4351_v29  ;;  %v3973_v60 = vpop.eup %3972 }
 0x24f   : > { %6820 = vst [vmem:[#allocation70_spill] sm:$0xff] %v5324_v38  ;;  %6821 = vst [vmem:[#allocation71_spill] sm:$0xff] %v5329_v43  ;;  %v1493_v0 = vsel %vm598_vm1, %v1487_v57, 0.0  ;;  %v5342_v7 = vrot.slane %v5264_v61, %v4354_v30  ;;  %v5346_v22 = vrot.slane %v5264_v61, %v4357_v31  ;;  %v5355_v38 = vrot.slane %v5264_v61, %v4366_v42 }
 0x250   : > { %6822 = vst [vmem:[#allocation72_spill] sm:$0xff] %v5332_v51  ;;  %6823 = vst [vmem:[#allocation73_spill] sm:$0xff] %v5336_v32  ;;  %v1637_v8 = vmul.f32 %v4390_v36, %v1493_v0  ;;  %v1665_v33 = vmul.f32 %v4393_v37, %v1493_v0  ;;  %v1693_v4 = vmul.f32 %v4397_v41, %v1493_v0  ;;  %3980 = vpow2.f32 %v1424_v5 }
 0x251   : > { %6824 = vst [vmem:[#allocation74_spill] sm:$0xff] %v5342_v7  ;;  %6825 = vst [vmem:[#allocation75_spill] sm:$0xff] %v5346_v22  ;;  %v1717_v62 = vmul.f32 %v6768_v21, %v1493_v0  ;;  %v1794_v20 = vmul.f32 %v4433_v63, %v1493_v0  ;;  %v1837_v2 = vmul.f32 %v4448_v10, %v1493_v0  ;;  %v6830_v21 = vld [vmem:[#allocation36_spill] sm:$0xff] }
 0x252   : > { %v1647_v9 = vrot.slane %v1637_v8, 3  ;;  %v1675_v57 = vrot.slane %v1665_v33, 6  ;;  %v1405_v51 = vmul.f32 %v5221_v11, %v1399_v34  ;;  %6826 = vst [vmem:[#allocation76_spill] sm:$0xff] %v5355_v38  ;;  %v5359_v43 = vrot.slane %v5264_v61, %v4370_v55  ;;  %v6828_v33 = vld [vmem:[#allocation19_spill] sm:$0xff]  ;;  %v6829_v61 = vld [vmem:[#allocation21_spill] sm:$0xff] }
 0x253   : > { %v1809_v7 = vrot.slane %v1794_v20, 3  ;;  %v1852_v32 = vrot.slane %v1837_v2, 6  ;;  %v5361_v46 = vpop.eup %3974  ;;  %v1745_v8 = vmul.f32 %v6773_v39, %v1493_v0  ;;  %v1879_v11 = vmul.f32 %v6769_v16, %v1493_v0 }
 0x254   : > { %6827 = vst [vmem:[#allocation77_spill] sm:$0xff] %v5359_v43  ;;  %v1648_v59 = vsel %vm810_vm3, %v4411_v49, %v1647_v9  ;;  %v1914_v34 = vmul.f32 %v6771_v40, %v1493_v0  ;;  %v1701_v20 = vrot.slane %v1693_v4, 1  ;;  %v1727_v2 = vrot.slane %v1717_v62, 4 }
 0x255   : > { %v1657_v1 = vadd.f32 %v1648_v59, %v6828_v33  ;;  %v1810_v5 = vsel %vm810_vm3, %v4499_v56, %v1809_v7  ;;  %v1676_v3 = vsel %vm1218_vm6, %v6829_v61, %v1675_v57  ;;  %v1957_v9 = vmul.f32 %v6774_v47, %v1493_v0  ;;  %v5383_v7 = vld [vmem:[%s6529_s5 + $0x10] sm:$0xff] }
 0x256   : > { %v1826_v41 = vadd.f32 %v1810_v5, %v6830_v21  ;;  %v1435_v49 = vmul.f32 %v3973_v60, %v1405_v51  ;;  %v1853_v36 = vsel %vm1218_vm6, %v6772_v19, %v1852_v32  ;;  %v1929_v59 = vrot.slane %v1914_v34, 4 }
 0x257   : > { %v5375_v39 = vpop.eup %3976  ;;  %v1685_v37 = vadd.f32 %v1676_v3, %v1657_v1  ;;  %v1354_v4 = vmul.f32 1.0614054, %v5361_v46  ;;  %v1755_v62 = vrot.slane %v1745_v8, 7  ;;  %v1891_v5 = vrot.slane %v1879_v11, 1 }
 0x258   : > { %v1869_v57 = vadd.f32 %v1853_v36, %v1826_v41  ;;  %v1441_v21 = vsub.f32 1.0, %v1435_v49  ;;  %v1972_v51 = vrot.slane %v1957_v9, 7  ;;  %v1355_v60 = vmul.f32 1.0614054, %v5375_v39 }
 0x259   : > { %v1709_v0 = vadd.f32 %v1701_v20, %v1685_v37  ;;  %v1360_v1 = vadd.f32 -1.4531521, %v1354_v4  ;;  %v1728_v3 = vsel %vm916_vm4, %v1727_v2, %v6776_v18  ;;  %v5391_v33 = vrot.slane %v5383_v7, %v4348_v28 }
 0x25a   : > { %v1903_v32 = vadd.f32 %v1891_v5, %v1869_v57  ;;  %v1447_v34 = vmul.f32 %v1441_v21, %v5180_v54  ;;  %v5393_v61 = vpop.eup %3978  ;;  %v1930_v37 = vsel %vm916_vm4, %v1929_v59, %v6777_v53  ;;  %v1361_v41 = vadd.f32 -1.4531521, %v1355_v60  ;;  %v6834_v5 = vld [vmem:[#allocation26_spill] sm:$0xff] }
 0x25b   : > { %6831 = vst [vmem:[#allocation78_spill] sm:$0xff] %v5391_v33  ;;  %v1737_v36 = vadd.f32 %v1728_v3, %v1709_v0  ;;  %v1366_v49 = vmul.f32 %v5361_v46, %v1360_v1  ;;  %v1756_v8 = vsel %vm1202_vm5, %v1755_v62, %v6780_v58  ;;  %v5402_v21 = vrot.slane %v5383_v7, %v4351_v29  ;;  %v6835_v3 = vld [vmem:[#allocation33_spill] sm:$0xff] }
 0x25c   : > { %v1946_v11 = vadd.f32 %v1930_v37, %v1903_v32  ;;  %v1453_v20 = vadd.f32 1.0, %v1447_v34  ;;  %v1973_v54 = vsel %vm1202_vm5, %v1972_v51, %v6781_v14  ;;  %v1367_v2 = vmul.f32 %v5375_v39, %v1361_v41  ;;  %v5428_v41 = vld [vmem:[%s6529_s5 + $0x18] ss:$0 sm:$0xff] }
 0x25d   : > { %6832 = vst [vmem:[#allocation79_spill] sm:$0xff] %v5402_v21  ;;  %v1765_v28 = vadd.f32 %v1756_v8, %v1737_v36  ;;  %v1372_v9 = vadd.f32 1.4214138, %v1366_v49  ;;  %v2806_v57 = vmul.f32 0.0, %v5346_v22  ;;  %v5411_v62 = vrot.slane %v5383_v7, %v4342_v26  ;;  %v5416_v51 = vpop.eup %3980  ;;  %v6837_v26 = vld [vmem:[#allocation24_spill] sm:$0xff]  ;;  %6838 = vst [vmem:[#allocation33_spill] sm:$0xff] %v5428_v41 }
 0x25e   : > { %v1989_v59 = vadd.f32 %v1973_v54, %v1946_v11  ;;  %v1459_v4 = vmul.f32 %v1453_v20, %v5173_v52  ;;  %v1373_v29 = vadd.f32 1.4214138, %v1367_v2  ;;  %v2849_v1 = vmul.f32 0.0, %v5355_v38  ;;  %v6840_v20 = vld [vmem:[#allocation31_spill] sm:$0xff] }
 0x25f   : > { %6833 = vst [vmem:[#allocation80_spill] sm:$0xff] %v5411_v62  ;;  %v1777_v0 = vadd.f32 %v6834_v5, %v1765_v28  ;;  %v1378_v60 = vmul.f32 %v5361_v46, %v1372_v9  ;;  %v5421_v52 = vrot.slane %v5383_v7, %v4345_v27  ;;  %v2976_v36 = vmul.f32 0.0, %v5391_v33 }
 0x260   : > { %v2003_v32 = vadd.f32 %v6835_v3, %v1989_v59  ;;  %v1479_v34 = vrot.slane %v1459_v4, 7  ;;  %v3016_v49 = vmul.f32 0.0, %v5402_v21  ;;  %v5433_v8 = vrot.slane %v5383_v7, %v4370_v55 }
 0x261   : > { %6836 = vst [vmem:[#allocation26_spill] sm:$0xff] %v5421_v52  ;;  %v1786_v37 = vadd.f32 %v6837_v26, %v1777_v0  ;;  %v2431_v11 = vmul.f32 0.0, %v5271_v12  ;;  %v5438_v54 = vrot.slane %v2806_v57, 3  ;;  %v2422_v2 = vmul.f32 0.0, %v5275_v6 }
 0x262   : > { %6839 = vst [vmem:[#allocation24_spill] sm:$0xff] %v5433_v8  ;;  %v2014_v27 = vadd.f32 %v6840_v20, %v2003_v32  ;;  %v1491_v28 = vsel %vm1202_vm5, 0.0, %v1479_v34  ;;  %v1379_v59 = vmul.f32 %v5375_v39, %v1373_v29  ;;  %v1384_v4 = vadd.f32 -0.28449672, %v1378_v60 }
 0x263   : > { %6841 = vst [vmem:[#allocation31_spill] sm:$0xff] %v5438_v54  ;;  %v1829_v9 = vadd.f32 %v5215_v25, %v1786_v37  ;;  %v5443_v0 = vrot.slane %v2849_v1, 4  ;;  %v1497_v21 = vsel %vm598_vm1, %v1491_v28, 0.0  ;;  %v5447_v33 = vrot.slane %v2976_v36, 3 }
 0x264   : > { %v2044_v55 = vadd.f32 %v5237_v45, %v2014_v27  ;;  %v3166_v32 = vmul.f32 0.0, %v5428_v41  ;;  %v5451_v34 = vrot.slane %v3016_v49, 4  ;;  %v3131_v54 = vmul.f32 0.0, %v5433_v8 }
 0x265   : > { %6842 = vst [vmem:[#allocation81_spill] sm:$0xff] %v5443_v0  ;;  %6843 = vst [vmem:[#allocation82_spill] sm:$0xff] %v5447_v33  ;;  %v1872_v57 = vadd.f32 %v5219_v17, %v1829_v9  ;;  %v2441_v25 = vrot.slane %v2431_v11, 1  ;;  %v5457_v60 = vrot.slane %v5383_v7, %v4354_v30  ;;  %v5461_v45 = vrot.slane %v5383_v7, %v4357_v31  ;;  %v6858_v0 = vld [vmem:[#allocation47_spill] sm:$0xff] }
 0x266   : > { %6844 = vst [vmem:[#allocation83_spill] sm:$0xff] %v5451_v34  ;;  %v2074_v29 = vadd.f32 %v5251_v44, %v2044_v55  ;;  %v5465_v1 = vrot.slane %v5383_v7, %v4366_v42  ;;  %v6848_v17 = vrot.slane %v5184_v23, 1  ;;  %v1798_v37 = vmul.f32 %v4433_v63, %v1497_v21  ;;  %v6851_v42 = vld [vmem:[#allocation34_spill] sm:$0xff] }
 0x267   : > { %6845 = vst [vmem:[#allocation84_spill] sm:$0xff] %v5457_v60  ;;  %6846 = vst [vmem:[#allocation85_spill] sm:$0xff] %v5461_v45  ;;  %v1385_v49 = vadd.f32 -0.28449672, %v1379_v59  ;;  %v1390_v44 = vmul.f32 %v5361_v46, %v1384_v4  ;;  %v6849_v11 = vrot.slane %v5194_v48, 1  ;;  %v1841_v27 = vmul.f32 %v4448_v10, %v1497_v21  ;;  %v6853_v59 = vld [vmem:[#allocation57_spill] sm:$0xff] }
 0x268   : > { %6847 = vst [vmem:[#allocation86_spill] sm:$0xff] %v5465_v1  ;;  %v1906_v36 = vadd.f32 %v6848_v17, %v1872_v57  ;;  %v5475_v31 = vmul.f32 %v6769_v16, %v1497_v21  ;;  %v5477_v28 = vrot.slane %v3166_v32, 4  ;;  %v1918_v23 = vmul.f32 %v6771_v40, %v1497_v21  ;;  %v6854_v57 = vld [vmem:[#allocation37_spill] sm:$0xff]  ;;  %v6856_v34 = vld [vmem:[#allocation58_spill] sm:$0xff] }
 0x269   : > { %v2100_v30 = vadd.f32 %v6849_v11, %v2074_v29  ;;  %v5481_v9 = vrot.slane %v3131_v54, 3  ;;  %v5483_v55 = vadd.f32 %v2441_v25, %v2422_v2  ;;  %v1961_v48 = vmul.f32 %v6774_v47, %v1497_v21  ;;  %v6855_v11 = vld [vmem:[#allocation35_spill] sm:$0xff]  ;;  %v6857_v25 = vld [vmem:[#allocation38_spill] sm:$0xff] }
 0x26a   : > { %6850 = vst [vmem:[#allocation87_spill] sm:$0xff] %v5477_v28  ;;  %v1949_v7 = vadd.f32 %v6851_v42, %v1906_v36  ;;  %v2026_v29 = vmul.f32 %v6854_v57, %v1497_v21  ;;  %v5489_v17 = vmul.f32 0.0, %v5291_v15  ;;  %v1817_v28 = vrot.slane %v1798_v37, 3 }
 0x26b   : > { %6852 = vst [vmem:[#allocation34_spill] sm:$0xff] %v5481_v9  ;;  %v2130_v4 = vadd.f32 %v6853_v59, %v2100_v30  ;;  %v1391_v36 = vmul.f32 %v5375_v39, %v1385_v49  ;;  %v1396_v42 = vadd.f32 0.2548296, %v1390_v44  ;;  %v1860_v9 = vrot.slane %v1841_v27, 6 }
 0x26c   : > { %v1992_v32 = vadd.f32 %v6855_v11, %v1949_v7  ;;  %v2056_v30 = vmul.f32 %v6857_v25, %v1497_v21  ;;  %v1937_v33 = vrot.slane %v1918_v23, 4  ;;  %v1980_v7 = vrot.slane %v1961_v48, 7  ;;  %v6859_v11 = vld [vmem:[#allocation42_spill] sm:$0xff]  ;;  %v6860_v23 = vld [vmem:[#allocation48_spill] sm:$0xff] }
 0x26d   : > { %v2160_v54 = vadd.f32 %v6856_v34, %v2130_v4  ;;  %v1397_v41 = vadd.f32 0.2548296, %v1391_v36  ;;  %v1402_v8 = vmul.f32 %v5361_v46, %v1396_v42  ;;  %v2036_v37 = vrot.slane %v2026_v29, 3  ;;  %v6861_v29 = vld [vmem:[#allocation43_spill] sm:$0xff]  ;;  %v6862_v42 = vld [vmem:[#allocation40_spill] sm:$0xff] }
 0x26e   : > { %v2006_v59 = vadd.f32 %v6835_v3, %v1992_v32  ;;  %v2112_v49 = vmul.f32 %v6859_v11, %v1497_v21  ;;  %v5503_v34 = vsel %vm810_vm3, %v4499_v56, %v1817_v28  ;;  %v5510_v46 = vsel %vm1218_vm6, %v6772_v19, %v1860_v9  ;;  %v6865_v9 = vld [vmem:[#allocation41_spill] sm:$0xff] }
 0x26f   : > { %v2174_v38 = vadd.f32 %v6858_v0, %v2160_v54  ;;  %v1403_v27 = vmul.f32 %v5375_v39, %v1397_v41  ;;  %v1432_v4 = vmul.f32 %v5393_v61, %v1402_v8  ;;  %v2066_v48 = vrot.slane %v2056_v30, 6  ;;  %v6864_v39 = vld [vmem:[#allocation49_spill] sm:$0xff] }
 0x270   : > { %v2017_v44 = vadd.f32 %v6840_v20, %v2006_v59  ;;  %v2142_v36 = vmul.f32 %v6861_v29, %v1497_v21  ;;  %v6863_v59 = vld [vmem:[#allocation39_spill] sm:$0xff]  ;;  %v5525_v61 = vsel %vm1202_vm5, %v1980_v7, %v6781_v14  ;;  %v2122_v8 = vrot.slane %v2112_v49, 4  ;;  %v6868_v49 = vld [vmem:[#allocation44_spill] sm:$0xff] }
 0x271   : > { %v2185_v32 = vadd.f32 %v6860_v23, %v2174_v38  ;;  %v5515_v2 = vmul.f32 %v6863_v59, %v1497_v21  ;;  %v1433_v28 = vmul.f32 %v5416_v51, %v1403_v27  ;;  %v1438_v22 = vsub.f32 1.0, %v1432_v4  ;;  %v6866_v27 = vld [vmem:[#allocation50_spill] sm:$0xff] }
 0x272   : > { %v2047_v54 = vadd.f32 %v6862_v42, %v2017_v44  ;;  %v5521_v38 = vsel %vm916_vm4, %v1937_v33, %v6777_v53  ;;  %v5530_v21 = vsel %vm810_vm3, %v6862_v42, %v2036_v37  ;;  %v5536_v33 = vsel %vm1218_vm6, %v6865_v9, %v2066_v48 }
 0x273   : > { %v2200_v41 = vadd.f32 %v6864_v39, %v2185_v32  ;;  %v1439_v44 = vsub.f32 1.0, %v1433_v28  ;;  %v1444_v51 = vmul.f32 %v1438_v22, %v5319_v35  ;;  %v2152_v32 = vrot.slane %v2142_v36, 7  ;;  %v6869_v28 = vld [vmem:[#allocation51_spill] sm:$0xff]  ;;  %v6870_v35 = vld [vmem:[#allocation45_spill] sm:$0xff] }
 0x274   : > { %v2077_v30 = vadd.f32 %v6865_v9, %v2047_v54  ;;  %v5539_v7 = vmul.f32 0.0, %v5411_v62  ;;  %v5547_v22 = vsel %vm916_vm4, %v2122_v8, %v6870_v35  ;;  %v5550_v48 = vmul.f32 0.0, %v5421_v52 }
 0x275   : > { %v2215_v4 = vadd.f32 %v6866_v27, %v2200_v41  ;;  %v1445_v37 = vmul.f32 %v1439_v44, %v5322_v13  ;;  %v1450_v15 = vadd.f32 1.0, %v1444_v51  ;;  %6871 = vst [vmem:[#allocation37_spill] sm:$0xff] %v5547_v22  ;;  %v5553_v36 = vmul.f32 0.0, %v5461_v45  ;;  %v6875_v44 = vld [vmem:[#allocation52_spill] sm:$0xff] }
 0x276   : > { %6867 = vst [vmem:[#allocation57_spill] sm:$0xff] %v5539_v7  ;;  %v2103_v6 = vadd.f32 %v6868_v49, %v2077_v30  ;;  %6872 = vst [vmem:[#allocation35_spill] sm:$0xff] %v5550_v48  ;;  %v5558_v13 = vmul.f32 0.0, %v5359_v43  ;;  %v4150_v7 = vmov 1983009808   ;;  %v6888_v43 = vld [vmem:[#allocation17_spill] sm:$0xff] }
 0x277   : > { %v2229_v12 = vadd.f32 %v6869_v28, %v2215_v4  ;;  %6873 = vst [vmem:[#allocation58_spill] sm:$0xff] %v5553_v36  ;;  %v1451_v30 = vadd.f32 1.0, %v1445_v37  ;;  %v1456_v54 = vmul.f32 %v1450_v15, %v5306_v50  ;;  %v6876_v4 = vld [vmem:[#allocation46_spill] sm:$0xff]  ;;  %v6894_v49 = vld [vmem:[#allocation19_spill] sm:$0xff] }
 0x278   : > { %v2133_v41 = vadd.f32 %v6870_v35, %v2103_v6  ;;  %6874 = vst [vmem:[#allocation38_spill] sm:$0xff] %v5558_v13  ;;  %v5563_v8 = vsel %vm1202_vm5, %v2152_v32, %v6876_v4  ;;  %v5569_v6 = vmul.f32 0.0, %v5457_v60  ;;  %v6879_v15 = vld [vmem:[#allocation54_spill] sm:$0xff]  ;;  %v5575_v13 = vmul.f32 0.0, %v5465_v1  ;;  %v6886_v60 = vld [vmem:[#allocation53_spill] sm:$0xff] }
 0x279   : > { %v2244_v51 = vadd.f32 %v6875_v44, %v2229_v12  ;;  %6877 = vst [vmem:[#allocation42_spill] sm:$0xff] %v5563_v8  ;;  %v1457_v45 = vmul.f32 %v1451_v30, %v5314_v24  ;;  %v1476_v22 = vrot.slane %v1456_v54, 7  ;;  %v5579_v24 = vunpack.c.l.s4 %v4150_v7  ;;  %v6881_v54 = vld [vmem:[#allocation27_spill] sm:$0xff]  ;;  %v6882_v37 = vld [vmem:[#allocation66_spill] sm:$0xff] }
 0x27a   : > { %v2163_v62 = vadd.f32 %v6876_v4, %v2133_v41  ;;  %6878 = vst [vmem:[#allocation43_spill] sm:$0xff] %v5569_v6  ;;  %6880 = vst [vmem:[#allocation40_spill] sm:$0xff] %v5575_v13  ;;  %v5587_v12 = vmul.f32 0.0, %v6882_v37  ;;  %v6885_v7 = vld [vmem:[#allocation15_spill] sm:$0xff] }
 0x27b   : > { %v2259_v50 = vadd.f32 %v6879_v15, %v2244_v51  ;;  %v1477_v52 = vrot.slane %v1457_v45, 7  ;;  %v1488_v41 = vsel %vm1202_vm5, 0.0, %v1476_v22  ;;  %v6884_v45 = vld [vmem:[#allocation14_spill] sm:$0xff]  ;;  %v6887_v51 = vld [vmem:[#allocation16_spill] sm:$0xff] }
 0x27c   : > { %v2177_v32 = vadd.f32 %v6858_v0, %v2163_v62  ;;  %v5583_v6 = vsel %vm598_vm1, %v1488_v41, 0.0  ;;  %6883 = vst [vmem:[#allocation39_spill] sm:$0xff] %v5587_v12  ;;  %v6890_v0 = vld [vmem:[#allocation25_spill] sm:$0xff] }
 0x27d   : > { %v2273_v30 = vadd.f32 %v6881_v54, %v2259_v50  ;;  %v1489_v62 = vsel %vm1202_vm5, 0.0, %v1477_v52  ;;  %v1638_v22 = vmul.f32 %v6884_v45, %v5583_v6  ;;  %v1666_v48 = vmul.f32 %v6885_v7, %v5583_v6  ;;  %v6889_v45 = vld [vmem:[#allocation18_spill] sm:$0xff] }
 0x27e   : > { %v2188_v36 = vadd.f32 %v6860_v23, %v2177_v32  ;;  %v5597_v41 = vsel %vm598_vm1, %v1489_v62, 0.0  ;;  %v1694_v1 = vmul.f32 %v6887_v51, %v5583_v6  ;;  %v1718_v37 = vmul.f32 %v6888_v43, %v5583_v6  ;;  %v6891_v51 = vld [vmem:[#allocation20_spill] sm:$0xff]  ;;  %v6892_v43 = vld [vmem:[#allocation21_spill] sm:$0xff] }
 0x27f   : > { %v2284_v50 = vadd.f32 %v6886_v60, %v2273_v30  ;;  %v1649_v52 = vrot.slane %v1638_v22, 3  ;;  %v1677_v23 = vrot.slane %v1666_v48, 6  ;;  %v1746_v12 = vmul.f32 %v6889_v45, %v5583_v6  ;;  %v6893_v48 = vld [vmem:[#allocation29_spill] sm:$0xff] }
 0x280   : > { %v2203_v32 = vadd.f32 %v6864_v39, %v2188_v36  ;;  %v1702_v8 = vrot.slane %v1694_v1, 1  ;;  %v1729_v30 = vrot.slane %v1718_v37, 4  ;;  %v1795_v62 = vmul.f32 %v4433_v63, %v5583_v6 }
 0x281   : > { %v2299_v7 = vadd.f32 %v6890_v0, %v2284_v50  ;;  %v1650_v4 = vsel %vm810_vm3, %v6891_v51, %v1649_v52  ;;  %v1678_v36 = vsel %vm1218_vm6, %v6892_v43, %v1677_v23  ;;  %v1757_v22 = vrot.slane %v1746_v12, 7  ;;  %v6895_v12 = vld [vmem:[#allocation22_spill] sm:$0xff] }
 0x282   : > { %v2218_v13 = vadd.f32 %v6866_v27, %v2203_v32  ;;  %v1658_v45 = vadd.f32 %v1650_v4, %v6894_v49  ;;  %v1730_v1 = vsel %vm916_vm4, %v1729_v30, %v6776_v18  ;;  %v1796_v37 = vmul.f32 %v4433_v63, %v5597_v41  ;;  %v6896_v4 = vld [vmem:[#allocation30_spill] sm:$0xff] }
 0x283   : > { %v2314_v39 = vadd.f32 %v6893_v48, %v2299_v7  ;;  %v1758_v32 = vsel %vm1202_vm5, %v1757_v22, %v6780_v58  ;;  %v1811_v52 = vrot.slane %v1795_v62, 3  ;;  %v1838_v23 = vmul.f32 %v4448_v10, %v5583_v6 }
 0x284   : > { %v2232_v50 = vadd.f32 %v6869_v28, %v2218_v13  ;;  %v1686_v7 = vadd.f32 %v1678_v36, %v1658_v45  ;;  %v1813_v43 = vrot.slane %v1796_v37, 3  ;;  %v1839_v49 = vmul.f32 %v4448_v10, %v5597_v41  ;;  %v6897_v36 = vld [vmem:[#allocation36_spill] sm:$0xff] }
 0x285   : > { %v2328_v51 = vadd.f32 %v6895_v12, %v2314_v39  ;;  %v1812_v63 = vsel %vm810_vm3, %v4499_v56, %v1811_v52  ;;  %v1854_v13 = vrot.slane %v1838_v23, 6  ;;  %v1880_v58 = vmul.f32 %v6769_v16, %v5583_v6  ;;  %v6898_v10 = vld [vmem:[#allocation32_spill] sm:$0xff]  ;;  %v6899_v23 = vld [vmem:[#allocation23_spill] sm:$0xff] }
 0x286   : > { %v2247_v18 = vadd.f32 %v6875_v44, %v2232_v50  ;;  %v1710_v62 = vadd.f32 %v1702_v8, %v1686_v7  ;;  %v1814_v39 = vsel %vm810_vm3, %v4499_v56, %v1813_v43  ;;  %v1827_v22 = vadd.f32 %v1812_v63, %v6897_v36 }
 0x287   : > { %v2343_v30 = vadd.f32 %v6896_v4, %v2328_v51  ;;  %v1828_v37 = vadd.f32 %v1814_v39, %v6898_v10  ;;  %v1855_v50 = vsel %vm1218_vm6, %v6772_v19, %v1854_v13  ;;  %v1856_v52 = vrot.slane %v1839_v49, 6  ;;  %v6900_v39 = vld [vmem:[#allocation28_spill] sm:$0xff] }
 0x288   : > { %v2262_v45 = vadd.f32 %v6879_v15, %v2247_v18  ;;  %v1738_v28 = vadd.f32 %v1730_v1, %v1710_v62  ;;  %v1870_v27 = vadd.f32 %v1855_v50, %v1827_v22  ;;  %v1881_v8 = vmul.f32 %v6769_v16, %v5597_v41 }
 0x289   : > { %v2358_v44 = vadd.f32 %v6899_v23, %v2343_v30  ;;  %v1857_v56 = vsel %vm1218_vm6, %v6772_v19, %v1856_v52  ;;  %v1892_v7 = vrot.slane %v1880_v58, 1  ;;  %v1915_v43 = vmul.f32 %v6771_v40, %v5583_v6 }
 0x28a   : > { %v2276_v51 = vadd.f32 %v6881_v54, %v2262_v45  ;;  %v1766_v18 = vadd.f32 %v1758_v32, %v1738_v28  ;;  %v1871_v63 = vadd.f32 %v1857_v56, %v1828_v37  ;;  %v1893_v13 = vrot.slane %v1881_v8, 1  ;;  %v5661_v32 = vld [vmem:[%s6528_s4] ss:$0 sm:$0xff] }
 0x28b   : > { %v3218_v49 = vunpack.c.0.s8 %v5579_v24  ;;  %v1904_v30 = vadd.f32 %v1892_v7, %v1870_v27  ;;  %v1916_v16 = vmul.f32 %v6771_v40, %v5597_v41  ;;  %v1931_v62 = vrot.slane %v1915_v43, 4  ;;  %v6937_v24 = vld [vmem:[#allocation52_spill] sm:$0xff] }
 0x28c   : > { %v2287_v1 = vadd.f32 %v6886_v60, %v2276_v51  ;;  %v2372_v36 = vadd.f32 %v6900_v39, %v2358_v44  ;;  %v1778_v19 = vadd.f32 %v6834_v5, %v1766_v18  ;;  %v1905_v58 = vadd.f32 %v1893_v13, %v1871_v63 }
 0x28d   : > { %v1958_v22 = vmul.f32 %v6774_v47, %v5583_v6  ;;  %v1932_v27 = vsel %vm916_vm4, %v1931_v62, %v6777_v53  ;;  %v1933_v40 = vrot.slane %v1916_v16, 4  ;;  %v1959_v44 = vmul.f32 %v6774_v47, %v5597_v41 }
 0x28e   : > { %v2302_v28 = vadd.f32 %v6890_v0, %v2287_v1  ;;  %v1787_v5 = vadd.f32 %v6837_v26, %v1778_v19  ;;  %v1947_v45 = vadd.f32 %v1932_v27, %v1904_v30  ;;  %v6901_v6 = vrot.slane %v5489_v17, 2 }
 0x28f   : > { %v1974_v10 = vrot.slane %v1958_v22, 7  ;;  %v1934_v52 = vsel %vm916_vm4, %v1933_v40, %v6777_v53  ;;  %v1976_v8 = vrot.slane %v1959_v44, 7  ;;  %v2024_v51 = vmul.f32 %v6854_v57, %v5597_v41 }
 0x290   : > { %v2480_v37 = vadd.f32 %v6901_v6, %v5483_v55  ;;  %v2317_v50 = vadd.f32 %v6893_v48, %v2302_v28  ;;  %v2384_v56 = vadd.f32 %v5661_v32, %v2372_v36  ;;  %v1830_v47 = vadd.f32 %v5503_v34, %v1787_v5  ;;  %v6903_v36 = vld [vmem:[#allocation55_spill] sm:$0xff] }
 0x291   : > { %v1948_v26 = vadd.f32 %v1934_v52, %v1905_v58  ;;  %v1975_v7 = vsel %vm1202_vm5, %v1974_v10, %v6781_v14  ;;  %v1977_v55 = vsel %vm1202_vm5, %v1976_v8, %v6781_v14  ;;  %v2032_v18 = vrot.slane %v2024_v51, 3 }
 0x292   : > { %v2331_v17 = vadd.f32 %v6895_v12, %v2317_v50  ;;  %v1990_v43 = vadd.f32 %v1975_v7, %v1947_v45  ;;  %v1873_v53 = vadd.f32 %v5510_v46, %v1830_v47  ;;  %v2054_v57 = vmul.f32 %v6857_v25, %v5597_v41  ;;  %v6907_v7 = vld [vmem:[#allocation69_spill] sm:$0xff] }
 0x293   : > { %v1991_v63 = vadd.f32 %v1977_v55, %v1948_v26  ;;  %v2083_v34 = vmul.f32 %v6863_v59, %v5597_v41  ;;  %v2033_v30 = vsel %vm810_vm3, %v6862_v42, %v2032_v18  ;;  %v2109_v14 = vmul.f32 %v6859_v11, %v5597_v41  ;;  %v6905_v26 = vld [vmem:[#allocation68_spill] sm:$0xff] }
 0x294   : > { %v2346_v13 = vadd.f32 %v6896_v4, %v2331_v17  ;;  %v2004_v1 = vadd.f32 %v6835_v3, %v1990_v43  ;;  %v6902_v16 = vrot.slane %v5475_v31, 1  ;;  %v2043_v25 = vadd.f32 %v2033_v30, %v6903_v36  ;;  %v6915_v30 = vld [vmem:[#allocation37_spill] sm:$0xff] }
 0x295   : > { %v2005_v62 = vadd.f32 %v6835_v3, %v1991_v63  ;;  %v2062_v19 = vrot.slane %v2054_v57, 6  ;;  %v2401_v58 = vrot.slane %v2384_v56, 6  ;;  %v2117_v28 = vrot.slane %v2109_v14, 4  ;;  %v6911_v63 = vld [vmem:[#allocation44_spill] sm:$0xff]  ;;  %v6912_v57 = vld [vmem:[#allocation46_spill] sm:$0xff]  ;;  %v6917_v36 = vld [vmem:[#allocation13_spill] sm:$0xff] }
 0x296   : > { %v1907_v46 = vadd.f32 %v6902_v16, %v1873_v53  ;;  %v2361_v59 = vadd.f32 %v6899_v23, %v2346_v13  ;;  %v2015_v22 = vadd.f32 %v6840_v20, %v2004_v1  ;;  %v2139_v31 = vmul.f32 %v6861_v29, %v5597_v41  ;;  %v6913_v13 = vld [vmem:[#allocation67_spill] sm:$0xff] }
 0x297   : > { %v2016_v40 = vadd.f32 %v6840_v20, %v2005_v62  ;;  %v2063_v11 = vsel %vm1218_vm6, %v6865_v9, %v2062_v19  ;;  %v2091_v10 = vrot.slane %v2083_v34, 1  ;;  %v5714_v29 = vmul.f32 0.0, %v6905_v26  ;;  %v6939_v62 = vld [vmem:[#allocation74_spill] sm:$0xff] }
 0x298   : > { %v1950_v27 = vadd.f32 %v5521_v38, %v1907_v46  ;;  %v2375_v44 = vadd.f32 %v6900_v39, %v2361_v59  ;;  %v2045_v5 = vadd.f32 %v5530_v21, %v2015_v22  ;;  %v2073_v45 = vadd.f32 %v2063_v11, %v2043_v25  ;;  %v6904_v38 = vld [vmem:[#allocation65_spill] sm:$0xff]  ;;  %v6919_v59 = vld [vmem:[#allocation60_spill] sm:$0xff]  ;;  %v6920_v22 = vld [vmem:[#allocation42_spill] sm:$0xff] }
 0x299   : > { %v2046_v50 = vadd.f32 %v6862_v42, %v2016_v40  ;;  %v2147_v52 = vrot.slane %v2139_v31, 7  ;;  %v2514_v8 = vadd.f32 %v6904_v38, %v2480_v37  ;;  %6906 = vst [vmem:[#allocation41_spill] sm:$0xff] %v5714_v29  ;;  %v5721_v17 = vmul.f32 0.0, %v6907_v7 }
 0x29a   : > { %v1993_v6 = vadd.f32 %v5525_v61, %v1950_v27  ;;  %v2387_v51 = vadd.f32 %v5661_v32, %v2375_v44  ;;  %v2075_v56 = vadd.f32 %v5536_v33, %v2045_v5  ;;  %v2099_v47 = vadd.f32 %v2091_v10, %v2073_v45  ;;  %v6921_v27 = vld [vmem:[#allocation47_spill] sm:$0xff]  ;;  %v6922_v44 = vld [vmem:[#allocation64_spill] sm:$0xff] }
 0x29b   : > { %v2076_v21 = vadd.f32 %v6865_v9, %v2046_v50  ;;  %v2119_v61 = vsel %vm916_vm4, %v2117_v28, %v6870_v35  ;;  %6908 = vst [vmem:[#allocation45_spill] sm:$0xff] %v5721_v17  ;;  %v5724_v37 = vsel %vm1218_vm6, 0.0, %v2401_v58  ;;  %v6910_v33 = vrot.slane %v5515_v2, 1  ;;  %v6923_v5 = vld [vmem:[#allocation39_spill] sm:$0xff] }
 0x29c   : > { %v2007_v41 = vadd.f32 %v6835_v3, %v1993_v6  ;;  %v2404_v55 = vrot.slane %v2387_v51, 6  ;;  %6909 = vst [vmem:[#allocation54_spill] sm:$0xff] %v5724_v37  ;;  %v2129_v18 = vadd.f32 %v2119_v61, %v2099_v47  ;;  %v2149_v34 = vsel %vm1202_vm5, %v2147_v52, %v6912_v57  ;;  %v6925_v6 = vld [vmem:[#allocation48_spill] sm:$0xff]  ;;  %v6927_v47 = vld [vmem:[#allocation62_spill] sm:$0xff] }
 0x29d   : > { %v2101_v43 = vadd.f32 %v6910_v33, %v2075_v56  ;;  %v2102_v3 = vadd.f32 %v6911_v63, %v2076_v21  ;;  %v5733_v1 = vadd.f32 %v6913_v13, %v2514_v8  ;;  %v5740_v2 = vsub.s32 %v3218_v49, %v6917_v36  ;;  %v6926_v8 = vld [vmem:[#allocation61_spill] sm:$0xff]  ;;  %v6931_v36 = vld [vmem:[#allocation50_spill] sm:$0xff] }
 0x29e   : > { %v2018_v53 = vadd.f32 %v6840_v20, %v2007_v41  ;;  %v2159_v16 = vadd.f32 %v2149_v34, %v2129_v18  ;;  %v5743_v20 = vsel %vm1218_vm6, 0.0, %v2404_v55  ;;  %v2433_v58 = vmul.f32 %v6919_v59, %v5724_v37  ;;  %v6928_v55 = vld [vmem:[#allocation49_spill] sm:$0xff]  ;;  %v6929_v18 = vld [vmem:[#allocation56_spill] sm:$0xff]  ;;  %v6930_v34 = vld [vmem:[#allocation63_spill] sm:$0xff] }
 0x29f   : > { %6914 = vst [vmem:[#allocation27_spill] sm:$0xff] %v5733_v1  ;;  %v2131_v14 = vadd.f32 %v6915_v30, %v2101_v43  ;;  %6918 = vst [vmem:[#allocation14_spill] sm:$0xff] %v5740_v2  ;;  %v2132_v19 = vadd.f32 %v6870_v35, %v2102_v3  ;;  %v5759_v45 = vadd.f32 %v6923_v5, %v5733_v1  ;;  %v6934_v5 = vld [vmem:[#allocation51_spill] sm:$0xff]  ;;  %v6941_v1 = vld [vmem:[#allocation72_spill] sm:$0xff] }
 0x2a0   : > { %v2048_v25 = vadd.f32 %v6862_v42, %v2018_v53  ;;  %v2173_v40 = vadd.f32 %v6921_v27, %v2159_v16  ;;  %v2462_v42 = vmul.f32 %v6922_v44, %v5724_v37  ;;  %v5765_v52 = vmul.f32 %v6905_v26, %v5743_v20 }
 0x2a1   : > { %v2161_v28 = vadd.f32 %v6920_v22, %v2131_v14  ;;  %v2162_v31 = vadd.f32 %v6912_v57, %v2132_v19  ;;  %6924 = vst [vmem:[#allocation15_spill] sm:$0xff] %v5759_v45  ;;  %v2646_v41 = vmul.f32 %v6927_v47, %v5743_v20  ;;  %v2443_v21 = vrot.slane %v2433_v58, 1  ;;  %v6932_v19 = vld [vmem:[#allocation66_spill] sm:$0xff] }
 0x2a2   : > { %v2078_v49 = vadd.f32 %v6865_v9, %v2048_v25  ;;  %v2184_v50 = vadd.f32 %v6925_v6, %v2173_v40  ;;  %v2424_v9 = vmul.f32 %v6926_v8, %v5724_v37  ;;  %v5777_v43 = vmul.f32 %v6907_v7, %v5743_v20 }
 0x2a3   : > { %v2175_v10 = vadd.f32 %v6921_v27, %v2161_v28  ;;  %v2176_v56 = vadd.f32 %v6921_v27, %v2162_v31  ;;  %v2491_v53 = vmul.f32 %v6929_v18, %v5724_v37  ;;  %v2686_v30 = vmul.f32 %v6930_v34, %v5743_v20 }
 0x2a4   : > { %v2104_v51 = vadd.f32 %v6911_v63, %v2078_v49  ;;  %v2199_v33 = vadd.f32 %v6928_v55, %v2184_v50  ;;  %v2472_v14 = vrot.slane %v2462_v42, 2  ;;  %v5789_v58 = vmul.f32 %v6932_v19, %v5743_v20  ;;  %v6933_v49 = vld [vmem:[#allocation75_spill] sm:$0xff] }
 0x2a5   : > { %v2186_v61 = vadd.f32 %v6925_v6, %v2175_v10  ;;  %v2187_v63 = vadd.f32 %v6925_v6, %v2176_v56  ;;  %v2663_v40 = vrot.slane %v2646_v41, 3  ;;  %v2810_v31 = vmul.f32 %v6933_v49, %v5743_v20 }
 0x2a6   : > { %v2134_v3 = vadd.f32 %v6870_v35, %v2104_v51  ;;  %v2214_v25 = vadd.f32 %v6931_v36, %v2199_v33  ;;  %v6935_v51 = vld [vmem:[#allocation76_spill] sm:$0xff]  ;;  %v5815_v50 = vmul.f32 %v6939_v62, %v5743_v20  ;;  %v2453_v29 = vadd.f32 %v2443_v21, %v2424_v9 }
 0x2a7   : > { %v2201_v16 = vadd.f32 %v6928_v55, %v2186_v61  ;;  %v2202_v35 = vadd.f32 %v6928_v55, %v2187_v63  ;;  %v2853_v56 = vmul.f32 %v6935_v51, %v5743_v20  ;;  %v2828_v22 = vrot.slane %v2810_v31, 3 }
 0x2a8   : > { %v2164_v28 = vadd.f32 %v6912_v57, %v2134_v3  ;;  %v2228_v10 = vadd.f32 %v6934_v5, %v2214_v25  ;;  %v2703_v57 = vrot.slane %v2686_v30, 4  ;;  %v6936_v3 = vld [vmem:[#allocation71_spill] sm:$0xff]  ;;  %v6938_v25 = vld [vmem:[#allocation73_spill] sm:$0xff] }
 0x2a9   : > { %v2216_v42 = vadd.f32 %v6931_v36, %v2201_v16  ;;  %v2217_v33 = vadd.f32 %v6931_v36, %v2202_v35  ;;  %v5805_v41 = vmul.f32 %v6936_v3, %v5743_v20  ;;  %v5811_v11 = vmul.f32 %v6938_v25, %v5743_v20 }
 0x2aa   : > { %v2178_v61 = vadd.f32 %v6921_v27, %v2164_v28  ;;  %v2243_v16 = vadd.f32 %v6937_v24, %v2228_v10  ;;  %v6940_v28 = vld [vmem:[#allocation70_spill] sm:$0xff]  ;;  %v2871_v17 = vrot.slane %v2853_v56, 4 }
 0x2ab   : > { %v2230_v63 = vadd.f32 %v6934_v5, %v2216_v42  ;;  %v2231_v30 = vadd.f32 %v6934_v5, %v2217_v33  ;;  %v5821_v35 = vsel %vm810_vm3, %v2663_v40, %v6940_v28 }
 0x2ac   : > { %v2189_v27 = vadd.f32 %v6925_v6, %v2178_v61  ;;  %v2258_v10 = vadd.f32 %v6879_v15, %v2243_v16  ;;  %v5829_v6 = vsel %vm916_vm4, %v2703_v57, %v6941_v1  ;;  %v6942_v61 = vld [vmem:[#allocation59_spill] sm:$0xff]  ;;  %v2503_v57 = vrot.slane %v2491_v53, 3 }
 0x2ad   : > { %v2245_v42 = vadd.f32 %v6937_v24, %v2230_v63  ;;  %v2246_v2 = vadd.f32 %v6937_v24, %v2231_v30  ;;  %v2525_v33 = vmul.f32 %v6942_v61, %v5724_v37  ;;  %v2482_v63 = vadd.f32 %v2472_v14, %v2453_v29 }
 0x2ae   : > { %v2204_v45 = vadd.f32 %v6928_v55, %v2189_v27  ;;  %v2272_v31 = vadd.f32 %v6881_v54, %v2258_v10  ;;  %v6943_v55 = vld [vmem:[#allocation31_spill] sm:$0xff]  ;;  %v2643_v29 = vmul.f32 %v6927_v47, %v5724_v37 }
 0x2af   : > { %v2260_v40 = vadd.f32 %v6879_v15, %v2245_v42  ;;  %v2261_v21 = vadd.f32 %v6879_v15, %v2246_v2  ;;  %v5841_v16 = vsel %vm810_vm3, %v2828_v22, %v6943_v55  ;;  %v6945_v42 = vld [vmem:[#allocation81_spill] sm:$0xff]  ;;  %v5853_v2 = vmul.f32 %v6905_v26, %v5724_v37 }
 0x2b0   : > { %v2219_v9 = vadd.f32 %v6931_v36, %v2204_v45  ;;  %6944 = vst [vmem:[#allocation53_spill] sm:$0xff] %v5841_v16  ;;  %v2283_v30 = vadd.f32 %v6886_v60, %v2272_v31  ;;  %v5847_v10 = vsel %vm916_vm4, %v2871_v17, %v6945_v42  ;;  %v2537_v36 = vrot.slane %v2525_v33, 4 }
 0x2b1   : > { %v2274_v27 = vadd.f32 %v6881_v54, %v2260_v40  ;;  %6946 = vst [vmem:[#allocation16_spill] sm:$0xff] %v5847_v10  ;;  %v2275_v45 = vadd.f32 %v6881_v54, %v2261_v21  ;;  %6947 = vst [vmem:[#allocation17_spill] sm:$0xff] %v5853_v2  ;;  %v5859_v40 = vmul.f32 %v6907_v7, %v5724_v37 }
 0x2b2   : > { %v2233_v56 = vadd.f32 %v6934_v5, %v2219_v9  ;;  %v2298_v22 = vadd.f32 %v6890_v0, %v2283_v30  ;;  %v2504_v5 = vsel %vm810_vm3, %v2503_v57, %v6904_v38  ;;  %v2683_v33 = vmul.f32 %v6930_v34, %v5724_v37 }
 0x2b3   : > { %v2285_v53 = vadd.f32 %v6886_v60, %v2274_v27  ;;  %6948 = vst [vmem:[#allocation18_spill] sm:$0xff] %v5859_v40  ;;  %v2286_v14 = vadd.f32 %v6886_v60, %v2275_v45  ;;  %v2516_v21 = vadd.f32 %v2504_v5, %v2482_v63  ;;  %v5873_v27 = vmul.f32 %v6932_v19, %v5724_v37 }
 0x2b4   : > { %v2248_v17 = vadd.f32 %v6937_v24, %v2233_v56  ;;  %v2313_v9 = vadd.f32 %v6893_v48, %v2298_v22  ;;  %v2538_v56 = vsel %vm916_vm4, %v2537_v36, %v6913_v13  ;;  %v2657_v63 = vrot.slane %v2643_v29, 3 }
 0x2b5   : > { %v2300_v31 = vadd.f32 %v6890_v0, %v2285_v53  ;;  %6949 = vst [vmem:[#allocation25_spill] sm:$0xff] %v5873_v27  ;;  %v2301_v24 = vadd.f32 %v6890_v0, %v2286_v14  ;;  %v2697_v10 = vrot.slane %v2683_v33, 4  ;;  %v5891_v57 = vadd.f32 %v2538_v56, %v2516_v21  ;;  %v6957_v56 = vld [vmem:[#allocation26_spill] sm:$0xff] }
 0x2b6   : > { %v2263_v30 = vadd.f32 %v6879_v15, %v2248_v17  ;;  %v2327_v53 = vadd.f32 %v6895_v12, %v2313_v9  ;;  %v6950_v15 = vld [vmem:[#allocation80_spill] sm:$0xff]  ;;  %v5907_v21 = vsel %vm810_vm3, %v2657_v63, %v6940_v28 }
 0x2b7   : > { %v2315_v45 = vadd.f32 %v6893_v48, %v2300_v31  ;;  %v2316_v46 = vadd.f32 %v6893_v48, %v2301_v24  ;;  %v5887_v17 = vmul.f32 %v6950_v15, %v5743_v20  ;;  %v6952_v31 = vld [vmem:[#allocation78_spill] sm:$0xff]  ;;  %v6955_v24 = vld [vmem:[#allocation79_spill] sm:$0xff]  ;;  %6956 = vst [vmem:[#allocation29_spill] sm:$0xff] %v5907_v21  ;;  %v6960_v21 = vld [vmem:[#allocation85_spill] sm:$0xff] }
 0x2b8   : > { %v2277_v5 = vadd.f32 %v6881_v54, %v2263_v30  ;;  %v2342_v14 = vadd.f32 %v6896_v4, %v2327_v53  ;;  %v2979_v9 = vmul.f32 %v6952_v31, %v5743_v20  ;;  %v6953_v30 = vld [vmem:[#allocation77_spill] sm:$0xff]  ;;  %v3019_v22 = vmul.f32 %v6955_v24, %v5743_v20 }
 0x2b9   : > { %6951 = vst [vmem:[#allocation20_spill] sm:$0xff] %v5887_v17  ;;  %v2329_v36 = vadd.f32 %v6895_v12, %v2315_v45  ;;  %v2330_v54 = vadd.f32 %v6895_v12, %v2316_v46  ;;  %v5899_v33 = vmul.f32 %v6953_v30, %v5743_v20  ;;  %v5924_v2 = vmul.f32 %v6960_v21, %v5743_v20  ;;  %v6964_v17 = vld [vmem:[#allocation24_spill] sm:$0xff]  ;;  %v6972_v21 = vld [vmem:[#allocation83_spill] sm:$0xff] }
 0x2ba   : > { %v2288_v29 = vadd.f32 %v6886_v60, %v2277_v5  ;;  %v2357_v53 = vadd.f32 %v6899_v23, %v2342_v14  ;;  %v5911_v60 = vmul.f32 %v6957_v56, %v5743_v20  ;;  %v2994_v63 = vrot.slane %v2979_v9, 3 }
 0x2bb   : > { %6954 = vst [vmem:[#allocation21_spill] sm:$0xff] %v5899_v33  ;;  %v2344_v45 = vadd.f32 %v6896_v4, %v2329_v36  ;;  %v2345_v5 = vadd.f32 %v6896_v4, %v2330_v54  ;;  %v5917_v33 = vsel %vm916_vm4, %v2697_v10, %v6941_v1  ;;  %6961 = vst [vmem:[#allocation30_spill] sm:$0xff] %v5924_v2  ;;  %v6962_v54 = vld [vmem:[#allocation86_spill] sm:$0xff] }
 0x2bc   : > { %6958 = vst [vmem:[#allocation19_spill] sm:$0xff] %v5911_v60  ;;  %v2303_v46 = vadd.f32 %v6890_v0, %v2288_v29  ;;  %6959 = vst [vmem:[#allocation22_spill] sm:$0xff] %v5917_v33  ;;  %v2371_v40 = vadd.f32 %v6900_v39, %v2357_v53  ;;  %v3034_v29 = vrot.slane %v3019_v22, 4  ;;  %v5930_v10 = vmul.f32 %v6962_v54, %v5743_v20  ;;  %v3486_v22 = vld [vmem:[%s6535_s11 + $0x48] sm:$0xf]  ;;  %v6968_v60 = vld [vmem:[#allocation33_spill] sm:$0xff] }
 0x2bd   : > { %v2359_v14 = vadd.f32 %v6899_v23, %v2344_v45  ;;  %v2360_v0 = vadd.f32 %v6899_v23, %v2345_v5  ;;  %v3311_v45 = vld [vmem:[%s6532_s8] sm:$0xff]  ;;  %3849 = vmatprep.subr.msk.mxu0 %vm916_vm4, %v3486_v22 }
 0x2be   : > { %v2318_v16 = vadd.f32 %v6893_v48, %v2303_v46  ;;  %6963 = vst [vmem:[#allocation36_spill] sm:$0xff] %v5930_v10  ;;  %v2383_v9 = vadd.f32 %v5661_v32, %v2371_v40  ;;  %v5940_v48 = vmul.f32 %v6964_v17, %v5743_v20  ;;  %3314 = vperm.xlu1 %3957, %v3311_v45   ;;  %v3485_v46 = vld [vmem:[%s6535_s11 + $0x40] sm:$0xf]  ;;  %v6966_v40 = vld [vmem:[#allocation84_spill] sm:$0xff]  ;;  %v3577_v45 = vld [vmem:[%s6534_s10 + $0x8] sm:$0xff] }
 0x2bf   : > { %v2373_v53 = vadd.f32 %v6900_v39, %v2359_v14  ;;  %v2374_v14 = vadd.f32 %v6900_v39, %v2360_v0  ;;  %v5952_v36 = vmul.f32 %v6966_v40, %v5743_v20  ;;  %v5956_v17 = vmul.f32 %v6968_v60, %v5743_v20  ;;  %v6970_v40 = vld [vmem:[#allocation82_spill] sm:$0xff]  ;;  %3850 = vmatpush1.msk.msra.mxu0 %vm916_vm4, %v3485_v46  ;;  %v3578_v46 = vld [vmem:[%s6534_s10 + $0x10] sm:$0xff] }
 0x2c0   : > { %6965 = vst [vmem:[#allocation32_spill] sm:$0xff] %v5940_v48  ;;  %v2332_v5 = vadd.f32 %v6895_v12, %v2318_v16  ;;  %v3484_v12 = vld [vmem:[%s6535_s11 + $0x38] sm:$0xff]  ;;  %v3483_v16 = vld [vmem:[%s6535_s11 + $0x30] sm:$0xff]  ;;  %v5971_v20 = vsel %vm810_vm3, %v2994_v63, %v6970_v40  ;;  %v5979_v33 = vsel %vm916_vm4, %v3034_v29, %v6972_v21  ;;  %v3482_v63 = vld [vmem:[%s6535_s11 + $0x28] sm:$0xff]  ;;  %v5994_v29 = vmul.f32 %v6936_v3, %v5724_v37 }
 0x2c1   : > { %6967 = vst [vmem:[#allocation23_spill] sm:$0xff] %v5952_v36  ;;  %6969 = vst [vmem:[#allocation28_spill] sm:$0xff] %v5956_v17  ;;  %v2385_v0 = vadd.f32 %v5661_v32, %v2373_v53  ;;  %v2400_v36 = vrot.slane %v2383_v9, 6  ;;  %v2386_v54 = vadd.f32 %v5661_v32, %v2374_v14  ;;  %3521 = vmatprep.subr.mxu0 %v3484_v12  ;;  %v3481_v53 = vld [vmem:[%s6535_s11 + $0x20] sm:$0xff] }
 0x2c2   : > { %6971 = vst [vmem:[#allocation55_spill] sm:$0xff] %v5971_v20  ;;  %v2347_v22 = vadd.f32 %v6896_v4, %v2332_v5  ;;  %6973 = vst [vmem:[#allocation65_spill] sm:$0xff] %v5979_v33  ;;  %3587 = vperm.xlu1 %3957, %v3577_v45   ;;  %3522 = vmatpush1.msra.mxu0 %v3483_v16  ;;  %v3480_v5 = vld [vmem:[%s6535_s11 + $0x18] sm:$0xff] }
 0x2c3   : > { %v2402_v9 = vrot.slane %v2385_v0, 6  ;;  %v5989_v4 = vsel %vm1218_vm6, 0.0, %v2400_v36  ;;  %6975 = vst [vmem:[#allocation69_spill] sm:$0xff] %v5994_v29  ;;  %v2403_v14 = vrot.slane %v2386_v54, 6  ;;  %v6003_v36 = vmul.f32 %v6938_v25, %v5724_v37  ;;  %3523 = vmatprep.subr.mxu0 %v3482_v63 }
 0x2c4   : > { %6974 = vst [vmem:[#allocation68_spill] sm:$0xff] %v5989_v4  ;;  %v2362_v12 = vadd.f32 %v6899_v23, %v2347_v22  ;;  %v6013_v16 = vmul.f32 %v6926_v8, %v5989_v4  ;;  %v6017_v23 = vmul.f32 %v6939_v62, %v5724_v37  ;;  %v6021_v54 = vmul.f32 %v6933_v49, %v5724_v37  ;;  %v3479_v22 = vld [vmem:[%s6535_s11 + $0x10] sm:$0xff] }
 0x2c5   : > { %6976 = vst [vmem:[#allocation44_spill] sm:$0xff] %v6003_v36  ;;  %v6009_v45 = vsel %vm1218_vm6, 0.0, %v2402_v9  ;;  %3524 = vmatpush1.msra.mxu0 %v3481_v53  ;;  %v6027_v63 = vsel %vm1218_vm6, 0.0, %v2403_v14  ;;  %v6034_v27 = vmul.f32 %v6919_v59, %v5989_v4 }
 0x2c6   : > { %6977 = vst [vmem:[#allocation46_spill] sm:$0xff] %v6017_v23  ;;  %6978 = vst [vmem:[#allocation67_spill] sm:$0xff] %v6021_v54  ;;  %v2376_v9 = vadd.f32 %v6900_v39, %v2362_v12  ;;  %v2434_v0 = vmul.f32 %v6919_v59, %v6009_v45  ;;  %3525 = vmatprep.subr.mxu0 %v3480_v5  ;;  %v2435_v53 = vmul.f32 %v6919_v59, %v6027_v63  ;;  %v3579_v59 = vld [vmem:[%s6534_s10 + $0x18] sm:$0xff] }
 0x2c7   : > { %v2464_v60 = vmul.f32 %v6922_v44, %v6027_v63  ;;  %v2493_v14 = vmul.f32 %v6929_v18, %v6027_v63  ;;  %v2425_v39 = vmul.f32 %v6926_v8, %v6009_v45  ;;  %3592 = vperm.xlu1 %3957, %v3578_v46   ;;  %v2527_v17 = vmul.f32 %v6942_v61, %v6027_v63 }
 0x2c8   : > { %v2388_v12 = vadd.f32 %v5661_v32, %v2376_v9  ;;  %v2444_v48 = vrot.slane %v2434_v0, 1  ;;  %v2463_v5 = vmul.f32 %v6922_v44, %v6009_v45  ;;  %3526 = vmatpush1.msra.mxu0 %v3479_v22  ;;  %v2426_v23 = vmul.f32 %v6926_v8, %v6027_v63 }
 0x2c9   : > { %v2445_v10 = vrot.slane %v2435_v53, 1  ;;  %v2507_v54 = vrot.slane %v2493_v14, 3  ;;  %v2492_v32 = vmul.f32 %v6929_v18, %v6009_v45  ;;  %v2474_v9 = vrot.slane %v2464_v60, 2 }
 0x2ca   : > { %v2405_v46 = vrot.slane %v2388_v12, 6  ;;  %v2454_v36 = vadd.f32 %v2444_v48, %v2425_v39  ;;  %v2473_v0 = vrot.slane %v2463_v5, 2  ;;  %v2541_v2 = vrot.slane %v2527_v17, 4 }
 0x2cb   : > { %v2455_v29 = vadd.f32 %v2445_v10, %v2426_v23  ;;  %v2505_v37 = vrot.slane %v2492_v32, 3  ;;  %v2526_v33 = vmul.f32 %v6942_v61, %v6009_v45  ;;  %3597 = vperm.xlu1 %3957, %v3579_v59   ;;  %v2461_v53 = vmul.f32 %v6922_v44, %v5989_v4 }
 0x2cc   : > { %v6059_v22 = vsel %vm1218_vm6, 0.0, %v2405_v46  ;;  %v2483_v8 = vadd.f32 %v2473_v0, %v2454_v36  ;;  %v2490_v14 = vmul.f32 %v6929_v18, %v5989_v4  ;;  %v2508_v10 = vsel %vm810_vm3, %v2507_v54, %v6904_v38 }
 0x2cd   : > { %6979 = vst [vmem:[#allocation37_spill] sm:$0xff] %v6059_v22  ;;  %v2484_v60 = vadd.f32 %v2474_v9, %v2455_v29  ;;  %v6069_v17 = vmul.f32 %v6938_v25, %v6059_v22  ;;  %v6073_v48 = vmul.f32 %v6942_v61, %v5989_v4  ;;  %v2811_v36 = vmul.f32 %v6933_v49, %v6059_v22 }
 0x2ce   : > { %v2854_v44 = vmul.f32 %v6935_v51, %v6059_v22  ;;  %v2506_v18 = vsel %vm810_vm3, %v2505_v37, %v6904_v38  ;;  %v2539_v29 = vrot.slane %v2526_v33, 4  ;;  %v2542_v54 = vsel %vm916_vm4, %v2541_v2, %v6913_v13 }
 0x2cf   : > { %v2518_v23 = vadd.f32 %v2508_v10, %v2484_v60  ;;  %v2517_v39 = vadd.f32 %v2506_v18, %v2483_v8  ;;  %v2561_v12 = vmul.f32 %v6932_v19, %v6027_v63  ;;  %v6087_v61 = vmul.f32 %v6939_v62, %v6059_v22 }
 0x2d0   : > { %v2830_v5 = vrot.slane %v2811_v36, 3  ;;  %v2540_v59 = vsel %vm916_vm4, %v2539_v29, %v6913_v13  ;;  %v2577_v37 = vmul.f32 %v6905_v26, %v6027_v63  ;;  %v2611_v2 = vmul.f32 %v6907_v7, %v6027_v63 }
 0x2d1   : > { %v2552_v33 = vadd.f32 %v2542_v54, %v2518_v23  ;;  %v2551_v32 = vadd.f32 %v2540_v59, %v2517_v39  ;;  %v2645_v46 = vmul.f32 %v6927_v47, %v6027_v63  ;;  %v2726_v9 = vmul.f32 %v6936_v3, %v6059_v22 }
 0x2d2   : > { %v2754_v0 = vrot.slane %v6069_v17, 1  ;;  %v2873_v8 = vrot.slane %v2854_v44, 4  ;;  %v2685_v60 = vmul.f32 %v6930_v34, %v6027_v63  ;;  %v2589_v18 = vrot.slane %v2577_v37, 1 }
 0x2d3   : > { %v2568_v10 = vadd.f32 %v5789_v58, %v2552_v33  ;;  %v2567_v36 = vadd.f32 %v2561_v12, %v2551_v32  ;;  %v2661_v29 = vrot.slane %v2645_v46, 3  ;;  %v2788_v23 = vrot.slane %v6087_v61, 2 }
 0x2d4   : > { %v2831_v54 = vsel %vm810_vm3, %v2830_v5, %v6943_v55  ;;  %v2701_v39 = vrot.slane %v2685_v60, 4  ;;  %v6108_v59 = vmul.f32 %v6950_v15, %v6059_v22  ;;  %v6980_v17 = vrot.slane %v5765_v52, 1 }
 0x2d5   : > { %v2601_v20 = vadd.f32 %v2589_v18, %v2567_v36  ;;  %v2623_v4 = vrot.slane %v2611_v2, 2  ;;  %v2980_v58 = vmul.f32 %v6952_v31, %v6059_v22  ;;  %v2874_v12 = vsel %vm916_vm4, %v2873_v8, %v6945_v42 }
 0x2d6   : > { %v2602_v44 = vadd.f32 %v6980_v17, %v2568_v10  ;;  %v6118_v61 = vmul.f32 %v6953_v30, %v6059_v22  ;;  %v6122_v5 = vmul.f32 %v6957_v56, %v6059_v22  ;;  %v3020_v52 = vmul.f32 %v6955_v24, %v6059_v22 }
 0x2d7   : > { %v6981_v37 = vrot.slane %v5777_v43, 2  ;;  %v2635_v32 = vadd.f32 %v2623_v4, %v2601_v20  ;;  %v2662_v2 = vsel %vm810_vm3, %v2661_v29, %v6940_v28  ;;  %v2442_v46 = vrot.slane %v6034_v27, 1 }
 0x2d8   : > { %v2702_v8 = vsel %vm916_vm4, %v2701_v39, %v6941_v1  ;;  %v2923_v60 = vrot.slane %v6108_v59, 1  ;;  %v2996_v10 = vrot.slane %v2980_v58, 3  ;;  %v2501_v36 = vrot.slane %v2490_v14, 3 }
 0x2d9   : > { %v2636_v33 = vadd.f32 %v6981_v37, %v2602_v44  ;;  %v2675_v17 = vadd.f32 %v2662_v2, %v2635_v32  ;;  %v2452_v22 = vadd.f32 %v2442_v46, %v6013_v16  ;;  %v2471_v43 = vrot.slane %v2461_v53, 2 }
 0x2da   : > { %v3036_v44 = vrot.slane %v3020_v52, 4  ;;  %v2502_v20 = vsel %vm810_vm3, %v2501_v36, %v6904_v38  ;;  %v2535_v4 = vrot.slane %v6073_v48, 4  ;;  %v2560_v27 = vmul.f32 %v6932_v19, %v6009_v45 }
 0x2db   : > { %v2676_v18 = vadd.f32 %v5821_v35, %v2636_v33  ;;  %v2715_v39 = vadd.f32 %v2702_v8, %v2675_v17  ;;  %v2481_v58 = vadd.f32 %v2471_v43, %v2452_v22  ;;  %v2576_v35 = vmul.f32 %v6905_v26, %v6009_v45 }
 0x2dc   : > { %v2566_v14 = vadd.f32 %v2560_v27, %v5891_v57  ;;  %v2610_v16 = vmul.f32 %v6907_v7, %v6009_v45  ;;  %v2644_v38 = vmul.f32 %v6927_v47, %v6009_v45  ;;  %v2684_v53 = vmul.f32 %v6930_v34, %v6009_v45 }
 0x2dd   : > { %v2716_v29 = vadd.f32 %v5829_v6, %v2676_v18  ;;  %v2731_v52 = vadd.f32 %v5805_v41, %v2715_v39  ;;  %v2515_v6 = vadd.f32 %v2502_v20, %v2481_v58  ;;  %v2588_v37 = vrot.slane %v2576_v35, 1 }
 0x2de   : > { %v2536_v22 = vsel %vm916_vm4, %v2535_v4, %v6913_v13  ;;  %v2622_v33 = vrot.slane %v2610_v16, 2  ;;  %v2659_v32 = vrot.slane %v2644_v38, 3  ;;  %v2699_v57 = vrot.slane %v2684_v53, 4  ;;  %v6984_v4 = vld [vmem:[#allocation25_spill] sm:$0xff] }
 0x2df   : > { %v2732_v48 = vadd.f32 %v2726_v9, %v2716_v29  ;;  %v6982_v46 = vrot.slane %v5811_v11, 1  ;;  %v2549_v36 = vadd.f32 %v2536_v22, %v2515_v6  ;;  %v2600_v18 = vadd.f32 %v2588_v37, %v2566_v14  ;;  %v6988_v37 = vld [vmem:[#allocation16_spill] sm:$0xff] }
 0x2e0   : > { %v2957_v17 = vrot.slane %v6122_v5, 2  ;;  %v2997_v9 = vsel %vm810_vm3, %v2996_v10, %v6970_v40  ;;  %v3037_v41 = vsel %vm916_vm4, %v3036_v44, %v6972_v21  ;;  %v2660_v13 = vsel %vm810_vm3, %v2659_v32, %v6940_v28 }
 0x2e1   : > { %v2766_v2 = vadd.f32 %v2754_v0, %v2732_v48  ;;  %v2765_v8 = vadd.f32 %v6982_v46, %v2731_v52  ;;  %v6983_v20 = vrot.slane %v5815_v50, 2  ;;  %v2565_v11 = vadd.f32 %v6984_v4, %v2549_v36  ;;  %v6986_v50 = vld [vmem:[#allocation17_spill] sm:$0xff] }
 0x2e2   : > { %v2634_v27 = vadd.f32 %v2622_v33, %v2600_v18  ;;  %v2700_v29 = vsel %vm916_vm4, %v2699_v57, %v6941_v1  ;;  %v2724_v5 = vmul.f32 %v6936_v3, %v6027_v63  ;;  %v2739_v10 = vmul.f32 %v6938_v25, %v6009_v45  ;;  %v6991_v18 = vld [vmem:[#allocation38_spill] sm:$0xff] }
 0x2e3   : > { %v2800_v43 = vadd.f32 %v2788_v23, %v2766_v2  ;;  %v2799_v0 = vadd.f32 %v6983_v20, %v2765_v8  ;;  %v2740_v44 = vmul.f32 %v6938_v25, %v6027_v63  ;;  %v6985_v23 = vld [vmem:[#allocation53_spill] sm:$0xff]  ;;  %v6987_v35 = vrot.slane %v6986_v50, 1  ;;  %v6995_v50 = vld [vmem:[#allocation22_spill] sm:$0xff] }
 0x2e4   : > { %v2674_v16 = vadd.f32 %v2660_v13, %v2634_v27  ;;  %v2773_v53 = vmul.f32 %v6939_v62, %v6009_v45  ;;  %v2774_v48 = vmul.f32 %v6939_v62, %v6027_v63  ;;  %v2808_v52 = vmul.f32 %v6933_v49, %v6009_v45 }
 0x2e5   : > { %v2843_v39 = vadd.f32 %v2831_v54, %v2800_v43  ;;  %v2842_v58 = vadd.f32 %v6985_v23, %v2799_v0  ;;  %v2599_v14 = vadd.f32 %v6987_v35, %v2565_v11  ;;  %v2752_v38 = vrot.slane %v2740_v44, 1  ;;  %v6989_v54 = vld [vmem:[#allocation18_spill] sm:$0xff]  ;;  %v6992_v43 = vld [vmem:[#allocation29_spill] sm:$0xff] }
 0x2e6   : > { %v6990_v33 = vrot.slane %v6989_v54, 2  ;;  %v2714_v57 = vadd.f32 %v2700_v29, %v2674_v16  ;;  %v2809_v2 = vmul.f32 %v6933_v49, %v6027_v63  ;;  %v2824_v46 = vrot.slane %v2808_v52, 3  ;;  %v6993_v44 = vld [vmem:[#allocation57_spill] sm:$0xff] }
 0x2e7   : > { %v2886_v6 = vadd.f32 %v2874_v12, %v2843_v39  ;;  %v2885_v22 = vadd.f32 %v6988_v37, %v2842_v58  ;;  %v2851_v8 = vmul.f32 %v6935_v51, %v6009_v45  ;;  %v2852_v36 = vmul.f32 %v6935_v51, %v6027_v63 }
 0x2e8   : > { %v2633_v32 = vadd.f32 %v6990_v33, %v2599_v14  ;;  %v2730_v0 = vadd.f32 %v2724_v5, %v2714_v57  ;;  %v2723_v4 = vmul.f32 %v6936_v3, %v6009_v45  ;;  %v2751_v11 = vrot.slane %v2739_v10, 1 }
 0x2e9   : > { %v2902_v13 = vadd.f32 %v6991_v18, %v2886_v6  ;;  %v2901_v12 = vadd.f32 %v6118_v61, %v2885_v22  ;;  %v2786_v27 = vrot.slane %v2774_v48, 2  ;;  %v2826_v29 = vrot.slane %v2809_v2, 3  ;;  %v6996_v6 = vld [vmem:[#allocation35_spill] sm:$0xff] }
 0x2ea   : > { %v2673_v20 = vadd.f32 %v6992_v43, %v2633_v32  ;;  %v6994_v39 = vrot.slane %v6993_v44, 1  ;;  %v2764_v14 = vadd.f32 %v2752_v38, %v2730_v0  ;;  %v2785_v16 = vrot.slane %v2773_v53, 2 }
 0x2eb   : > { %v2935_v58 = vadd.f32 %v2923_v60, %v2901_v12  ;;  %v2825_v61 = vsel %vm810_vm3, %v2824_v46, %v6943_v55  ;;  %v2867_v5 = vrot.slane %v2851_v8, 4  ;;  %v2869_v52 = vrot.slane %v2852_v36, 4 }
 0x2ec   : > { %v2936_v23 = vadd.f32 %v6994_v39, %v2902_v13  ;;  %v2713_v35 = vadd.f32 %v6995_v50, %v2673_v20  ;;  %v6997_v37 = vrot.slane %v6996_v6, 2  ;;  %v2798_v54 = vadd.f32 %v2786_v27, %v2764_v14 }
 0x2ed   : > { %v2969_v48 = vadd.f32 %v2957_v17, %v2935_v58  ;;  %v2827_v33 = vsel %vm810_vm3, %v2826_v29, %v6943_v55  ;;  %v2909_v59 = vmul.f32 %v6950_v15, %v6027_v63  ;;  %v2978_v60 = vmul.f32 %v6952_v31, %v6027_v63  ;;  %v7000_v29 = vld [vmem:[#allocation43_spill] sm:$0xff]  ;;  %v7001_v58 = vld [vmem:[#allocation21_spill] sm:$0xff] }
 0x2ee   : > { %v2970_v10 = vadd.f32 %v6997_v37, %v2936_v23  ;;  %v2729_v22 = vadd.f32 %v2723_v4, %v2713_v35  ;;  %v3018_v38 = vmul.f32 %v6955_v24, %v6027_v63  ;;  %v2841_v2 = vadd.f32 %v2827_v33, %v2798_v54  ;;  %v6998_v4 = vld [vmem:[#allocation37_spill] sm:$0xff] }
 0x2ef   : > { %v3009_v32 = vadd.f32 %v2997_v9, %v2969_v48  ;;  %v2870_v17 = vsel %vm916_vm4, %v2869_v52, %v6945_v42  ;;  %v2943_v46 = vmul.f32 %v6957_v56, %v6027_v63  ;;  %v2992_v8 = vrot.slane %v2978_v60, 3  ;;  %v7003_v52 = vld [vmem:[#allocation58_spill] sm:$0xff] }
 0x2f0   : > { %v3010_v53 = vadd.f32 %v6970_v40, %v2970_v10  ;;  %v2763_v57 = vadd.f32 %v2751_v11, %v2729_v22  ;;  %v3032_v36 = vrot.slane %v3018_v38, 4  ;;  %v2884_v43 = vadd.f32 %v2870_v17, %v2841_v2  ;;  %v6999_v11 = vld [vmem:[#allocation85_spill] sm:$0xff]  ;;  %v7011_v17 = vld [vmem:[#allocation40_spill] sm:$0xff] }
 0x2f1   : > { %v3049_v13 = vadd.f32 %v3037_v41, %v3009_v32  ;;  %v2868_v20 = vsel %vm916_vm4, %v2867_v5, %v6945_v42  ;;  %v2893_v9 = vmul.f32 %v6953_v30, %v6027_v63  ;;  %v2921_v0 = vrot.slane %v2909_v59, 1  ;;  %v7008_v59 = vld [vmem:[#allocation84_spill] sm:$0xff] }
 0x2f2   : > { %v3050_v18 = vadd.f32 %v6972_v21, %v3010_v53  ;;  %v2797_v12 = vadd.f32 %v2785_v16, %v2763_v57  ;;  %v3073_v27 = vmul.f32 %v6999_v11, %v6998_v4  ;;  %v2900_v50 = vadd.f32 %v7001_v58, %v2884_v43  ;;  %v7002_v16 = vld [vmem:[#allocation86_spill] sm:$0xff]  ;;  %v7009_v53 = vld [vmem:[#allocation24_spill] sm:$0xff] }
 0x2f3   : > { %v3064_v39 = vadd.f32 %v7000_v29, %v3049_v13  ;;  %v2955_v41 = vrot.slane %v2943_v46, 2  ;;  %v2993_v35 = vsel %vm810_vm3, %v2992_v8, %v6970_v40  ;;  %v3033_v14 = vsel %vm916_vm4, %v3032_v36, %v6972_v21  ;;  %v7010_v57 = vld [vmem:[#allocation68_spill] sm:$0xff]  ;;  %v7017_v58 = vld [vmem:[#allocation34_spill] sm:$0xff] }
 0x2f4   : > { %v3065_v44 = vadd.f32 %v7000_v29, %v3050_v18  ;;  %v2840_v23 = vadd.f32 %v2825_v61, %v2797_v12  ;;  %v3103_v5 = vmul.f32 %v7002_v16, %v6998_v4  ;;  %v7004_v6 = vrot.slane %v7003_v52, 1  ;;  %v7006_v61 = vld [vmem:[#allocation20_spill] sm:$0xff]  ;;  %v7014_v12 = vld [vmem:[#allocation19_spill] sm:$0xff] }
 0x2f5   : > { %v7007_v54 = vrot.slane %v7006_v61, 1  ;;  %v3058_v60 = vmul.f32 %v7008_v59, %v6998_v4  ;;  %v3083_v38 = vrot.slane %v3073_v27, 1  ;;  %v3134_v32 = vmul.f32 %v7009_v53, %v6998_v4  ;;  %v6256_v27 = vld [vmem:[%s6529_s5 + $0x18] ss:$0 sm:$0xff] }
 0x2f6   : > { %v3095_v37 = vadd.f32 %v7004_v6, %v3065_v44  ;;  %v7005_v10 = vmov %v7004_v6  ;;  %v2883_v22 = vadd.f32 %v2868_v20, %v2840_v23  ;;  %v2558_v2 = vmul.f32 %v6932_v19, %v7010_v57  ;;  %v7016_v19 = vld [vmem:[#allocation27_spill] sm:$0xff] }
 0x2f7   : > { %v3094_v48 = vadd.f32 %v7005_v10, %v3064_v39  ;;  %v2934_v33 = vadd.f32 %v7007_v54, %v2900_v50  ;;  %v7012_v46 = vrot.slane %v7011_v17, 2  ;;  %v7015_v43 = vrot.slane %v7014_v12, 2  ;;  %v7018_v6 = vld [vmem:[#allocation55_spill] sm:$0xff] }
 0x2f8   : > { %v2899_v13 = vadd.f32 %v2893_v9, %v2883_v22  ;;  %v3113_v29 = vrot.slane %v3103_v5, 2  ;;  %v3169_v44 = vmul.f32 %v6256_v27, %v6998_v4  ;;  %v2564_v39 = vadd.f32 %v2558_v2, %v7016_v19  ;;  %v7019_v22 = vld [vmem:[#allocation87_spill] sm:$0xff]  ;;  %v7021_v19 = vld [vmem:[#allocation14_spill] sm:$0xff] }
 0x2f9   : > { %v3125_v8 = vadd.f32 %v7012_v46, %v3095_v37  ;;  %v7013_v36 = vmov %v7012_v46  ;;  %v2968_v20 = vadd.f32 %v7015_v43, %v2934_v33  ;;  %v2574_v23 = vmul.f32 %v6905_v26, %v7010_v57  ;;  %v7020_v33 = vld [vmem:[#allocation65_spill] sm:$0xff] }
 0x2fa   : > { %v3124_v18 = vadd.f32 %v7013_v36, %v3094_v48  ;;  %v2933_v52 = vadd.f32 %v2921_v0, %v2899_v13  ;;  %v2608_v10 = vmul.f32 %v6907_v7, %v7010_v57  ;;  %v2642_v48 = vmul.f32 %v6927_v47, %v7010_v57  ;;  %v6278_v0 = vld [vmem:[%s6530_s6] ss:$0 sm:$0xff] }
 0x2fb   : > { %v3160_v50 = vadd.f32 %v7017_v58, %v3125_v8  ;;  %v3008_v5 = vadd.f32 %v7018_v6, %v2968_v20  ;;  %v2586_v37 = vrot.slane %v2574_v23, 1  ;;  %v2682_v4 = vmul.f32 %v6930_v34, %v7010_v57 }
 0x2fc   : > { %v3159_v9 = vadd.f32 %v7017_v58, %v3124_v18  ;;  %v2967_v54 = vadd.f32 %v2955_v41, %v2933_v52  ;;  %v2620_v17 = vrot.slane %v2608_v10, 2  ;;  %v2655_v46 = vrot.slane %v2642_v48, 3 }
 0x2fd   : > { %v3195_v61 = vadd.f32 %v7019_v22, %v3160_v50  ;;  %v3048_v2 = vadd.f32 %v7020_v33, %v3008_v5  ;;  %v2598_v7 = vadd.f32 %v2586_v37, %v2564_v39  ;;  %v2695_v47 = vrot.slane %v2682_v4, 4  ;;  %v7022_v37 = vld [vmem:[#allocation23_spill] sm:$0xff] }
 0x2fe   : > { %v3194_v26 = vadd.f32 %v7019_v22, %v3159_v9  ;;  %v3007_v36 = vadd.f32 %v2993_v35, %v2967_v54  ;;  %v3147_v13 = vrot.slane %v3134_v32, 3  ;;  %v3182_v41 = vrot.slane %v3169_v44, 4 }
 0x2ff   : > { %v3207_v8 = vadd.f32 %v6278_v0, %v3195_v61  ;;  %v3063_v18 = vadd.f32 %v3058_v60, %v3048_v2  ;;  %v2632_v12 = vadd.f32 %v2620_v17, %v2598_v7  ;;  %v2656_v43 = vsel %vm810_vm3, %v2655_v46, %v6940_v28  ;;  %v7023_v61 = vld [vmem:[#allocation54_spill] sm:$0xff] }
 0x300   : > { %v3206_v34 = vadd.f32 %v6278_v0, %v3194_v26  ;;  %v3047_v9 = vadd.f32 %v3033_v14, %v3007_v36  ;;  %v2696_v5 = vsel %vm916_vm4, %v2695_v47, %v6941_v1  ;;  %v2850_v26 = vmul.f32 %v6935_v51, %v7023_v61  ;;  %v7024_v2 = vld [vmem:[#allocation30_spill] sm:$0xff]  ;;  %v7026_v47 = vld [vmem:[#allocation69_spill] sm:$0xff] }
 0x301   : > { %v3295_v20 = vcombine.high %v3207_v8, %v3207_v8  ;;  %v3302_v23 = vrot.slane %v3207_v8, %v7021_v19  ;;  %v3093_v52 = vadd.f32 %v3083_v38, %v3063_v18  ;;  %v2672_v6 = vadd.f32 %v2656_v43, %v2632_v12  ;;  %v7028_v43 = vld [vmem:[#allocation67_spill] sm:$0xff] }
 0x302   : > { %v3279_v50 = vcombine.high %v3206_v34, %v3206_v34  ;;  %v3286_v39 = vrot.slane %v3206_v34, %v7021_v19  ;;  %v3062_v10 = vadd.f32 %v7022_v37, %v3047_v9  ;;  %v3148_v33 = vsel %vm810_vm3, %v3147_v13, %v7017_v58  ;;  %v7027_v34 = vld [vmem:[#allocation44_spill] sm:$0xff] }
 0x303   : > { %v3309_v35 = vrot.slane %v3295_v20, %v7021_v19  ;;  %v3310_v60 = vcombine.high %v3302_v23, %v3302_v23  ;;  %v3123_v48 = vadd.f32 %v3113_v29, %v3093_v52  ;;  %v2712_v4 = vadd.f32 %v2696_v5, %v2672_v6  ;;  %v7031_v52 = vld [vmem:[#allocation46_spill] sm:$0xff] }
 0x304   : > { %v3293_v32 = vrot.slane %v3279_v50, %v7021_v19  ;;  %v3294_v44 = vcombine.high %v3286_v39, %v3286_v39  ;;  %v7025_v7 = vrot.slane %v7024_v2, 1  ;;  %v2750_v36 = vrot.slane %v7027_v34, 1  ;;  %v7038_v2 = vld [vmem:[#allocation41_spill] sm:$0xff] }
 0x305   : > { %v3385_v54 = vcombine.low %v3310_v60, %v3309_v35  ;;  %v3158_v46 = vadd.f32 %v3148_v33, %v3123_v48  ;;  %v2728_v8 = vadd.f32 %v7026_v47, %v2712_v4  ;;  %v3183_v12 = vsel %vm916_vm4, %v3182_v41, %v7019_v22  ;;  %v7032_v35 = vld [vmem:[#allocation32_spill] sm:$0xff]  ;;  %v7037_v33 = vld [vmem:[#allocation15_spill] sm:$0xff] }
 0x306   : > { %v3368_v14 = vcombine.low %v3286_v39, %v3294_v44  ;;  %v3369_v38 = vcombine.low %v3293_v32, %v3302_v23  ;;  %v3092_v17 = vadd.f32 %v7025_v7, %v3062_v10  ;;  %v2822_v20 = vrot.slane %v7028_v43, 3  ;;  %v7029_v23 = vld [vmem:[#allocation36_spill] sm:$0xff] }
 0x307   : > { %v3392_v29 = vrot.slane %v3385_v54, %v7021_v19  ;;  %v7030_v50 = vrot.slane %v7029_v23, 2  ;;  %v3193_v39 = vadd.f32 %v3183_v12, %v3158_v46  ;;  %v2762_v9 = vadd.f32 %v2750_v36, %v2728_v8  ;;  %v7034_v41 = vld [vmem:[#allocation28_spill] sm:$0xff] }
 0x308   : > { %v3383_v18 = vrot.slane %v3369_v38, %v7021_v19  ;;  %v2784_v6 = vrot.slane %v7031_v52, 2  ;;  %v3376_v5 = vrot.slane %v3368_v14, %v7021_v19  ;;  %v7033_v60 = vrot.slane %v7032_v35, 3  ;;  %v7040_v52 = vld [vmem:[#allocation45_spill] sm:$0xff] }
 0x309   : > { %v3122_v13 = vadd.f32 %v7030_v50, %v3092_v17  ;;  %3877 = vmatpush3.xpose.msk.msra.mxu1 %vm3393_vm14, %v3392_v29  ;;  %v7035_v44 = vrot.slane %v7034_v41, 4  ;;  %v2865_v10 = vrot.slane %v2850_v26, 4  ;;  %v7036_v48 = vmov 0.0  }
 0x30a   : > { %v3146_v32 = vsel %vm810_vm3, %v7033_v60, %v7017_v58  ;;  %3878 = vmatprep.subr.mxu1 %v7036_v48  ;;  %v3205_v54 = vadd.f32 %v6278_v0, %v3193_v39  ;;  %v2796_v38 = vadd.f32 %v2784_v6, %v2762_v9  ;;  %v7039_v14 = vrot.slane %v7038_v2, 1  ;;  %3886 = vmatprep.mubr.msk.f32.mxu1 %vm4151_vm15, %v7036_v48 }
 0x30b   : > { %v3181_v37 = vsel %vm916_vm4, %v7035_v44, %v7019_v22  ;;  %v3157_v4 = vadd.f32 %v3146_v32, %v3122_v13  ;;  %v3384_v17 = vcombine.low %v3376_v5, %v3383_v18  ;;  %v2823_v46 = vsel %vm810_vm3, %v2822_v20, %v6943_v55 }
 0x30c   : > { %v2597_v7 = vadd.f32 %v7039_v14, %v7037_v33  ;;  %v2908_v47 = vmul.f32 %v6950_v15, %v6009_v45  ;;  %v2977_v26 = vmul.f32 %v6952_v31, %v6009_v45  ;;  %v3263_v34 = vcombine.high %v3205_v54, %v3205_v54 }
 0x30d   : > { %v3192_v8 = vadd.f32 %v3181_v37, %v3157_v4  ;;  %v3270_v36 = vrot.slane %v3205_v54, %v7021_v19  ;;  %v2839_v29 = vadd.f32 %v2823_v46, %v2796_v38  ;;  %3879 = vmatpush3.xpose.msk.msra.mxu1 %vm3393_vm14, %v3384_v17  ;;  %v2866_v12 = vsel %vm916_vm4, %v2865_v10, %v6945_v42 }
 0x30e   : > { %v2892_v18 = vmul.f32 %v6953_v30, %v6009_v45  ;;  %v2942_v43 = vmul.f32 %v6957_v56, %v6009_v45  ;;  %v3017_v20 = vmul.f32 %v6955_v24, %v6009_v45  ;;  %3880 = vmatprep.subr.mxu1 %v7036_v48  ;;  %v3277_v50 = vrot.slane %v3263_v34, %v7021_v19 }
 0x30f   : > { %v3204_v23 = vadd.f32 %v6278_v0, %v3192_v8  ;;  %v3278_v13 = vcombine.high %v3270_v36, %v3270_v36  ;;  %v2882_v39 = vadd.f32 %v2866_v12, %v2839_v29  ;;  %v2990_v9 = vrot.slane %v2977_v26, 3 }
 0x310   : > { %v7041_v6 = vrot.slane %v7040_v52, 2  ;;  %v2920_v41 = vrot.slane %v2908_v47, 1  ;;  %v2721_v37 = vmul.f32 %v6936_v3, %v7010_v57  ;;  %v2954_v54 = vrot.slane %v2942_v43, 2 }
 0x311   : > { %v3247_v35 = vcombine.high %v3204_v23, %v3204_v23  ;;  %v3352_v60 = vcombine.low %v3278_v13, %v3277_v50  ;;  %v2898_v32 = vadd.f32 %v2892_v18, %v2882_v39  ;;  %v3030_v38 = vrot.slane %v3017_v20, 4 }
 0x312   : > { %v2631_v5 = vadd.f32 %v7041_v6, %v2597_v7  ;;  %v2991_v33 = vsel %vm810_vm3, %v2990_v9, %v6970_v40  ;;  %v3071_v2 = vmul.f32 %v6999_v11, %v6027_v63  ;;  %v2737_v7 = vmul.f32 %v6938_v25, %v7010_v57 }
 0x313   : > { %v3261_v10 = vrot.slane %v3247_v35, %v7021_v19  ;;  %v2932_v4 = vadd.f32 %v2920_v41, %v2898_v32  ;;  %v3366_v17 = vrot.slane %v3352_v60, %v7021_v19  ;;  %v2771_v46 = vmul.f32 %v6939_v62, %v7010_v57 }
 0x314   : > { %v2671_v44 = vadd.f32 %v6940_v28, %v2631_v5  ;;  %v2749_v26 = vrot.slane %v2737_v7, 1  ;;  %v2805_v8 = vmul.f32 %v6933_v49, %v7010_v57  ;;  %v2848_v34 = vmul.f32 %v6935_v51, %v7010_v57 }
 0x315   : > { %v3351_v28 = vcombine.low %v3261_v10, %v3270_v36  ;;  %v2966_v3 = vadd.f32 %v2954_v54, %v2932_v4  ;;  %v3031_v25 = vsel %vm916_vm4, %v3030_v38, %v6972_v21  ;;  %v3101_v36 = vmul.f32 %v7002_v16, %v6027_v63 }
 0x316   : > { %v2711_v14 = vadd.f32 %v6941_v1, %v2671_v44  ;;  %v3132_v62 = vmul.f32 %v7009_v53, %v6027_v63  ;;  %v2783_v18 = vrot.slane %v2771_v46, 2  ;;  %v2819_v43 = vrot.slane %v2805_v8, 3 }
 0x317   : > { %v3359_v1 = vrot.slane %v3351_v28, %v7021_v19  ;;  %v3006_v29 = vadd.f32 %v2991_v33, %v2966_v3  ;;  %v3056_v51 = vmul.f32 %v7008_v59, %v6027_v63  ;;  %v2862_v57 = vrot.slane %v2848_v34, 4 }
 0x318   : > { %v2727_v47 = vadd.f32 %v2721_v37, %v2711_v14  ;;  %v3167_v50 = vmul.f32 %v6256_v27, %v6027_v63  ;;  %v3081_v9 = vrot.slane %v3071_v2, 1  ;;  %v2821_v52 = vsel %vm810_vm3, %v2819_v43, %v6943_v55 }
 0x319   : > { %v3367_v20 = vcombine.low %v3359_v1, %v3366_v17  ;;  %v3046_v49 = vadd.f32 %v3031_v25, %v3006_v29  ;;  %v3111_v6 = vrot.slane %v3101_v36, 2  ;;  %v3143_v5 = vrot.slane %v3132_v62, 3 }
 0x31a   : > { %v2761_v12 = vadd.f32 %v2749_v26, %v2727_v47  ;;  %v2907_v60 = vmul.f32 %v6950_v15, %v7023_v61  ;;  %v3254_v41 = vrot.slane %v3204_v23, %v7021_v19  ;;  %v2864_v63 = vsel %vm916_vm4, %v2862_v57, %v6945_v42 }
 0x31b   : > { %3881 = vmatpush3.xpose.msk.msra.mxu1 %vm3393_vm14, %v3367_v20  ;;  %v3061_v39 = vadd.f32 %v3056_v51, %v3046_v49  ;;  %v2975_v44 = vmul.f32 %v6952_v31, %v7023_v61  ;;  %v3178_v37 = vrot.slane %v3167_v50, 4  ;;  %v2891_v55 = vmul.f32 %v6953_v30, %v7023_v61 }
 0x31c   : > { %v2795_v13 = vadd.f32 %v2783_v18, %v2761_v12  ;;  %3882 = vmatprep.subr.mxu1 %v7036_v48  ;;  %v2941_v4 = vmul.f32 %v6957_v56, %v7023_v61  ;;  %v3015_v15 = vmul.f32 %v6955_v24, %v7023_v61  ;;  %v3144_v23 = vsel %vm810_vm3, %v3143_v5, %v7017_v58 }
 0x31d   : > { %v3091_v32 = vadd.f32 %v3081_v9, %v3061_v39  ;;  %v2919_v42 = vrot.slane %v2907_v60, 1  ;;  %v2987_v2 = vrot.slane %v2975_v44, 3  ;;  %v3179_v31 = vsel %vm916_vm4, %v3178_v37, %v7019_v22 }
 0x31e   : > { %v2838_v35 = vadd.f32 %v2821_v52, %v2795_v13  ;;  %v3262_v30 = vcombine.high %v3254_v41, %v3254_v41  ;;  %v2953_v56 = vrot.slane %v2941_v4, 2  ;;  %v3027_v28 = vrot.slane %v3015_v15, 4  ;;  %v7043_v4 = vld [vmem:[#allocation11_spill] sm:$0xff] }
 0x31f   : > { %v3121_v54 = vadd.f32 %v3111_v6, %v3091_v32  ;;  %v2989_v61 = vsel %vm810_vm3, %v2987_v2, %v6970_v40  ;;  %v3070_v47 = vmul.f32 %v6999_v11, %v6009_v45  ;;  %v3130_v1 = vmul.f32 %v7009_v53, %v6009_v45  ;;  %v3571_v2 = vld [vmem:[%s6533_s9 + $0x8] sm:$0xff] }
 0x320   : > { %v2881_v10 = vadd.f32 %v2864_v63, %v2838_v35  ;;  %v3335_v3 = vcombine.low %v3254_v41, %v3262_v30  ;;  %v3029_v34 = vsel %vm916_vm4, %v3027_v28, %v6972_v21  ;;  %v3055_v25 = vmul.f32 %v7008_v59, %v6009_v45 }
 0x321   : > { %v3156_v33 = vadd.f32 %v3144_v23, %v3121_v54  ;;  %v3100_v40 = vmul.f32 %v7002_v16, %v6009_v45  ;;  %v3165_v11 = vmul.f32 %v6256_v27, %v6009_v45  ;;  %v3080_v18 = vrot.slane %v3070_v47, 1 }
 0x322   : > { %v2897_v38 = vadd.f32 %v2891_v55, %v2881_v10  ;;  %v3349_v21 = vrot.slane %v3335_v3, %v7021_v19  ;;  %v3140_v20 = vrot.slane %v3130_v1, 3  ;;  %v7042_v10 = vmov 0  }
 0x323   : > { %v3191_v7 = vadd.f32 %v3179_v31, %v3156_v33  ;;  %v3110_v49 = vrot.slane %v3100_v40, 2  ;;  %v3175_v59 = vrot.slane %v3165_v11, 4  ;;  %v3570_v33 = vld [vmem:[%s6533_s9] sm:$0xff] }
 0x324   : > { %v2931_v14 = vadd.f32 %v2919_v42, %v2897_v38  ;;  %v3142_v16 = vsel %vm810_vm3, %v3140_v20, %v7017_v58  ;;  %v7044_v38 = vld [vmem:[#allocation12_spill] sm:$0xff] }
 0x325   : > { %v3203_v24 = vadd.f32 %v6278_v0, %v3191_v7  ;;  %v3177_v45 = vsel %vm916_vm4, %v3175_v59, %v7019_v22  ;;  %v3208_v22 = vld [vmem:[#allocation5] sm:$0xff]  ;;  %v3573_v7 = vld [vmem:[%s6533_s9 + $0x18] sm:$0xff] }
 0x326   : > { %v2965_v17 = vadd.f32 %v2953_v56, %v2931_v14  ;;  %v3574_v14 = vpack.c.bf16 %v3571_v2, %v3570_v33  ;;  %v3572_v56 = vld [vmem:[%s6533_s9 + $0x10] sm:$0xff]  ;;  %v4019_v2 = vld [vmem:[%s4316_s28 + $0x20] sm:$0xff] }
 0x327   : > { %v3231_v26 = vcombine.high %v3203_v24, %v3203_v24  ;;  %v3238_v8 = vrot.slane %v3203_v24, %v7021_v19  ;;  %v3575_v28 = vpack.c.bf16 %v3573_v7, %v3572_v56 }
 0x328   : > { %v3005_v46 = vadd.f32 %v2989_v61, %v2965_v17  ;;  %v3583_v17 = vpop.permute.xlu0 %3582 }
 0x329   : > { %v3245_v36 = vrot.slane %v3231_v26, %v7021_v19  ;;  %v3246_v62 = vcombine.high %v3238_v8, %v3238_v8 }
 0x32a   : > { %v3045_v29 = vadd.f32 %v3029_v34, %v3005_v46 }
 0x32b   : > { %v3334_v43 = vcombine.low %v3246_v62, %v3245_v36 }
 0x32c   : > { %v3060_v12 = vadd.f32 %v3055_v25, %v3045_v29 }
 0x32d   : > { %v3342_v51 = vrot.slane %v3334_v43, %v7021_v19 }
 0x32e   : > { %v3090_v53 = vadd.f32 %v3080_v18, %v3060_v12 }
 0x32f   : > { %v3350_v50 = vcombine.low %v3342_v51, %v3349_v21 }
 0x330   : > { %v3120_v57 = vadd.f32 %v3110_v49, %v3090_v53 }
 0x331   : > { %3883 = vmatpush3.xpose.msk.msra.mxu1 %vm3393_vm14, %v3350_v50 }
 0x332   : > { %v3155_v13 = vadd.f32 %v3142_v16, %v3120_v57  ;;  %3884 = vmatprep.subr.mxu1 %v7036_v48  ;;  %v3477_v48 = vld [vmem:[%s6535_s11] sm:$0xff] }
 0x334   : > { %v3190_v27 = vadd.f32 %v3177_v45, %v3155_v13 }
 0x336   : > { %v3202_v39 = vadd.f32 %v6278_v0, %v3190_v27  ;;  %v3478_v0 = vld [vmem:[%s6535_s11 + $0x8] sm:$0xff] }
 0x337   : > { %3527 = vmatprep.subr.mxu0 %v3478_v0 }
 0x338   : > { %v3215_v9 = vcombine.high %v3202_v39, %v3202_v39  ;;  %v3222_v52 = vrot.slane %v3202_v39, %v7021_v19  ;;  %3528 = vmatpush1.msra.mxu0 %v3477_v48 }
 0x339   : > { %v3315_v63 = vpop.permute.xlu1 %3314 }
 0x33a   : > { %v3229_v6 = vrot.slane %v3215_v9, %v7021_v19  ;;  %v3230_v5 = vcombine.high %v3222_v52, %v3222_v52 }
 0x33c   : > { %v3317_v35 = vcombine.low %v3222_v52, %v3230_v5  ;;  %v3318_v60 = vcombine.low %v3229_v6, %v3238_v8 }
 0x33d   : > { %v3588_v24 = vpop.permute.xlu1 %3587 }
 0x33e   : > { %v3325_v58 = vrot.slane %v3317_v35, %v7021_v19  ;;  %v3332_v32 = vrot.slane %v3318_v60, %v7021_v19 }
 0x340   : > { %v3333_v41 = vcombine.low %v3325_v58, %v3332_v32 }
 0x342   : > { %3885 = vmatpush3.xpose.msk.msra.mxu1 %vm3393_vm14, %v3333_v41  ;;  %v3593_v29 = vpop.permute.xlu1 %3592 }
 0x345   : > { %3887 = vmatmul.mubr.msk.f32.vlgmr.msra.gmra.mxu1 %vm3393_vm14, %v3208_v22 }
 0x346   : > { %v3598_v20 = vpop.permute.xlu1 %3597 }
 0x405   : > { %v3473_v44 = vpop.f32.mrf.mxu1 }
 0x406   : > { %v3474_v19 = vadd.f32 %v3473_v44, %v3315_v63  ;;  %v4015_v44 = vld [vmem:[%s4316_s28] sm:$0xff] }
 0x407   : > { %v3888_v37 = vpop.f32.mrf.mxu1 }
 0x408   : > { %3851 = vmatmul.mubr.msk.f32.vlgmr.msra.gmra.mxu0 %vm3487_vm0, %v3474_v19 }
 0x409   : > { %3644 = vmatprep.mubr.bf16.mxu0 %v7042_v10 }
 0x4c8   : > { %v3563_v55 = vpop.f32.mrf.mxu0 }
 0x4c9   : > { %v3564_v54 = vadd.f32 %v3563_v55, %v7043_v4 }
 0x4ca   : > { %v3565_v15 = vpop.f32.mrf.mxu0 }
 0x4cb   : > { %v3568_v23 = vpack.c.bf16 %v3564_v54, %v3564_v54  ;;  %v3566_v42 = vadd.f32 %v3565_v15, %v7044_v38  ;;  %v4017_v54 = vld [vmem:[%s4316_s28 + $0x10] sm:$0xff]  ;;  %v4018_v38 = vld [vmem:[%s4316_s28 + $0x18] sm:$0xff] }
 0x4cd   : > { %v3569_v31 = vpack.c.bf16 %v3566_v42, %v3566_v42  ;;  %v3607_v30 = vsel %vm916_vm4, %v3568_v23, 0 }
 0x4cf   : > { %3852 = vmatprep.subr.msk.bf16.mxu0 %vm916_vm4, %v3569_v31 }
 0x4d0   : > { %3627 = vmatpush1.bf16.msra.mxu0 %v3607_v30 }
 0x4d3   : > { %3853 = vmatmul.mubr.msk.bf16.vlgmr.msra.gmra.mxu0 %vm3393_vm14, %v3574_v14  ;;  %v4020_v14 = vld [vmem:[%s4316_s28 + $0x28] sm:$0xff] }
 0x4d4   : > { %3654 = vmatprep.mubr.bf16.mxu0 %v7042_v10  ;;  %v4016_v10 = vld [vmem:[%s4316_s28 + $0x8] sm:$0xff] }
 0x4db   : > { %3854 = vmatmul.mubr.msk.bf16.gmra.mxu0 %vm3393_vm14, %v3575_v28  ;;  %v4021_v28 = vld [vmem:[%s4316_s28 + $0x30] sm:$0xff] }
 0x593   : > { %v3646_v61 = vpop.f32.mrf.mxu0 }
 0x594   : > { %v3647_v3 = vadd.f32 %v3646_v61, %v3583_v17  ;;  %v4022_v61 = vld [vmem:[%s4316_s28 + $0x38] sm:$0xff] }
 0x595   : > { %v3648_v46 = vpop.f32.mrf.mxu0 }
 0x596   : > { %v3855_v47 = vmul.f32 -1.442695, %v3647_v3  ;;  %v3649_v26 = vadd.f32 %v3648_v46, %v3583_v17 }
 0x597   : > { %v3650_v8 = vpop.f32.mrf.mxu0 }
 0x598   : > { %3982 = vpow2.f32 %v3855_v47  ;;  %v3856_v34 = vmul.f32 -1.442695, %v3649_v26  ;;  %v3651_v1 = vadd.f32 %v3650_v8, %v3588_v24 }
 0x599   : > { %v3652_v25 = vpop.f32.mrf.mxu0 }
 0x59a   : > { %3984 = vpow2.f32 %v3856_v34  ;;  %v3857_v40 = vmul.f32 -1.442695, %v3651_v1  ;;  %v3653_v36 = vadd.f32 %v3652_v25, %v3588_v24 }
 0x59b   : > { %v3656_v62 = vpop.f32.mrf.mxu0 }
 0x59c   : > { %3986 = vpow2.f32 %v3857_v40  ;;  %v3858_v11 = vmul.f32 -1.442695, %v3653_v36  ;;  %v3657_v12 = vadd.f32 %v3656_v62, %v3593_v29 }
 0x59d   : > { %v3658_v18 = vpop.f32.mrf.mxu0 }
 0x59e   : > { %3988 = vpow2.f32 %v3858_v11  ;;  %v3859_v43 = vmul.f32 -1.442695, %v3657_v12  ;;  %v3659_v21 = vadd.f32 %v3658_v18, %v3593_v29 }
 0x59f   : > { %v3660_v53 = vpop.f32.mrf.mxu0 }
 0x5a0   : > { %3990 = vpow2.f32 %v3859_v43  ;;  %v3860_v49 = vmul.f32 -1.442695, %v3659_v21  ;;  %v3661_v51 = vadd.f32 %v3660_v53, %v3598_v20 }
 0x5a1   : > { %v3662_v59 = vpop.f32.mrf.mxu0 }
 0x5a2   : > { %3992 = vpow2.f32 %v3860_v49  ;;  %v3861_v57 = vmul.f32 -1.442695, %v3661_v51  ;;  %v3663_v50 = vadd.f32 %v3662_v59, %v3598_v20 }
 0x5a4   : > { %3994 = vpow2.f32 %v3861_v57  ;;  %v3862_v16 = vmul.f32 -1.442695, %v3663_v50 }
 0x5a5   : > { %v3983_v13 = vpop.eup %3982 }
 0x5a6   : > { %v3689_v45 = vadd.f32 1.0, %v3983_v13  ;;  %3996 = vpow2.f32 %v3862_v16 }
 0x5a7   : > { %v3985_v27 = vpop.eup %3984 }
 0x5a8   : > { %3998 = vrcp.f32 %v3689_v45  ;;  %v3690_v39 = vadd.f32 1.0, %v3985_v27 }
 0x5a9   : > { %v3987_v9 = vpop.eup %3986 }
 0x5aa   : > { %4000 = vrcp.f32 %v3690_v39  ;;  %v3691_v52 = vadd.f32 1.0, %v3987_v9 }
 0x5ab   : > { %v3989_v6 = vpop.eup %3988 }
 0x5ac   : > { %4002 = vrcp.f32 %v3691_v52  ;;  %v3692_v5 = vadd.f32 1.0, %v3989_v6 }
 0x5ad   : > { %v3991_v35 = vpop.eup %3990 }
 0x5ae   : > { %4004 = vrcp.f32 %v3692_v5  ;;  %v3693_v60 = vadd.f32 1.0, %v3991_v35 }
 0x5af   : > { %v3993_v58 = vpop.eup %3992 }
 0x5b0   : > { %4006 = vrcp.f32 %v3693_v60  ;;  %v3694_v32 = vadd.f32 1.0, %v3993_v58 }
 0x5b1   : > { %v3995_v41 = vpop.eup %3994 }
 0x5b2   : > { %4008 = vrcp.f32 %v3694_v32  ;;  %v3695_v22 = vadd.f32 1.0, %v3995_v41 }
 0x5b3   : > { %v3997_v0 = vpop.eup %3996 }
 0x5b4   : > { %4010 = vrcp.f32 %v3695_v22  ;;  %v3696_v48 = vadd.f32 1.0, %v3997_v0 }
 0x5b5   : > { %v3999_v63 = vpop.eup %3998 }
 0x5b6   : > { %v3713_v19 = vmul.f32 %v4015_v44, %v3999_v63  ;;  %4012 = vrcp.f32 %v3696_v48 }
 0x5b7   : > { %v4001_v37 = vpop.eup %4000 }
 0x5b8   : > { %3721 = vst [vmem:[%s6456_s19] sm:$0xff] %v3713_v19  ;;  %v3714_v55 = vmul.f32 %v4016_v10, %v4001_v37 }
 0x5b9   : > { %v4003_v4 = vpop.eup %4002 }
 0x5ba   : > { %3722 = vst [vmem:[%s6456_s19 + $0x8] sm:$0xff] %v3714_v55  ;;  %v3715_v15 = vmul.f32 %v4017_v54, %v4003_v4 }
 0x5bb   : > { %v4005_v23 = vpop.eup %4004 }
 0x5bc   : > { %3723 = vst [vmem:[%s6456_s19 + $0x10] sm:$0xff] %v3715_v15  ;;  %v3716_v42 = vmul.f32 %v4018_v38, %v4005_v23 }
 0x5bd   : > { %v4007_v33 = vpop.eup %4006 }
 0x5be   : > { %3724 = vst [vmem:[%s6456_s19 + $0x18] sm:$0xff] %v3716_v42  ;;  %v3717_v31 = vmul.f32 %v4019_v2, %v4007_v33 }
 0x5bf   : > { %v4009_v30 = vpop.eup %4008 }
 0x5c0   : > { %3725 = vst [vmem:[%s6456_s19 + $0x20] sm:$0xff] %v3717_v31  ;;  %v3718_v56 = vmul.f32 %v4020_v14, %v4009_v30 }
 0x5c1   : > { %v4011_v7 = vpop.eup %4010 }
 0x5c2   : > { %3726 = vst [vmem:[%s6456_s19 + $0x28] sm:$0xff] %v3718_v56  ;;  %v3719_v17 = vmul.f32 %v4021_v28, %v4011_v7 }
 0x5c3   : > { %v4013_v24 = vpop.eup %4012 }
 0x5c4   : > { %3727 = vst [vmem:[%s6456_s19 + $0x30] sm:$0xff] %v3719_v17  ;;  %v3720_v3 = vmul.f32 %v4022_v61, %v4013_v24 }
 0x5c6   : > { %3728 = vst [vmem:[%s6456_s19 + $0x38] sm:$0xff] %v3720_v3 }
 0x5c7   : > { %4088 = shalt.err (!%p4085_p1)
}
 0x5c8   : > { %s4089_s28 = scalar_lea.hbm %s6475_s26, 1024  ;;  %s4093_s16 = scalar_lea.hbm %s6536_s12, 2048 }
 0x5c9   : > { %p4090_p2 = scmp.ne.s32.totalorder %s6475_s26, %s4089_s28  ;;  %p4094_p9 = scmp.lt.s32.totalorder %s6475_s26, %s6536_s12 }
 0x5ca   : > { %p4095_p5 = scmp.lt.s32.totalorder %s4093_s16, %s4089_s28 }
 0x5cb   : > { %p4091_p3 = pnand %p4090_p2, %p7045_p12 }
 0x5cc   : > { %p4096_p6 = por %p4095_p5, %p4094_p9 }
 0x5cd   : > { %p4092_p13 = pneg %p4091_p3 }
 0x5cf   : > { %p4097_p10 = pnand %p4096_p6, %p4092_p13 }
 0x5d1   : > { %4100 = shalt.err (!%p4097_p10)
}
 0x5d2   : > { %s4153_s17 = smov 256   ;;  %s4154_s20 = smov 16  }
 0x5d3   : > { %3897 = dma.vmem_to_hbm [thread:$0]  (%p7045_p12), %s6477_s29, 1024, %s6475_s26, %s6484_s25, %s4153_s17, %s4153_s17, %s4154_s20  }
 0x5d4 PF: > { %p3914_p4 = scmp.ge.s32.totalorder %s4143_s24, 2  ;;  %s3758_s18 = sand.u32 1, %s4131_s21  }
 0x5d5   : > { %p7046_p7 = scmp.ne.s32.totalorder %s6706_s14, 0  ;;  %s3759_s0 = scalar_lea.sflag [#allocation4], %s3758_s18 }
 0x5d7   : > { %p3907_p8 = pnand %p3914_p4, %p7046_p7 }
 0x5d9   : > { %p3908_p11 = pneg %p3907_p8 }
 0x5db   : > { %4126 = dma.done.wait (%p3908_p11), %s3759_s0, 1024  }
 0x5dc   : > { %4128 = vsyncadd (%p3908_p11), %s3759_s0, 4294966272  ;;  %p24_p0 = scmp.ge.s32.totalorder %s4245_s27, 4   ;;  %s7047_s21 = smov %s4135_s22 }
 0x5dd   : > { %s7048_s22 = smov %s4139_s23  ;;  %s7049_s23 = smov %s4256_s30 }
 0x5de   : > { %s7050_s24 = smov %s4245_s27  ;;  %26 = sbr.rel (!%p24_p0) target bundleno = 8 (0x8), region = 112 }
 0x5e3   :  { %3764 = vsyncpa [#allocation3], 1 }
 0x5e4   :  { %3766 = vsyncpa [#allocation3 + $0x1], 1 }
 0x5e5   :  { %3767 = vsyncpa [#allocation6], 1 }
 0x5e6   :  { %3768 = vsyncpa [#allocation4], 1 }
 0x5e7   :  { %3770 = vsyncpa [#allocation4 + $0x1], 1 }

</bundles_post_ra>
